<compile_context>
chip_gen: v5e
topology: v5e:2x2
jax: 0.10.0
libtpu: 0.0.40
codegen_flags: <defaults>
</compile_context>

<pallas_src>
import numpy as np
import jax
import jax.numpy as jnp
from jax import lax
from jax.experimental import pallas as pl
from jax.experimental.pallas import tpu as pltpu

LATENT_DIM = 100
IMG_SHAPE = (3, 25, 25)
IMG_FLAT = int(np.prod(IMG_SHAPE))   # 1875
N_PAD = 1920                         # 15 * 128 — lane-dense padded head width
TN = 384                             # head tile width (3 * 128): 5 pipelined tiles
HIDDEN = 1024
BN_EPS = 0.8
LRELU_SLOPE = 0.2
VMEM_LIMIT = 32 * 1024 * 1024        # fits all generations (v7x physical VMEM = 64 MiB)


def _leaky_relu(x):
    return jnp.where(x >= 0.0, x, LRELU_SLOPE * x)


def _bn_lrelu(x, gamma, beta):
    # Training-mode BatchNorm1d: batch mean, biased batch variance, eps=0.8.
    mean = jnp.mean(x, axis=0, keepdims=True)
    var = jnp.mean((x - mean) ** 2, axis=0, keepdims=True)
    y = (x - mean) * lax.rsqrt(var + BN_EPS) * gamma + beta
    return _leaky_relu(y)


def hidden_kernel(z_ref,
                  w1_ref, b1_ref,
                  w2_ref, g2_ref, bt2_ref,
                  w3_ref, g3_ref, bt3_ref,
                  w4_ref, g4_ref, bt4_ref,
                  h_ref):
    # Block 1: Linear(100,128) + LeakyReLU (no normalization).
    h = jnp.dot(z_ref[...].astype(jnp.bfloat16), w1_ref[...],
                preferred_element_type=jnp.float32)
    h = _leaky_relu(h + b1_ref[...])

    # Block 2: Linear(128,256) + BN(eps=0.8) + LeakyReLU.
    # Linear bias dropped: it cancels exactly under the batch-mean subtraction.
    h = jnp.dot(h.astype(jnp.bfloat16), w2_ref[...],
                preferred_element_type=jnp.float32)
    h = _bn_lrelu(h, g2_ref[...], bt2_ref[...])

    # Block 3: Linear(256,512) + BN + LeakyReLU.
    h = jnp.dot(h.astype(jnp.bfloat16), w3_ref[...],
                preferred_element_type=jnp.float32)
    h = _bn_lrelu(h, g3_ref[...], bt3_ref[...])

    # Block 4: Linear(512,1024) + BN + LeakyReLU.
    h = jnp.dot(h.astype(jnp.bfloat16), w4_ref[...],
                preferred_element_type=jnp.float32)
    h = _bn_lrelu(h, g4_ref[...], bt4_ref[...])

    h_ref[...] = h.astype(jnp.bfloat16)


def head_kernel(h_ref, w5_ref, b5_ref, out_ref):
    # Output head tile: Linear(1024, TN) + Tanh (lane-dense, multiple-of-128 store).
    o = jnp.dot(h_ref[...], w5_ref[...], preferred_element_type=jnp.float32)
    out_ref[...] = jnp.tanh(o + b5_ref[...])


def generator_forward(z, params):
    B = z.shape[0]
    vmem = pl.BlockSpec(memory_space=pltpu.MemorySpace.VMEM)

    hidden_args = (z,
                   params["w1"], params["b1"],
                   params["w2"], params["g2"], params["bt2"],
                   params["w3"], params["g3"], params["bt3"],
                   params["w4"], params["g4"], params["bt4"])

    # Stage 1: small layers 1-4, fully VMEM resident, single invocation.
    h = pl.pallas_call(
        hidden_kernel,
        out_shape=jax.ShapeDtypeStruct((B, HIDDEN), jnp.bfloat16),
        in_specs=[vmem] * len(hidden_args),
        out_specs=vmem,
        compiler_params=pltpu.CompilerParams(vmem_limit_bytes=VMEM_LIMIT),
        cost_estimate=pl.CostEstimate(
            flops=2 * B * (LATENT_DIM * 128 + 128 * 256 + 256 * 512 + 512 * 1024),
            transcendentals=2048,
            bytes_accessed=1_600_000),
    )(*hidden_args)

    # Stage 2: dominant Linear(1024, 1920-padded) + Tanh, tiled over output N.
    # w5 tiles are double-buffered by the pipeline; "parallel" lets v7x shard the
    # tiles (and the dominant w5 HBM read) across its two TensorCores.
    n_tiles = N_PAD // TN
    flat = pl.pallas_call(
        head_kernel,
        out_shape=jax.ShapeDtypeStruct((B, N_PAD), jnp.float32),
        grid_spec=pltpu.PrefetchScalarGridSpec(
            num_scalar_prefetch=0,
            grid=(n_tiles,),
            in_specs=[
                pl.BlockSpec((B, HIDDEN), lambda j: (0, 0)),   # h: resident
                pl.BlockSpec((HIDDEN, TN), lambda j: (0, j)),  # w5 tile: pipelined
                pl.BlockSpec((1, TN), lambda j: (0, j)),       # b5 tile
            ],
            out_specs=pl.BlockSpec((B, TN), lambda j: (0, j)),
        ),
        compiler_params=pltpu.CompilerParams(
            dimension_semantics=("parallel",),
            vmem_limit_bytes=VMEM_LIMIT),
        cost_estimate=pl.CostEstimate(
            flops=2 * B * HIDDEN * N_PAD,
            transcendentals=B * N_PAD,
            bytes_accessed=HIDDEN * N_PAD * 2 + B * N_PAD * 4 + B * HIDDEN * 2),
    )(h, params["w5"], params["b5"])

    # Drop the lane padding and match PyTorch: img.view(B, *img_shape).
    return flat[:, :IMG_FLAT].reshape(B, *IMG_SHAPE)


def init_params(key):
    """Deterministic init mimicking PyTorch defaults.

    Linear: W ~ U(-k, k), b ~ U(-k, k), k = 1/sqrt(fan_in).
    BatchNorm1d: gamma = 1, beta = 0.
    Weights are stored transposed, i.e. shape (in, out), in bfloat16 (the kernel
    is HBM-bandwidth bound on weight reads; matmuls accumulate in f32).
    Linear biases of BN blocks are omitted (they cancel under batch normalization).
    The output head is padded from 1875 to 1920 columns (zeros) for lane-dense tiling.
    """
    dims = [(LATENT_DIM, 128), (128, 256), (256, 512), (512, HIDDEN), (HIDDEN, IMG_FLAT)]
    keys = jax.random.split(key, 2 * len(dims))
    params = {}
    for i, (fi, fo) in enumerate(dims):
        k = 1.0 / np.sqrt(fi)
        w = jax.random.uniform(keys[2 * i], (fi, fo), jnp.float32, -k, k)
        b = jax.random.uniform(keys[2 * i + 1], (1, fo), jnp.float32, -k, k)
        n = i + 1
        if i == 0:
            params["w1"] = w.astype(jnp.bfloat16)
            params["b1"] = b
        elif i in (1, 2, 3):
            params[f"w{n}"] = w.astype(jnp.bfloat16)
            # Linear bias dropped (cancels under BatchNorm); BN affine params:
            params[f"g{n}"] = jnp.ones((1, fo), jnp.float32)
            params[f"bt{n}"] = jnp.zeros((1, fo), jnp.float32)
        else:
            pad = N_PAD - IMG_FLAT
            params["w5"] = jnp.pad(w, ((0, 0), (0, pad))).astype(jnp.bfloat16)
            params["b5"] = jnp.pad(b, ((0, 0), (0, pad)))
    return params


if __name__ == "__main__":
    key = jax.random.PRNGKey(0)
    k_params, k_z = jax.random.split(key)
    params = init_params(k_params)

    B = 8  # small batch (>1 so training-mode BatchNorm statistics are well defined)
    z = jax.random.normal(k_z, (B, LATENT_DIM), jnp.float32)

    img = generator_forward(z, params)
    img = jax.block_until_ready(img)

    assert img.shape == (B,) + IMG_SHAPE, img.shape
    assert img.dtype == jnp.float32
    assert bool(jnp.all(jnp.isfinite(img)))
    assert bool(jnp.all(jnp.abs(img) <= 1.0))  # tanh output range

    print("KERNEL_OK")
</pallas_src>

<mosaic_0001>
module attributes {stable_mosaic.version = 11 : i64} {
  func.func @hidden_kernel(%arg0: memref<8x100xf32, #tpu.memory_space<vmem>>, %arg1: memref<100x128xbf16, #tpu.memory_space<vmem>>, %arg2: memref<1x128xf32, #tpu.memory_space<vmem>>, %arg3: memref<128x256xbf16, #tpu.memory_space<vmem>>, %arg4: memref<1x256xf32, #tpu.memory_space<vmem>>, %arg5: memref<1x256xf32, #tpu.memory_space<vmem>>, %arg6: memref<256x512xbf16, #tpu.memory_space<vmem>>, %arg7: memref<1x512xf32, #tpu.memory_space<vmem>>, %arg8: memref<1x512xf32, #tpu.memory_space<vmem>>, %arg9: memref<512x1024xbf16, #tpu.memory_space<vmem>>, %arg10: memref<1x1024xf32, #tpu.memory_space<vmem>>, %arg11: memref<1x1024xf32, #tpu.memory_space<vmem>>, %arg12: memref<8x1024xbf16, #tpu.memory_space<vmem>>) attributes {dimension_semantics = [], scalar_prefetch = 0 : i64, scratch_operands = 0 : i64, tpu.core_type = #tpu.core_type<tc>} {
    %c0 = arith.constant 0 : index
    %c0_0 = arith.constant 0 : index
    %0 = vector.load %arg0[%c0, %c0_0] : memref<8x100xf32, #tpu.memory_space<vmem>>, vector<8x100xf32>
    %1 = arith.truncf %0 : vector<8x100xf32> to vector<8x100xbf16>
    %c0_1 = arith.constant 0 : index
    %c0_2 = arith.constant 0 : index
    %2 = vector.load %arg1[%c0_1, %c0_2] : memref<100x128xbf16, #tpu.memory_space<vmem>>, vector<100x128xbf16>
    %cst = arith.constant dense<0.000000e+00> : vector<8x128xf32>
    %3 = tpu.matmul %1, %2, %cst {dimension_numbers = #tpu.dot_dimension_numbers<[1], [0], [0], [1], [0, 0, 1, 1], [], []>} : vector<8x100xbf16>, vector<100x128xbf16>, vector<8x128xf32> -> vector<8x128xf32>
    %c0_3 = arith.constant 0 : index
    %c0_4 = arith.constant 0 : index
    %4 = vector.load %arg2[%c0_3, %c0_4] : memref<1x128xf32, #tpu.memory_space<vmem>>, vector<1x128xf32>
    %5 = vector.broadcast %4 : vector<1x128xf32> to vector<8x128xf32>
    %6 = arith.addf %3, %5 : vector<8x128xf32>
    %cst_5 = arith.constant 0.000000e+00 : f32
    %7 = vector.broadcast %cst_5 : f32 to vector<8x128xf32>
    %8 = arith.cmpf oge, %6, %7 : vector<8x128xf32>
    %cst_6 = arith.constant 2.000000e-01 : f32
    %9 = vector.broadcast %cst_6 : f32 to vector<8x128xf32>
    %10 = arith.mulf %9, %6 : vector<8x128xf32>
    %11 = arith.select %8, %6, %10 : vector<8x128xi1>, vector<8x128xf32>
    %12 = arith.truncf %11 : vector<8x128xf32> to vector<8x128xbf16>
    %c0_7 = arith.constant 0 : index
    %c0_8 = arith.constant 0 : index
    %13 = vector.load %arg3[%c0_7, %c0_8] : memref<128x256xbf16, #tpu.memory_space<vmem>>, vector<128x256xbf16>
    %cst_9 = arith.constant dense<0.000000e+00> : vector<8x256xf32>
    %14 = tpu.matmul %12, %13, %cst_9 {dimension_numbers = #tpu.dot_dimension_numbers<[1], [0], [0], [1], [0, 0, 1, 1], [], []>} : vector<8x128xbf16>, vector<128x256xbf16>, vector<8x256xf32> -> vector<8x256xf32>
    %c0_10 = arith.constant 0 : index
    %c0_11 = arith.constant 0 : index
    %15 = vector.load %arg4[%c0_10, %c0_11] : memref<1x256xf32, #tpu.memory_space<vmem>>, vector<1x256xf32>
    %c0_12 = arith.constant 0 : index
    %c0_13 = arith.constant 0 : index
    %16 = vector.load %arg5[%c0_12, %c0_13] : memref<1x256xf32, #tpu.memory_space<vmem>>, vector<1x256xf32>
    %cst_14 = arith.constant dense<0.000000e+00> : vector<256xf32>
    %17 = vector.multi_reduction <add>, %14, %cst_14 [0] : vector<8x256xf32> to vector<256xf32>
    %18 = vector.shape_cast %17 : vector<256xf32> to vector<1x256xf32>
    %cst_15 = arith.constant 8.000000e+00 : f32
    %19 = vector.broadcast %cst_15 : f32 to vector<1x256xf32>
    %20 = arith.divf %18, %19 : vector<1x256xf32>
    %21 = vector.broadcast %20 : vector<1x256xf32> to vector<8x256xf32>
    %22 = arith.subf %14, %21 : vector<8x256xf32>
    %23 = arith.mulf %22, %22 : vector<8x256xf32>
    %cst_16 = arith.constant dense<0.000000e+00> : vector<256xf32>
    %24 = vector.multi_reduction <add>, %23, %cst_16 [0] : vector<8x256xf32> to vector<256xf32>
    %25 = vector.shape_cast %24 : vector<256xf32> to vector<1x256xf32>
    %cst_17 = arith.constant 8.000000e+00 : f32
    %26 = vector.broadcast %cst_17 : f32 to vector<1x256xf32>
    %27 = arith.divf %25, %26 : vector<1x256xf32>
    %28 = vector.broadcast %20 : vector<1x256xf32> to vector<8x256xf32>
    %29 = arith.subf %14, %28 : vector<8x256xf32>
    %cst_18 = arith.constant 8.000000e-01 : f32
    %30 = vector.broadcast %cst_18 : f32 to vector<1x256xf32>
    %31 = arith.addf %27, %30 : vector<1x256xf32>
    %32 = math.rsqrt %31 : vector<1x256xf32>
    %33 = vector.broadcast %32 : vector<1x256xf32> to vector<8x256xf32>
    %34 = arith.mulf %29, %33 : vector<8x256xf32>
    %35 = vector.broadcast %15 : vector<1x256xf32> to vector<8x256xf32>
    %36 = arith.mulf %34, %35 : vector<8x256xf32>
    %37 = vector.broadcast %16 : vector<1x256xf32> to vector<8x256xf32>
    %38 = arith.addf %36, %37 : vector<8x256xf32>
    %cst_19 = arith.constant 0.000000e+00 : f32
    %39 = vector.broadcast %cst_19 : f32 to vector<8x256xf32>
    %40 = arith.cmpf oge, %38, %39 : vector<8x256xf32>
    %cst_20 = arith.constant 2.000000e-01 : f32
    %41 = vector.broadcast %cst_20 : f32 to vector<8x256xf32>
    %42 = arith.mulf %41, %38 : vector<8x256xf32>
    %43 = arith.select %40, %38, %42 : vector<8x256xi1>, vector<8x256xf32>
    %44 = arith.truncf %43 : vector<8x256xf32> to vector<8x256xbf16>
    %c0_21 = arith.constant 0 : index
    %c0_22 = arith.constant 0 : index
    %45 = vector.load %arg6[%c0_21, %c0_22] : memref<256x512xbf16, #tpu.memory_space<vmem>>, vector<256x512xbf16>
    %cst_23 = arith.constant dense<0.000000e+00> : vector<8x512xf32>
    %46 = tpu.matmul %44, %45, %cst_23 {dimension_numbers = #tpu.dot_dimension_numbers<[1], [0], [0], [1], [0, 0, 1, 1], [], []>} : vector<8x256xbf16>, vector<256x512xbf16>, vector<8x512xf32> -> vector<8x512xf32>
    %c0_24 = arith.constant 0 : index
    %c0_25 = arith.constant 0 : index
    %47 = vector.load %arg7[%c0_24, %c0_25] : memref<1x512xf32, #tpu.memory_space<vmem>>, vector<1x512xf32>
    %c0_26 = arith.constant 0 : index
    %c0_27 = arith.constant 0 : index
    %48 = vector.load %arg8[%c0_26, %c0_27] : memref<1x512xf32, #tpu.memory_space<vmem>>, vector<1x512xf32>
    %cst_28 = arith.constant dense<0.000000e+00> : vector<512xf32>
    %49 = vector.multi_reduction <add>, %46, %cst_28 [0] : vector<8x512xf32> to vector<512xf32>
    %50 = vector.shape_cast %49 : vector<512xf32> to vector<1x512xf32>
    %cst_29 = arith.constant 8.000000e+00 : f32
    %51 = vector.broadcast %cst_29 : f32 to vector<1x512xf32>
    %52 = arith.divf %50, %51 : vector<1x512xf32>
    %53 = vector.broadcast %52 : vector<1x512xf32> to vector<8x512xf32>
    %54 = arith.subf %46, %53 : vector<8x512xf32>
    %55 = arith.mulf %54, %54 : vector<8x512xf32>
    %cst_30 = arith.constant dense<0.000000e+00> : vector<512xf32>
    %56 = vector.multi_reduction <add>, %55, %cst_30 [0] : vector<8x512xf32> to vector<512xf32>
    %57 = vector.shape_cast %56 : vector<512xf32> to vector<1x512xf32>
    %cst_31 = arith.constant 8.000000e+00 : f32
    %58 = vector.broadcast %cst_31 : f32 to vector<1x512xf32>
    %59 = arith.divf %57, %58 : vector<1x512xf32>
    %60 = vector.broadcast %52 : vector<1x512xf32> to vector<8x512xf32>
    %61 = arith.subf %46, %60 : vector<8x512xf32>
    %cst_32 = arith.constant 8.000000e-01 : f32
    %62 = vector.broadcast %cst_32 : f32 to vector<1x512xf32>
    %63 = arith.addf %59, %62 : vector<1x512xf32>
    %64 = math.rsqrt %63 : vector<1x512xf32>
    %65 = vector.broadcast %64 : vector<1x512xf32> to vector<8x512xf32>
    %66 = arith.mulf %61, %65 : vector<8x512xf32>
    %67 = vector.broadcast %47 : vector<1x512xf32> to vector<8x512xf32>
    %68 = arith.mulf %66, %67 : vector<8x512xf32>
    %69 = vector.broadcast %48 : vector<1x512xf32> to vector<8x512xf32>
    %70 = arith.addf %68, %69 : vector<8x512xf32>
    %cst_33 = arith.constant 0.000000e+00 : f32
    %71 = vector.broadcast %cst_33 : f32 to vector<8x512xf32>
    %72 = arith.cmpf oge, %70, %71 : vector<8x512xf32>
    %cst_34 = arith.constant 2.000000e-01 : f32
    %73 = vector.broadcast %cst_34 : f32 to vector<8x512xf32>
    %74 = arith.mulf %73, %70 : vector<8x512xf32>
    %75 = arith.select %72, %70, %74 : vector<8x512xi1>, vector<8x512xf32>
    %76 = arith.truncf %75 : vector<8x512xf32> to vector<8x512xbf16>
    %c0_35 = arith.constant 0 : index
    %c0_36 = arith.constant 0 : index
    %77 = vector.load %arg9[%c0_35, %c0_36] : memref<512x1024xbf16, #tpu.memory_space<vmem>>, vector<512x1024xbf16>
    %cst_37 = arith.constant dense<0.000000e+00> : vector<8x1024xf32>
    %78 = tpu.matmul %76, %77, %cst_37 {dimension_numbers = #tpu.dot_dimension_numbers<[1], [0], [0], [1], [0, 0, 1, 1], [], []>} : vector<8x512xbf16>, vector<512x1024xbf16>, vector<8x1024xf32> -> vector<8x1024xf32>
    %c0_38 = arith.constant 0 : index
    %c0_39 = arith.constant 0 : index
    %79 = vector.load %arg10[%c0_38, %c0_39] : memref<1x1024xf32, #tpu.memory_space<vmem>>, vector<1x1024xf32>
    %c0_40 = arith.constant 0 : index
    %c0_41 = arith.constant 0 : index
    %80 = vector.load %arg11[%c0_40, %c0_41] : memref<1x1024xf32, #tpu.memory_space<vmem>>, vector<1x1024xf32>
    %cst_42 = arith.constant dense<0.000000e+00> : vector<1024xf32>
    %81 = vector.multi_reduction <add>, %78, %cst_42 [0] : vector<8x1024xf32> to vector<1024xf32>
    %82 = vector.shape_cast %81 : vector<1024xf32> to vector<1x1024xf32>
    %cst_43 = arith.constant 8.000000e+00 : f32
    %83 = vector.broadcast %cst_43 : f32 to vector<1x1024xf32>
    %84 = arith.divf %82, %83 : vector<1x1024xf32>
    %85 = vector.broadcast %84 : vector<1x1024xf32> to vector<8x1024xf32>
    %86 = arith.subf %78, %85 : vector<8x1024xf32>
    %87 = arith.mulf %86, %86 : vector<8x1024xf32>
    %cst_44 = arith.constant dense<0.000000e+00> : vector<1024xf32>
    %88 = vector.multi_reduction <add>, %87, %cst_44 [0] : vector<8x1024xf32> to vector<1024xf32>
    %89 = vector.shape_cast %88 : vector<1024xf32> to vector<1x1024xf32>
    %cst_45 = arith.constant 8.000000e+00 : f32
    %90 = vector.broadcast %cst_45 : f32 to vector<1x1024xf32>
    %91 = arith.divf %89, %90 : vector<1x1024xf32>
    %92 = vector.broadcast %84 : vector<1x1024xf32> to vector<8x1024xf32>
    %93 = arith.subf %78, %92 : vector<8x1024xf32>
    %cst_46 = arith.constant 8.000000e-01 : f32
    %94 = vector.broadcast %cst_46 : f32 to vector<1x1024xf32>
    %95 = arith.addf %91, %94 : vector<1x1024xf32>
    %96 = math.rsqrt %95 : vector<1x1024xf32>
    %97 = vector.broadcast %96 : vector<1x1024xf32> to vector<8x1024xf32>
    %98 = arith.mulf %93, %97 : vector<8x1024xf32>
    %99 = vector.broadcast %79 : vector<1x1024xf32> to vector<8x1024xf32>
    %100 = arith.mulf %98, %99 : vector<8x1024xf32>
    %101 = vector.broadcast %80 : vector<1x1024xf32> to vector<8x1024xf32>
    %102 = arith.addf %100, %101 : vector<8x1024xf32>
    %cst_47 = arith.constant 0.000000e+00 : f32
    %103 = vector.broadcast %cst_47 : f32 to vector<8x1024xf32>
    %104 = arith.cmpf oge, %102, %103 : vector<8x1024xf32>
    %cst_48 = arith.constant 2.000000e-01 : f32
    %105 = vector.broadcast %cst_48 : f32 to vector<8x1024xf32>
    %106 = arith.mulf %105, %102 : vector<8x1024xf32>
    %107 = arith.select %104, %102, %106 : vector<8x1024xi1>, vector<8x1024xf32>
    %108 = arith.truncf %107 : vector<8x1024xf32> to vector<8x1024xbf16>
    %c0_49 = arith.constant 0 : index
    %c0_50 = arith.constant 0 : index
    %109 = vector.load %arg12[%c0_49, %c0_50] : memref<8x1024xbf16, #tpu.memory_space<vmem>>, vector<8x1024xbf16>
    tpu.vector_store %arg12[%c0_49, %c0_50], %108 {strides = array<i32>} : memref<8x1024xbf16, #tpu.memory_space<vmem>>, vector<8x1024xbf16>,
    return
  }
}

</mosaic_0001>

<bundles_post_ra>
// kernel: tpu_custom_call.1
= control target key start
LH: loop header
LB: loop body
LE: loop exit
PB: predicated region body
PF: predicated region fallthrough
CT: control target
= control target key end

     0   :  { %17 = vsyncpa [#allocation3], 0  ;;  %s5834_s0 = inlined_call_operand.hbm [shape: f32[8,100], index: 0, kind: input, shape index: {}]   ;;  %s5835_s1 = inlined_call_operand.hbm [shape: bf16[100,128], index: 1, kind: input, shape index: {}]   ;;  %s5836_s2 = inlined_call_operand.vmem [shape: f32[1,128], index: 2, kind: input, shape index: {}]   ;;  %s5837_s3 = inlined_call_operand.hbm [shape: bf16[128,256], index: 3, kind: input, shape index: {}]   ;;  %s5838_s4 = inlined_call_operand.hbm [shape: f32[1,256], index: 4, kind: input, shape index: {}]   ;;  %s5839_s5 = inlined_call_operand.hbm [shape: f32[1,256], index: 5, kind: input, shape index: {}]   ;;  %s5840_s6 = inlined_call_operand.hbm [shape: bf16[256,512], index: 6, kind: input, shape index: {}]   ;;  %s5841_s7 = inlined_call_operand.hbm [shape: f32[1,512], index: 7, kind: input, shape index: {}]   ;;  %s5842_s8 = inlined_call_operand.hbm [shape: f32[1,512], index: 8, kind: input, shape index: {}]   ;;  %s5843_s9 = inlined_call_operand.hbm [shape: bf16[512,1024], index: 9, kind: input, shape index: {}]   ;;  %s5844_s10 = inlined_call_operand.vmem [shape: f32[1,1024], index: 10, kind: input, shape index: {}]   ;;  %s5845_s11 = inlined_call_operand.hbm [shape: f32[1,1024], index: 11, kind: input, shape index: {}]   ;;  %s5846_s12 = inlined_call_operand.hbm [shape: bf16[8,1024], index: 12, kind: output, shape index: {}]  }
   0x1   :  { %18 = vsyncpa [#allocation6], 0 }
   0x2   :  { %19 = vsyncpa [#allocation9], 0 }
   0x3   :  { %20 = vsyncpa [#allocation12], 0 }
   0x4   :  { %21 = vsyncpa [#allocation15], 0 }
   0x5   :  { %22 = vsyncpa [#allocation18], 0  ;;  %s39_s23 = sshll.u32 %s5835_s1, 4  ;;  %s40_s23 = int_to_ptr.hbm [resolvable:$true] %s39_s23 }
   0x6   :  { %23 = vsyncpa [#allocation4], 0  ;;  %s5445_s24 = smov [#allocation5]   ;;  %s68_s28 = sshll.u32 %s5838_s4, 4  ;;  %s69_s28 = int_to_ptr.hbm [resolvable:$true] %s68_s28 }
   0x7   :  { %s41_s25 = sshll.u32 %s5445_s24, 4  ;;  %s5446_s29 = smov 64   ;;  %s42_s25 = int_to_ptr.vmem [resolvable:$true] %s41_s25 }
   0x8   :  { %s5447_s30 = smov 4   ;;  %s5448_s13 = smov [#allocation8]  }
   0x9   :  { %47 = dma.hbm_to_vmem [thread:$0]  %s40_s23, 832, %s42_s25, [#allocation6], %s5446_s29, %s5446_s29, %s5447_s30  }
   0xa   :  { %s70_s14 = sshll.u32 %s5448_s13, 4  ;;  %s89_s17 = sshll.u32 %s5840_s6, 4  ;;  %s71_s14 = int_to_ptr.vmem [resolvable:$true] %s70_s14  ;;  %s90_s17 = int_to_ptr.hbm [resolvable:$true] %s89_s17 }
   0xb   :  { %73 = dma.hbm_to_vmem [thread:$0]  %s69_s28, 32, %s71_s14, [#allocation9]  }
   0xc   :  { %s5449_s1 = smov [#allocation11]   ;;  %s114_s4 = sshll.u32 %s5842_s8, 4  ;;  %s115_s4 = int_to_ptr.hbm [resolvable:$true] %s114_s4 }
   0xd   :  { %s91_s18 = sshll.u32 %s5449_s1, 4  ;;  %s5450_s21 = smov 256   ;;  %s92_s18 = int_to_ptr.vmem [resolvable:$true] %s91_s18 }
   0xe   :  { %s5451_s22 = smov 16   ;;  %s5452_s23 = smov [#allocation14]  }
   0xf   :  { %97 = dma.hbm_to_vmem [thread:$0]  %s90_s17, 8192, %s92_s18, [#allocation12], %s5450_s21, %s5450_s21, %s5451_s22  }
  0x10   :  { %s116_s24 = sshll.u32 %s5452_s23, 4  ;;  %s29_s6 = sshll.u32 %s5834_s0, 4  ;;  %s117_s24 = int_to_ptr.vmem [resolvable:$true] %s116_s24  ;;  %s30_s6 = int_to_ptr.hbm [resolvable:$true] %s29_s6 }
  0x11   :  { %119 = dma.hbm_to_vmem [thread:$0]  %s115_s4, 64, %s117_s24, [#allocation15]  }
  0x12   :  { %s54_s29 = sshll.u32 %s5837_s3, 4  ;;  %s5453_s30 = smov [#allocation2]   ;;  %s55_s29 = int_to_ptr.hbm [resolvable:$true] %s54_s29 }
  0x13   :  { %s31_s13 = sshll.u32 %s5453_s30, 4  ;;  %s5454_s8 = smov [#allocation7]   ;;  %s32_s13 = int_to_ptr.vmem [resolvable:$true] %s31_s13 }
  0x14   :  { %34 = dma.hbm_to_vmem [thread:$0]  %s30_s6, 128, %s32_s13, [#allocation3]  }
  0x15   :  { %s56_s14 = sshll.u32 %s5454_s8, 4  ;;  %s5455_s15 = smov 128   ;;  %s57_s14 = int_to_ptr.vmem [resolvable:$true] %s56_s14 }
  0x16   :  { %s5456_s16 = smov 8   ;;  %s79_s1 = sshll.u32 %s5839_s5, 4  ;;  %s80_s1 = int_to_ptr.hbm [resolvable:$true] %s79_s1 }
  0x17   :  { %62 = dma.hbm_to_vmem [thread:$0]  %s55_s29, 2048, %s57_s14, [#allocation6], %s5455_s15, %s5455_s15, %s5456_s16  }
  0x18   :  { %s5457_s18 = smov [#allocation10]   ;;  %s103_s4 = sshll.u32 %s5841_s7, 4  ;;  %s104_s4 = int_to_ptr.hbm [resolvable:$true] %s103_s4 }
  0x19   :  { %s81_s19 = sshll.u32 %s5457_s18, 4  ;;  %s5458_s21 = smov [#allocation13]   ;;  %s82_s19 = int_to_ptr.vmem [resolvable:$true] %s81_s19 }
  0x1a   :  { %84 = dma.hbm_to_vmem [thread:$0]  %s80_s1, 32, %s82_s19, [#allocation9]  }
  0x1b   :  { %s105_s22 = sshll.u32 %s5458_s21, 4  ;;  %s124_s25 = sshll.u32 %s5843_s9, 4  ;;  %s106_s22 = int_to_ptr.vmem [resolvable:$true] %s105_s22  ;;  %s125_s25 = int_to_ptr.hbm [resolvable:$true] %s124_s25 }
  0x1c   :  { %108 = dma.hbm_to_vmem [thread:$0]  %s104_s4, 64, %s106_s22, [#allocation12]  }
  0x1d   :  { %s5459_s5 = smov [#allocation16]   ;;  %s140_s28 = sshll.u32 %s5845_s11, 4  ;;  %s141_s28 = int_to_ptr.hbm [resolvable:$true] %s140_s28 }
  0x1e   :  { %s126_s26 = sshll.u32 %s5459_s5, 4  ;;  %s5460_s29 = smov 512   ;;  %s127_s26 = int_to_ptr.vmem [resolvable:$true] %s126_s26 }
  0x1f   :  { %s5461_s7 = smov 32   ;;  %s5462_s30 = smov [#allocation17]  }
  0x20   :  { %132 = dma.hbm_to_vmem [thread:$0]  %s125_s25, 32768, %s127_s26, [#allocation15], %s5460_s29, %s5460_s29, %s5461_s7  }
  0x21   :  { %s142_s13 = sshll.u32 %s5462_s30, 4  ;;  %s143_s13 = int_to_ptr.vmem [resolvable:$true] %s142_s13 }
  0x22   :  { %145 = dma.hbm_to_vmem [thread:$0]  %s141_s28, 128, %s143_s13, [#allocation18]  }
  0x23   :  { %5431 = dma.done.wait [#allocation3], 128  }
  0x24   :  { %5432 = vsyncadd [#allocation3], 4294967168 }
  0x25   :  { %5433 = dma.done.wait [#allocation6], 2880  }
  0x26   :  { %5434 = vsyncadd [#allocation6], 4294964416 }
  0x27   :  { %5435 = dma.done.wait [#allocation9], 64  }
  0x28   :  { %5436 = vsyncadd [#allocation9], 4294967232 }
  0x29   :  { %5437 = dma.done.wait [#allocation12], 8256  }
  0x2a   :  { %5438 = vsyncadd [#allocation12], 4294959040 }
  0x2b   :  { %5439 = dma.done.wait [#allocation15], 32832  }
  0x2c   :  { %5440 = vsyncadd [#allocation15], 4294934464 }
  0x2d   :  { %5441 = dma.done.wait [#allocation18], 128  }
  0x2e   :  { %5442 = vsyncadd [#allocation18], 4294967168  ;;  %v201_v0 = vld [vmem:[#allocation5 + $0x30] sm:$0x3]  ;;  %vm249_vm0 = vcmask 1041408   ;;  %v4779_v14 = vld [vmem:[#allocation5 + $0x28] sm:$0xff] }
  0x2f   :  { %v231_v1 = vunpack.c.l.b16 %v201_v0  ;;  %v3488_v2 = vld [vmem:[#allocation7 + $0x70] sm:$0xf]  ;;  %v4795_v4 = vld [vmem:[#allocation7 + $0x74] sm:$0xf0]  ;;  %v4794_v5 = vld [vmem:[#allocation7 + $0x74] sm:$0xf] }
  0x30   :  { %v3490_v6 = vld [vmem:[#allocation7 + $0x78] sm:$0xf0]  ;;  %v3489_v7 = vor.u32 %v4795_v4, %v3488_v2  ;;  %v3480_v9 = vld [vmem:[#allocation7 + $0x60] sm:$0xf]  ;;  %v4793_v10 = vld [vmem:[#allocation7 + $0x64] sm:$0xf0] }
  0x31   :  { %v238_v3 = vpack.c.b16 %v231_v1, %v231_v1  ;;  %v3493_v8 = vor.u32 %v4794_v5, %v3490_v6  ;;  %v4792_v11 = vld [vmem:[#allocation7 + $0x64] sm:$0xf]  ;;  %v3482_v13 = vld [vmem:[#allocation7 + $0x68] sm:$0xf0]  ;;  %v3481_v15 = vor.u32 %v4793_v10, %v3480_v9  ;;  %v3472_v17 = vld [vmem:[#allocation7 + $0x50] sm:$0xf] }
  0x32   :  { %366 = vmatpush.bf16.msra.mxu1 %v3489_v7  ;;  %v3485_v16 = vor.u32 %v4792_v11, %v3482_v13  ;;  %v4791_v18 = vld [vmem:[#allocation7 + $0x54] sm:$0xf0]  ;;  %v4790_v19 = vld [vmem:[#allocation7 + $0x54] sm:$0xf]  ;;  %v3474_v20 = vld [vmem:[#allocation7 + $0x58] sm:$0xf0] }
  0x33   :  { %v251_v12 = vsel %vm249_vm0, %v238_v3, 0  ;;  %379 = vmatpush.bf16.msra.mxu2 %v3493_v8  ;;  %v4778_v21 = vld [vmem:[#allocation5 + $0x20] sm:$0xff]  ;;  %v3473_v22 = vor.u32 %v4791_v18, %v3472_v17  ;;  %v3477_v23 = vor.u32 %v4790_v19, %v3474_v20  ;;  %v3464_v24 = vld [vmem:[#allocation7 + $0x40] sm:$0xf]  ;;  %v4789_v25 = vld [vmem:[#allocation7 + $0x44] sm:$0xf0] }
  0x34   :  { %254 = vmatpush.bf16.msra.mxu0 %v251_v12  ;;  %v4788_v26 = vld [vmem:[#allocation7 + $0x44] sm:$0xf]  ;;  %v3466_v27 = vld [vmem:[#allocation7 + $0x48] sm:$0xf0]  ;;  %v3465_v29 = vor.u32 %v4789_v25, %v3464_v24  ;;  %v3456_v31 = vld [vmem:[#allocation7 + $0x30] sm:$0xf] }
  0x35   :  { %v4777_v28 = vld [vmem:[#allocation5 + $0x18] sm:$0xff]  ;;  %v3469_v30 = vor.u32 %v4788_v26, %v3466_v27  ;;  %v4787_v32 = vld [vmem:[#allocation7 + $0x34] sm:$0xf0]  ;;  %v4786_v33 = vld [vmem:[#allocation7 + $0x34] sm:$0xf]  ;;  %vm245_vm1 = vcmask 818176  }
  0x36   :  { %367 = vmatpush.bf16.msra.mxu1 %v3481_v15  ;;  %v3458_v34 = vld [vmem:[#allocation7 + $0x38] sm:$0xf0]  ;;  %v3457_v36 = vor.u32 %v4787_v32, %v3456_v31  ;;  %v3448_v38 = vld [vmem:[#allocation7 + $0x20] sm:$0xf]  ;;  %v4785_v39 = vld [vmem:[#allocation7 + $0x24] sm:$0xf0] }
  0x37   :  { %380 = vmatpush.bf16.msra.mxu2 %v3485_v16  ;;  %v4776_v35 = vld [vmem:[#allocation5 + $0x10] sm:$0xff]  ;;  %v3461_v37 = vor.u32 %v4786_v33, %v3458_v34  ;;  %v4784_v40 = vld [vmem:[#allocation7 + $0x24] sm:$0xf]  ;;  %v3450_v41 = vld [vmem:[#allocation7 + $0x28] sm:$0xf0]  ;;  %v3449_v43 = vor.u32 %v4785_v39, %v3448_v38  ;;  %v5463_v3 = vmov 8.0  }
  0x38   :  { %255 = vmatpush.bf16.msra.mxu0 %v4779_v14  ;;  %v4775_v42 = vld [vmem:[#allocation5 + $0x8] sm:$0xff]  ;;  %v3453_v44 = vor.u32 %v4784_v40, %v3450_v41  ;;  %v4774_v45 = vld [vmem:[#allocation5] sm:$0xff]  ;;  %v187_v46 = vld [vmem:[#allocation2] sm:$0xff]  ;;  %5137 = vrcp.f32 %v5463_v3  ;;  %s3390_s17 = sshll.u32 %s5846_s12, 4  ;;  %s3391_s17 = int_to_ptr.hbm [resolvable:$true] %s3390_s17 }
  0x39   :  { %v188_v47 = vpack.c.bf16 %v187_v46, %v187_v46  ;;  %v3440_v48 = vld [vmem:[#allocation7 + $0x10] sm:$0xf]  ;;  %v4783_v49 = vld [vmem:[#allocation7 + $0x14] sm:$0xf0]  ;;  %v4782_v50 = vld [vmem:[#allocation7 + $0x14] sm:$0xf] }
  0x3a   :  { %368 = vmatpush.bf16.msra.mxu1 %v3473_v22  ;;  %v3441_v51 = vor.u32 %v4783_v49, %v3440_v48  ;;  %v3442_v52 = vld [vmem:[#allocation7 + $0x18] sm:$0xf0]  ;;  %v3432_v54 = vld [vmem:[#allocation7] sm:$0xf]  ;;  %v4781_v55 = vld [vmem:[#allocation7 + $0x4] sm:$0xf0] }
  0x3b   :  { %381 = vmatpush.bf16.msra.mxu2 %v3477_v23  ;;  %v3445_v53 = vor.u32 %v4782_v50, %v3442_v52  ;;  %v4780_v56 = vld [vmem:[#allocation7 + $0x4] sm:$0xf]  ;;  %v3433_v57 = vor.u32 %v4781_v55, %v3432_v54  ;;  %v3434_v58 = vld [vmem:[#allocation7 + $0x8] sm:$0xf0]  ;;  %v4826_v5 = vld [vmem:[#allocation11 + $0xec] sm:$0xf0] }
  0x3c   :  { %256 = vmatpush.bf16.msra.mxu0 %v4778_v21  ;;  %v3437_v59 = vor.u32 %v4780_v56, %v3434_v58  ;;  %v5136_v60 = vld [vmem:[%s5836_s2] ss:$0 sm:$0xff]  ;;  %v4824_v6 = vld [vmem:[#allocation11 + $0xe4] sm:$0xf]  ;;  %v3610_v8 = vld [vmem:[#allocation11 + $0xf0] sm:$0xf0] }
  0x3d   :  { %v3608_v4 = vld [vmem:[#allocation11 + $0xe0] sm:$0xf]  ;;  %v3613_v9 = vor.u32 %v4824_v6, %v3610_v8  ;;  %v4822_v11 = vld [vmem:[#allocation11 + $0xcc] sm:$0xf0]  ;;  %v4820_v12 = vld [vmem:[#allocation11 + $0xc4] sm:$0xf] }
  0x3e   :  { %369 = vmatpush.bf16.msra.mxu1 %v3465_v29  ;;  %v3609_v7 = vor.u32 %v4826_v5, %v3608_v4  ;;  %v3592_v10 = vld [vmem:[#allocation11 + $0xc0] sm:$0xf]  ;;  %v3594_v14 = vld [vmem:[#allocation11 + $0xd0] sm:$0xf0]  ;;  %v5563_v15 = vpop.eup %5137  ;;  %v4858_v18 = vld [vmem:[#allocation11 + $0x1ec] sm:$0xf0] }
  0x3f   :  { %382 = vmatpush.bf16.msra.mxu2 %v3469_v30  ;;  %v3593_v13 = vor.u32 %v4822_v11, %v3592_v10  ;;  %v3597_v16 = vor.u32 %v4820_v12, %v3594_v14  ;;  %v3736_v17 = vld [vmem:[#allocation11 + $0x1e0] sm:$0xf]  ;;  %v4856_v19 = vld [vmem:[#allocation11 + $0x1e4] sm:$0xf]  ;;  %v3738_v21 = vld [vmem:[#allocation11 + $0x1f0] sm:$0xf0]  ;;  %vm411_vm3 = vweird.f32 %v5563_v15 }
  0x40   :  { %257 = vmatpush.bf16.msra.mxu0 %v4777_v28  ;;  %863 = vmatpush.bf16.msra.mxu3 %v3609_v7  ;;  %v3737_v20 = vor.u32 %v4858_v18, %v3736_v17  ;;  %v3741_v22 = vor.u32 %v4856_v19, %v3738_v21  ;;  %v3576_v23 = vld [vmem:[#allocation11 + $0xa0] sm:$0xf]  ;;  %v4818_v24 = vld [vmem:[#allocation11 + $0xac] sm:$0xf0]  ;;  %v4816_v25 = vld [vmem:[#allocation11 + $0xa4] sm:$0xf] }
  0x41   :  { %v407_v26 = vmul.f32 8.0, %v5563_v15  ;;  %v3577_v27 = vor.u32 %v4818_v24, %v3576_v23  ;;  %v3578_v28 = vld [vmem:[#allocation11 + $0xb0] sm:$0xf0]  ;;  %v3720_v30 = vld [vmem:[#allocation11 + $0x1c0] sm:$0xf] }
  0x42   :  { %370 = vmatpush.bf16.msra.mxu1 %v3457_v36  ;;  %v3581_v29 = vor.u32 %v4816_v25, %v3578_v28  ;;  %v4854_v31 = vld [vmem:[#allocation11 + $0x1cc] sm:$0xf0]  ;;  %v4852_v32 = vld [vmem:[#allocation11 + $0x1c4] sm:$0xf]  ;;  %v3722_v34 = vld [vmem:[#allocation11 + $0x1d0] sm:$0xf0] }
  0x43   :  { %383 = vmatpush.bf16.msra.mxu2 %v3461_v37  ;;  %v3721_v33 = vor.u32 %v4854_v31, %v3720_v30  ;;  %v3560_v36 = vld [vmem:[#allocation11 + $0x80] sm:$0xf]  ;;  %v4814_v37 = vld [vmem:[#allocation11 + $0x8c] sm:$0xf0]  ;;  %v4812_v38 = vld [vmem:[#allocation11 + $0x84] sm:$0xf] }
  0x44   :  { %258 = vmatpush.bf16.msra.mxu0 %v4776_v35  ;;  %864 = vmatpush.bf16.msra.mxu3 %v3593_v13  ;;  %v3725_v35 = vor.u32 %v4852_v32, %v3722_v34  ;;  %v408_v39 = vsub.f32 1.0, %v407_v26  ;;  %v3561_v40 = vor.u32 %v4814_v37, %v3560_v36  ;;  %v3562_v41 = vld [vmem:[#allocation11 + $0x90] sm:$0xf0]  ;;  %v4810_v52 = vld [vmem:[#allocation11 + $0x6c] sm:$0xf0] }
  0x45   :  { %v3706_v48 = vld [vmem:[#allocation11 + $0x1b0] sm:$0xf0]  ;;  %v4808_v55 = vld [vmem:[#allocation11 + $0x64] sm:$0xf]  ;;  %v4806_v3 = vld [vmem:[#allocation11 + $0x4c] sm:$0xf0] }
  0x46   :  { %371 = vmatpush.bf16.msra.mxu1 %v3449_v43  ;;  %v3704_v43 = vld [vmem:[#allocation11 + $0x1a0] sm:$0xf]  ;;  %v3546_v56 = vld [vmem:[#allocation11 + $0x70] sm:$0xf0]  ;;  %v4804_v7 = vld [vmem:[#allocation11 + $0x44] sm:$0xf] }
  0x47   :  { %384 = vmatpush.bf16.msra.mxu2 %v3453_v44  ;;  %v4850_v44 = vld [vmem:[#allocation11 + $0x1ac] sm:$0xf0]  ;;  %v3549_v58 = vor.u32 %v4808_v55, %v3546_v56  ;;  %v3530_v8 = vld [vmem:[#allocation11 + $0x50] sm:$0xf0]  ;;  %v3672_v12 = vld [vmem:[#allocation11 + $0x160] sm:$0xf] }
  0x48   :  { %259 = vmatpush.bf16.msra.mxu0 %v4775_v42  ;;  %865 = vmatpush.bf16.msra.mxu3 %v3577_v27  ;;  %v3565_v42 = vor.u32 %v4812_v38, %v3562_v41  ;;  %v3533_v11 = vor.u32 %v4804_v7, %v3530_v8  ;;  %v4842_v13 = vld [vmem:[#allocation11 + $0x16c] sm:$0xf0]  ;;  %v4840_v17 = vld [vmem:[#allocation11 + $0x164] sm:$0xf]  ;;  %v3674_v18 = vld [vmem:[#allocation11 + $0x170] sm:$0xf0] }
  0x49   :  { %v3677_v21 = vor.u32 %v4840_v17, %v3674_v18  ;;  %v4802_v23 = vld [vmem:[#allocation11 + $0x2c] sm:$0xf0]  ;;  %v4800_v26 = vld [vmem:[#allocation11 + $0x24] sm:$0xf]  ;;  %v3514_v27 = vld [vmem:[#allocation11 + $0x30] sm:$0xf0] }
  0x4a   :  { %372 = vmatpush.bf16.msra.mxu1 %v3441_v51  ;;  %v3544_v51 = vld [vmem:[#allocation11 + $0x60] sm:$0xf]  ;;  %v3517_v30 = vor.u32 %v4800_v26, %v3514_v27  ;;  %v4838_v32 = vld [vmem:[#allocation11 + $0x14c] sm:$0xf0]  ;;  %v4836_v34 = vld [vmem:[#allocation11 + $0x144] sm:$0xf] }
  0x4b   :  { %385 = vmatpush.bf16.msra.mxu2 %v3445_v53  ;;  %v409_v53 = vmul.f32 %v5563_v15, %v408_v39  ;;  %v3545_v54 = vor.u32 %v4810_v52, %v3544_v51  ;;  %v3656_v31 = vld [vmem:[#allocation11 + $0x140] sm:$0xf]  ;;  %v4798_v39 = vld [vmem:[#allocation11 + $0xc] sm:$0xf0]  ;;  %v4825_v51 = vld [vmem:[#allocation11 + $0xec] sm:$0xf] }
  0x4c   :  { %260 = vmatpush.bf16.msra.mxu0 %v4774_v45  ;;  %v4848_v45 = vld [vmem:[#allocation11 + $0x1a4] sm:$0xf]  ;;  %866 = vmatpush.bf16.msra.mxu3 %v3561_v40  ;;  %v3496_v38 = vld [vmem:[#allocation11] sm:$0xf]  ;;  %v3618_v52 = vld [vmem:[#allocation11 + $0xf8] sm:$0xf0] }
  0x4d   :  { %v3709_v50 = vor.u32 %v4848_v45, %v3706_v48  ;;  %v410_v4 = vadd.f32 %v5563_v15, %v409_v53  ;;  %v4796_v40 = vld [vmem:[#allocation11 + $0x4] sm:$0xf]  ;;  %v4827_v45 = vld [vmem:[#allocation11 + $0xf4] sm:$0xf0]  ;;  %v3621_v53 = vor.u32 %v4825_v51, %v3618_v52  ;;  %v4834_v55 = vld [vmem:[#allocation11 + $0x12c] sm:$0xf0] }
  0x4e   :  { %373 = vmatpush.bf16.msra.mxu1 %v3433_v57  ;;  %v4832_v56 = vld [vmem:[#allocation11 + $0x124] sm:$0xf]  ;;  %v4830_v7 = vld [vmem:[#allocation11 + $0x10c] sm:$0xf0]  ;;  %v4857_v18 = vld [vmem:[#allocation11 + $0x1ec] sm:$0xf] }
  0x4f   :  { %3429 = vmatmul.msk.bf16.vlgmr.msra.gmra.mxu0 %vm245_vm1, %v188_v47  ;;  %386 = vmatpush.bf16.msra.mxu2 %v3437_v59  ;;  %v3705_v47 = vor.u32 %v4850_v44, %v3704_v43  ;;  %v3688_v59 = vld [vmem:[#allocation11 + $0x180] sm:$0xf]  ;;  %v5580_v24 = vsel %vm411_vm3, %v5563_v15, %v410_v4  ;;  %v3498_v43 = vld [vmem:[#allocation11 + $0x10] sm:$0xf0]  ;;  %v3616_v44 = vld [vmem:[#allocation11 + $0xe8] sm:$0xf] }
  0x50   :  { %876 = vmatpush.bf16.msrb.mxu0 %v3737_v20  ;;  %867 = vmatpush.bf16.msra.mxu3 %v3545_v54  ;;  %v3640_v54 = vld [vmem:[#allocation11 + $0x120] sm:$0xf]  ;;  %v4828_v8 = vld [vmem:[#allocation11 + $0x104] sm:$0xf]  ;;  %v4817_v26 = vld [vmem:[#allocation11 + $0xac] sm:$0xf] }
  0x51   :  { %v3624_v4 = vld [vmem:[#allocation11 + $0x100] sm:$0xf]  ;;  %v3586_v27 = vld [vmem:[#allocation11 + $0xb8] sm:$0xf0] }
  0x52   :  { %889 = vmatpush.bf16.msrb.mxu1 %v3613_v9  ;;  %v3714_v52 = vld [vmem:[#allocation11 + $0x1b8] sm:$0xf0] }
  0x53   :  { %902 = vmatpush.bf16.msrb.mxu2 %v3741_v22  ;;  %v3512_v22 = vld [vmem:[#allocation11 + $0x20] sm:$0xf] }
  0x54   :  { %877 = vmatpush.bf16.msrb.mxu0 %v3721_v33  ;;  %v3513_v25 = vor.u32 %v4802_v23, %v3512_v22  ;;  %v3657_v33 = vor.u32 %v4838_v32, %v3656_v31  ;;  %v3589_v32 = vor.u32 %v4817_v26, %v3586_v27  ;;  %v3522_v27 = vld [vmem:[#allocation11 + $0x38] sm:$0xf0] }
  0x56   :  { %890 = vmatpush.bf16.msrb.mxu1 %v3597_v16  ;;  %v3673_v16 = vor.u32 %v4842_v13, %v3672_v12  ;;  %v3625_v12 = vor.u32 %v4830_v7, %v3624_v4  ;;  %v3744_v13 = vld [vmem:[#allocation11 + $0x1e8] sm:$0xf]  ;;  %v4807_v7 = vld [vmem:[#allocation11 + $0x54] sm:$0xf0] }
  0x57   :  { %903 = vmatpush.bf16.msrb.mxu2 %v3725_v35  ;;  %v3658_v35 = vld [vmem:[#allocation11 + $0x150] sm:$0xf0] }
  0x58   :  { %878 = vmatpush.bf16.msrb.mxu0 %v3705_v47  ;;  %v3661_v15 = vor.u32 %v4836_v34, %v3658_v35  ;;  %v4853_v34 = vld [vmem:[#allocation11 + $0x1cc] sm:$0xf]  ;;  %v3730_v35 = vld [vmem:[#allocation11 + $0x1d8] sm:$0xf0] }
  0x5a   :  { %891 = vmatpush.bf16.msrb.mxu1 %v3581_v29 }
  0x5b   :  { %904 = vmatpush.bf16.msrb.mxu2 %v3709_v50  ;;  %v3617_v50 = vor.u32 %v4827_v45, %v3616_v44  ;;  %v3712_v44 = vld [vmem:[#allocation11 + $0x1a8] sm:$0xf]  ;;  %v4851_v45 = vld [vmem:[#allocation11 + $0x1b4] sm:$0xf0] }
  0x5c   :  { %v3713_v51 = vor.u32 %v4851_v45, %v3712_v44  ;;  %v4833_v44 = vld [vmem:[#allocation11 + $0x12c] sm:$0xf]  ;;  %v3650_v45 = vld [vmem:[#allocation11 + $0x138] sm:$0xf0] }
  0x5e   :  { %892 = vmatpush.bf16.msrb.mxu1 %v3565_v42  ;;  %v3497_v42 = vor.u32 %v4798_v39, %v3496_v38  ;;  %v4813_v38 = vld [vmem:[#allocation11 + $0x8c] sm:$0xf] }
  0x62   :  { %893 = vmatpush.bf16.msrb.mxu1 %v3549_v58 }
  0x66   :  { %894 = vmatpush.bf16.msrb.mxu1 %v3533_v11 }
  0x6a   :  { %895 = vmatpush.bf16.msrb.mxu1 %v3517_v30 }
  0xcc   :  { %v262_v61 = vpop.f32.mrf.mxu0 }
  0xcd   :  { %v263_v62 = vadd.f32 %v5136_v60, %v262_v61  ;;  %v4846_v60 = vld [vmem:[#allocation11 + $0x18c] sm:$0xf0]  ;;  %v4844_v61 = vld [vmem:[#allocation11 + $0x184] sm:$0xf] }
  0xcf   :  { %v267_v63 = vmul.f32 0.2, %v263_v62  ;;  %vm266_vm2 = vcmp.ge.f32.partialorder %v263_v62, 0.0 }
  0xd1   :  { %v268_v0 = vsel %vm266_vm2, %v263_v62, %v267_v63  ;;  %v3689_v62 = vor.u32 %v4846_v60, %v3688_v59  ;;  %v3690_v63 = vld [vmem:[#allocation11 + $0x190] sm:$0xf0]  ;;  %v3641_v59 = vor.u32 %v4834_v55, %v3640_v54  ;;  %v3552_v54 = vld [vmem:[#allocation11 + $0x68] sm:$0xf]  ;;  %v4811_v55 = vld [vmem:[#allocation11 + $0x74] sm:$0xf0] }
  0xd2   :  { %v269_v1 = vpack.c.bf16 %v268_v0, %v268_v0 }
  0xd3   :  { %879 = vmatpush.bf16.msrb.mxu0 %v3689_v62  ;;  %v4823_v62 = vld [vmem:[#allocation11 + $0xd4] sm:$0xf0] }
  0xd4   :  { %v264_v2 = vpop.f32.mrf.mxu0  ;;  %374 = vmatmul.bf16.vlgmr.msra.gmra.mxu1 %v269_v1  ;;  %387 = vmatmul.bf16.vlgmr.msra.gmra.mxu2 %v269_v1  ;;  %v3693_v1 = vor.u32 %v4844_v61, %v3690_v63  ;;  %v3600_v61 = vld [vmem:[#allocation11 + $0xc8] sm:$0xf]  ;;  %v4821_v63 = vld [vmem:[#allocation11 + $0xcc] sm:$0xf] }
  0xd5   :  { %v3528_v2 = vld [vmem:[#allocation11 + $0x40] sm:$0xf] }
  0xd6   :  { %v3529_v6 = vor.u32 %v4806_v3, %v3528_v2  ;;  %905 = vmatpush.bf16.msrb.mxu2 %v3693_v1  ;;  %v3601_v2 = vor.u32 %v4823_v62, %v3600_v61  ;;  %v3602_v3 = vld [vmem:[#allocation11 + $0xd8] sm:$0xf0]  ;;  %v3696_v61 = vld [vmem:[#allocation11 + $0x188] sm:$0xf]  ;;  %v4847_v62 = vld [vmem:[#allocation11 + $0x194] sm:$0xf0] }
  0xd7   :  { %880 = vmatpush.bf16.msrb.mxu0 %v3673_v16 }
  0xd8   :  { %868 = vmatpush.bf16.msra.mxu3 %v3529_v6  ;;  %v3605_v6 = vor.u32 %v4821_v63, %v3602_v3  ;;  %v4845_v63 = vld [vmem:[#allocation11 + $0x18c] sm:$0xf]  ;;  %v3698_v3 = vld [vmem:[#allocation11 + $0x198] sm:$0xf0] }
  0xd9   :  { %v3701_v4 = vor.u32 %v4845_v63, %v3698_v3 }
  0xda   :  { %906 = vmatpush.bf16.msrb.mxu2 %v3677_v21 }
  0xdb   :  { %881 = vmatpush.bf16.msrb.mxu0 %v3657_v33 }
  0xdc   :  { %869 = vmatpush.bf16.msra.mxu3 %v3513_v25  ;;  %v4819_v25 = vld [vmem:[#allocation11 + $0xb4] sm:$0xf0] }
  0xde   :  { %907 = vmatpush.bf16.msrb.mxu2 %v3661_v15  ;;  %v4815_v15 = vld [vmem:[#allocation11 + $0x94] sm:$0xf0] }
  0xdf   :  { %882 = vmatpush.bf16.msrb.mxu0 %v3641_v59  ;;  %v3553_v59 = vor.u32 %v4811_v55, %v3552_v54 }
  0xe0   :  { %870 = vmatpush.bf16.msra.mxu3 %v3497_v42  ;;  %v3570_v42 = vld [vmem:[#allocation11 + $0x98] sm:$0xf0] }
  0xe3   :  { %883 = vmatpush.bf16.msrb.mxu0 %v3625_v12  ;;  %v3538_v12 = vld [vmem:[#allocation11 + $0x58] sm:$0xf0] }
  0xe4   :  { %915 = vmatpush.bf16.msrb.mxu3 %v3617_v50 }
  0xe8   :  { %916 = vmatpush.bf16.msrb.mxu3 %v3601_v2  ;;  %v3697_v2 = vor.u32 %v4847_v62, %v3696_v61 }
 0x151   :  { %v5566_v46 = vpop.f32.mrf.mxu1 }
 0x152   :  { %v394_v49 = vrot.slane %v5566_v46, 4 }
 0x154   :  { %v395_v57 = vadd.f32 %v394_v49, %v5566_v46  ;;  %v3501_v49 = vor.u32 %v4796_v40, %v3498_v43  ;;  %v3573_v43 = vor.u32 %v4813_v38, %v3570_v42  ;;  %v4835_v42 = vld [vmem:[#allocation11 + $0x134] sm:$0xf0] }
 0x156   :  { %v396_v0 = vrot.slane %v395_v57, 2  ;;  %896 = vmatpush.bf16.msrb.mxu1 %v3501_v49 }
 0x157   :  { %v5572_v5 = vpop.f32.mrf.mxu2 }
 0x158   :  { %v397_v9 = vadd.f32 %v396_v0, %v395_v57  ;;  %v400_v10 = vrot.slane %v5572_v5, 4 }
 0x159   :  { %v377_v14 = vpop.f32.mrf.mxu1 }
 0x15a   :  { %v398_v19 = vrot.slane %v397_v9, 1  ;;  %v401_v20 = vadd.f32 %v400_v10, %v5572_v5  ;;  %941 = vmatpush.bf16.msra.mxu1 %v3621_v53  ;;  %v4859_v14 = vld [vmem:[#allocation11 + $0x1f4] sm:$0xf0] }
 0x15b   :  { %v3745_v17 = vor.u32 %v4859_v14, %v3744_v13  ;;  %v3680_v14 = vld [vmem:[#allocation11 + $0x168] sm:$0xf] }
 0x15c   :  { %v399_v28 = vadd.f32 %v398_v19, %v397_v9  ;;  %v402_v29 = vrot.slane %v401_v20, 2  ;;  %v3626_v9 = vld [vmem:[#allocation11 + $0x110] sm:$0xf0]  ;;  %v3746_v19 = vld [vmem:[#allocation11 + $0x1f8] sm:$0xf0] }
 0x15d   :  { %v3629_v16 = vor.u32 %v4828_v8, %v3626_v9  ;;  %v3749_v23 = vor.u32 %v4857_v18, %v3746_v19  ;;  %928 = vmatpush.bf16.msra.mxu0 %v3745_v17  ;;  %v4805_v8 = vld [vmem:[#allocation11 + $0x4c] sm:$0xf] }
 0x15e   :  { %v413_v36 = vmul.f32 %v5580_v24, %v399_v28  ;;  %v403_v37 = vadd.f32 %v402_v29, %v401_v20  ;;  %942 = vmatpush.bf16.msra.mxu1 %v3605_v6  ;;  %v3584_v20 = vld [vmem:[#allocation11 + $0xa8] sm:$0xf]  ;;  %v4855_v29 = vld [vmem:[#allocation11 + $0x1d4] sm:$0xf0]  ;;  %v3541_v13 = vor.u32 %v4805_v8, %v3538_v12  ;;  %v4841_v17 = vld [vmem:[#allocation11 + $0x16c] sm:$0xf] }
 0x15f   :  { %v390_v41 = vpop.f32.mrf.mxu2  ;;  %v3728_v28 = vld [vmem:[#allocation11 + $0x1c8] sm:$0xf] }
 0x160   :  { %v5584_v47 = vsub.f32 %v5566_v46, %v413_v36  ;;  %v404_v48 = vrot.slane %v403_v37, 1  ;;  %v3642_v46 = vld [vmem:[#allocation11 + $0x130] sm:$0xf0]  ;;  %v3729_v33 = vor.u32 %v4855_v29, %v3728_v28  ;;  %v3733_v36 = vor.u32 %v4853_v34, %v3730_v35  ;;  %v3536_v6 = vld [vmem:[#allocation11 + $0x48] sm:$0xf] }
 0x161   :  { %v3645_v60 = vor.u32 %v4832_v56, %v3642_v46  ;;  %v4809_v56 = vld [vmem:[#allocation11 + $0x6c] sm:$0xf]  ;;  %v3554_v46 = vld [vmem:[#allocation11 + $0x78] sm:$0xf0]  ;;  %v3664_v28 = vld [vmem:[#allocation11 + $0x148] sm:$0xf] }
 0x162   :  { %v417_v57 = vmul.f32 %v5584_v47, %v5584_v47  ;;  %v405_v58 = vadd.f32 %v404_v48, %v403_v37  ;;  %v3568_v37 = vld [vmem:[#allocation11 + $0x88] sm:$0xf]  ;;  %943 = vmatpush.bf16.msra.mxu1 %v3589_v32  ;;  %929 = vmatpush.bf16.msra.mxu0 %v3729_v33  ;;  %v4849_v48 = vld [vmem:[#allocation11 + $0x1ac] sm:$0xf]  ;;  %v3666_v32 = vld [vmem:[#allocation11 + $0x158] sm:$0xf0] }
 0x163   :  { %908 = vmatpush.bf16.msrb.mxu2 %v3645_v60  ;;  %v3569_v41 = vor.u32 %v4815_v15, %v3568_v37  ;;  %v3717_v53 = vor.u32 %v4849_v48, %v3714_v52  ;;  %v3557_v60 = vor.u32 %v4809_v56, %v3554_v46  ;;  %v4799_v37 = vld [vmem:[#allocation11 + $0x14] sm:$0xf0]  ;;  %v4797_v15 = vld [vmem:[#allocation11 + $0xc] sm:$0xf]  ;;  %v3632_v56 = vld [vmem:[#allocation11 + $0x108] sm:$0xf] }
 0x164   :  { %v419_v0 = vrot.slane %v417_v57, 4  ;;  %v414_v1 = vmul.f32 %v5580_v24, %v405_v58  ;;  %v3634_v46 = vld [vmem:[#allocation11 + $0x118] sm:$0xf0] }
 0x166   :  { %v420_v10 = vadd.f32 %v419_v0, %v417_v57  ;;  %v5590_v11 = vsub.f32 %v5572_v5, %v414_v1  ;;  %v3585_v5 = vor.u32 %v4819_v25, %v3584_v20  ;;  %944 = vmatpush.bf16.msra.mxu1 %v3573_v43  ;;  %930 = vmatpush.bf16.msra.mxu0 %v3713_v51  ;;  %v3682_v20 = vld [vmem:[#allocation11 + $0x178] sm:$0xf0]  ;;  %v4801_v25 = vld [vmem:[#allocation11 + $0x2c] sm:$0xf] }
 0x167   :  { %909 = vmatpush.bf16.msrb.mxu2 %v3629_v16  ;;  %v4843_v16 = vld [vmem:[#allocation11 + $0x174] sm:$0xf0]  ;;  %v3525_v29 = vor.u32 %v4801_v25, %v3522_v27 }
 0x168   :  { %v421_v21 = vrot.slane %v420_v10, 2  ;;  %v418_v22 = vmul.f32 %v5590_v11, %v5590_v11  ;;  %917 = vmatpush.bf16.msrb.mxu3 %v3585_v5  ;;  %v3681_v19 = vor.u32 %v4843_v16, %v3680_v14 }
 0x16a   :  { %v422_v30 = vadd.f32 %v421_v21, %v420_v10  ;;  %v425_v31 = vrot.slane %v418_v22, 4  ;;  %945 = vmatpush.bf16.msra.mxu1 %v3557_v60  ;;  %v3537_v10 = vor.u32 %v4807_v7, %v3536_v6  ;;  %931 = vmatpush.bf16.msra.mxu0 %v3697_v2  ;;  %v3685_v21 = vor.u32 %v4841_v17, %v3682_v20  ;;  %v393_v60 = vld [vmem:[#allocation10] sm:$0x3] }
 0x16b   :  { %954 = vmatpush.bf16.msra.mxu2 %v3749_v23  ;;  %v4803_v23 = vld [vmem:[#allocation11 + $0x34] sm:$0xf0]  ;;  %v465_v6 = vperm.slane %v393_v60, 0  ;;  %v466_v14 = vperm.slane %v393_v60, 1  ;;  %v4952_v60 = vld [vmem:[#allocation16 + $0x2dc] sm:$0xf0] }
 0x16c   :  { %v423_v39 = vrot.slane %v422_v30, 1  ;;  %v426_v40 = vadd.f32 %v425_v31, %v418_v22  ;;  %918 = vmatpush.bf16.msrb.mxu3 %v3569_v41  ;;  %v3520_v22 = vld [vmem:[#allocation11 + $0x28] sm:$0xf]  ;;  %v4837_v31 = vld [vmem:[#allocation11 + $0x14c] sm:$0xf] }
 0x16d   :  { %v3521_v5 = vor.u32 %v4803_v23, %v3520_v22  ;;  %v3669_v35 = vor.u32 %v4837_v31, %v3666_v32  ;;  %v3648_v41 = vld [vmem:[#allocation11 + $0x128] sm:$0xf] }
 0x16e   :  { %v424_v49 = vadd.f32 %v423_v39, %v422_v30  ;;  %v427_v50 = vrot.slane %v426_v40, 2  ;;  %946 = vmatpush.bf16.msra.mxu1 %v3541_v13  ;;  %932 = vmatpush.bf16.msra.mxu0 %v3681_v19  ;;  %v4839_v30 = vld [vmem:[#allocation11 + $0x154] sm:$0xf0]  ;;  %v4920_v23 = vld [vmem:[#allocation16 + $0x1dc] sm:$0xf0] }
 0x16f   :  { %955 = vmatpush.bf16.msra.mxu2 %v3733_v36  ;;  %v3665_v34 = vor.u32 %v4839_v30, %v3664_v28  ;;  %v3504_v36 = vld [vmem:[#allocation11 + $0x8] sm:$0xf] }
 0x170   :  { %v431_v57 = vmul.f32 %v424_v49, %v5580_v24  ;;  %v428_v58 = vadd.f32 %v427_v50, %v426_v40  ;;  %919 = vmatpush.bf16.msrb.mxu3 %v3553_v59  ;;  %v3505_v39 = vor.u32 %v4799_v37, %v3504_v36  ;;  %v3506_v40 = vld [vmem:[#allocation11 + $0x18] sm:$0xf0]  ;;  %v3649_v49 = vor.u32 %v4835_v42, %v3648_v41  ;;  %v4829_v59 = vld [vmem:[#allocation11 + $0x10c] sm:$0xf]  ;;  %v4232_v28 = vld [vmem:[#allocation16 + $0x3c0] sm:$0xf] }
 0x171   :  { %v3509_v43 = vor.u32 %v4797_v15, %v3506_v40  ;;  %v3653_v50 = vor.u32 %v4833_v44, %v3650_v45  ;;  %v3637_v63 = vor.u32 %v4829_v59, %v3634_v46  ;;  %v3912_v31 = vld [vmem:[#allocation16 + $0x140] sm:$0xf] }
 0x172   :  { %v5595_v0 = vadd.f32 0.8, %v431_v57  ;;  %v429_v1 = vrot.slane %v428_v58, 1  ;;  %947 = vmatpush.bf16.msra.mxu1 %v3525_v29  ;;  %933 = vmatpush.bf16.msra.mxu0 %v3665_v34  ;;  %v4831_v57 = vld [vmem:[#allocation11 + $0x114] sm:$0xf0] }
 0x173   :  { %956 = vmatpush.bf16.msra.mxu2 %v3717_v53  ;;  %v392_v53 = vld [vmem:[#allocation8] sm:$0x3]  ;;  %v4984_v29 = vld [vmem:[#allocation16 + $0x3dc] sm:$0xf0] }
 0x174   :  { %5139 = vrsqrt.f32 %v5595_v0  ;;  %v430_v9 = vadd.f32 %v429_v1, %v428_v58  ;;  %920 = vmatpush.bf16.msrb.mxu3 %v3537_v10  ;;  %v3633_v58 = vor.u32 %v4831_v57, %v3632_v56  ;;  %vm441_vm5 = vweird.f32 %v5595_v0  ;;  %v4904_v32 = vld [vmem:[#allocation16 + $0x15c] sm:$0xf0] }
 0x175   :  { %v458_v1 = vperm.slane %v392_v53, 0  ;;  %v4233_v30 = vor.u32 %v4984_v29, %v4232_v28  ;;  %v4200_v34 = vld [vmem:[#allocation16 + $0x380] sm:$0xf] }
 0x176   :  { %v432_v18 = vmul.f32 %v430_v9, %v5580_v24  ;;  %948 = vmatpush.bf16.msra.mxu1 %v3509_v43  ;;  %934 = vmatpush.bf16.msra.mxu0 %v3649_v49  ;;  %v3880_v37 = vld [vmem:[#allocation16 + $0x100] sm:$0xf] }
 0x177   :  { %957 = vmatpush.bf16.msra.mxu2 %v3701_v4  ;;  %v4896_v15 = vld [vmem:[#allocation16 + $0x11c] sm:$0xf0] }
 0x178   :  { %v5599_v26 = vadd.f32 0.8, %v432_v18  ;;  %921 = vmatpush.bf16.msrb.mxu3 %v3521_v5  ;;  %v4912_v5 = vld [vmem:[#allocation16 + $0x19c] sm:$0xf0] }
 0x179   :  { %v4968_v40 = vld [vmem:[#allocation16 + $0x35c] sm:$0xf0] }
 0x17a   :  { %v5140_v33 = vpop.eup %5139  ;;  %5141 = vrsqrt.f32 %v5599_v26  ;;  %935 = vmatpush.bf16.msra.mxu0 %v3633_v58  ;;  %vm451_vm8 = vweird.f32 %v5599_v26  ;;  %v3848_v42 = vld [vmem:[#allocation16 + $0xc0] sm:$0xf] }
 0x17b   :  { %958 = vmatpush.bf16.msra.mxu2 %v3685_v21  ;;  %v436_v38 = vmul.f32 %v5140_v33, %v5595_v0  ;;  %vm442_vm4 = vweird.f32 %v5140_v33  ;;  %v459_v0 = vperm.slane %v392_v53, 1  ;;  %v4888_v43 = vld [vmem:[#allocation16 + $0xdc] sm:$0xf0] }
 0x17c   :  { %922 = vmatpush.bf16.msrb.mxu3 %v3505_v39  ;;  %vm443_vm6 = vmor %vm441_vm5, %vm442_vm4  ;;  %v4168_v39 = vld [vmem:[#allocation16 + $0x340] sm:$0xf]  ;;  %v3849_v45 = vor.u32 %v4888_v43, %v3848_v42  ;;  %v4908_v42 = vld [vmem:[#allocation16 + $0x184] sm:$0xf] }
 0x17d   :  { %v437_v48 = vmul.f32 %v5140_v33, %v436_v38  ;;  %v3881_v38 = vor.u32 %v4896_v15, %v3880_v37  ;;  %v4169_v41 = vor.u32 %v4968_v40, %v4168_v39  ;;  %v4488_v44 = vld [vmem:[#allocation16 + $0x5c0] sm:$0xf]  ;;  %v3946_v43 = vld [vmem:[#allocation16 + $0x1a0] sm:$0xf0] }
 0x17e   :  { %v4456_v56 = vld [vmem:[#allocation16 + $0x580] sm:$0xf] }
 0x17f   :  { %959 = vmatpush.bf16.msra.mxu2 %v3669_v35  ;;  %v438_v51 = vmul.f32 0.5, %v437_v48  ;;  %v4976_v35 = vld [vmem:[#allocation16 + $0x39c] sm:$0xf0] }
 0x180   :  { %v5142_v52 = vpop.eup %5141  ;;  %v4201_v36 = vor.u32 %v4976_v35, %v4200_v34  ;;  %v5048_v48 = vld [vmem:[#allocation16 + $0x5dc] sm:$0xf0] }
 0x181   :  { %v439_v54 = vsub.f32 1.5, %v438_v51  ;;  %v446_v55 = vmul.f32 %v5142_v52, %v5599_v26  ;;  %vm452_vm7 = vweird.f32 %v5142_v52  ;;  %v3944_v26 = vld [vmem:[#allocation16 + $0x180] sm:$0xf]  ;;  %v4489_v49 = vor.u32 %v5048_v48, %v4488_v44 }
 0x182   :  { %vm453_vm9 = vmor %vm451_vm8, %vm452_vm7  ;;  %v3945_v27 = vor.u32 %v4912_v5, %v3944_v26  ;;  %v4960_v51 = vld [vmem:[#allocation16 + $0x31c] sm:$0xf0]  ;;  %v3949_v48 = vor.u32 %v4908_v42, %v3946_v43 }
 0x183   :  { %960 = vmatpush.bf16.msra.mxu2 %v3653_v50  ;;  %v440_v61 = vmul.f32 %v5140_v33, %v439_v54  ;;  %v447_v62 = vmul.f32 %v5142_v52, %v446_v55  ;;  %v4136_v50 = vld [vmem:[#allocation16 + $0x300] sm:$0xf] }
 0x184   :  { %v4137_v53 = vor.u32 %v4960_v51, %v4136_v50  ;;  %v3816_v54 = vld [vmem:[#allocation16 + $0x80] sm:$0xf] }
 0x185   :  { %v444_v2 = vsel %vm443_vm6, %v5140_v33, %v440_v61  ;;  %v448_v3 = vmul.f32 0.5, %v447_v62  ;;  %v3913_v33 = vor.u32 %v4904_v32, %v3912_v31  ;;  %v4880_v55 = vld [vmem:[#allocation16 + $0x9c] sm:$0xf0] }
 0x186   :  { %v455_v4 = vmul.f32 %v444_v2, %v5584_v47  ;;  %v3817_v57 = vor.u32 %v4880_v55, %v3816_v54  ;;  %v5040_v58 = vld [vmem:[#allocation16 + $0x59c] sm:$0xf0]  ;;  %v4980_v55 = vld [vmem:[#allocation16 + $0x3c4] sm:$0xf] }
 0x187   :  { %961 = vmatpush.bf16.msra.mxu2 %v3637_v63  ;;  %v449_v7 = vsub.f32 1.5, %v448_v3  ;;  %v4457_v59 = vor.u32 %v5040_v58, %v4456_v56  ;;  %v4104_v46 = vld [vmem:[#allocation16 + $0x2c0] sm:$0xf] }
 0x188   :  { %v462_v8 = vmul.f32 %v458_v1, %v455_v4  ;;  %v4744_v61 = vld [vmem:[#allocation16 + $0x7c0] sm:$0xf]  ;;  %v4105_v62 = vor.u32 %v4952_v60, %v4104_v46 }
 0x189   :  { %v450_v9 = vmul.f32 %v5142_v52, %v449_v7  ;;  %v5112_v63 = vld [vmem:[#allocation16 + $0x7dc] sm:$0xf0] }
 0x18a   :  { %v469_v10 = vadd.f32 %v465_v6, %v462_v8  ;;  %v4745_v1 = vor.u32 %v5112_v63, %v4744_v61  ;;  %v3784_v2 = vld [vmem:[#allocation16 + $0x40] sm:$0xf]  ;;  %v3914_v63 = vld [vmem:[#allocation16 + $0x160] sm:$0xf0] }
 0x18b   :  { %v454_v12 = vsel %vm453_vm9, %v5142_v52, %v450_v9  ;;  %v4872_v3 = vld [vmem:[#allocation16 + $0x5c] sm:$0xf0] }
 0x18c   :  { %v456_v13 = vmul.f32 %v454_v12, %v5590_v11  ;;  %vm471_vm10 = vcmp.ge.f32.partialorder %v469_v10, 0.0  ;;  %v473_v16 = vmul.f32 0.2, %v469_v10  ;;  %v3976_v11 = vld [vmem:[#allocation16 + $0x1c0] sm:$0xf]  ;;  %v3785_v8 = vor.u32 %v4872_v3, %v3784_v2 }
 0x18d   :  { %v3977_v25 = vor.u32 %v4920_v23, %v3976_v11  ;;  %v4424_v4 = vld [vmem:[#allocation16 + $0x540] sm:$0xf] }
 0x18e   :  { %v463_v17 = vmul.f32 %v459_v0, %v456_v13  ;;  %v475_v18 = vsel %vm471_vm10, %v469_v10, %v473_v16  ;;  %v5032_v9 = vld [vmem:[#allocation16 + $0x55c] sm:$0xf0] }
 0x18f   :  { %v477_v47 = vpack.c.bf16 %v475_v18, %v475_v18  ;;  %v4425_v0 = vor.u32 %v5032_v9, %v4424_v4  ;;  %v4072_v12 = vld [vmem:[#allocation16 + $0x280] sm:$0xf] }
 0x190   :  { %v470_v19 = vadd.f32 %v466_v14, %v463_v17  ;;  %v4944_v13 = vld [vmem:[#allocation16 + $0x29c] sm:$0xf0] }
 0x191   :  { %871 = vmatmul.bf16.vlgmr.msra.gmra.mxu3 %v477_v47  ;;  %897 = vmatmul.bf16.vlgmr.msrb.gmra.mxu1 %v477_v47  ;;  %v4712_v14 = vld [vmem:[#allocation16 + $0x780] sm:$0xf]  ;;  %v4073_v17 = vor.u32 %v4944_v13, %v4072_v12  ;;  %v4202_v12 = vld [vmem:[#allocation16 + $0x3a0] sm:$0xf0] }
 0x192   :  { %vm472_vm11 = vcmp.ge.f32.partialorder %v470_v19, 0.0  ;;  %v474_v20 = vmul.f32 0.2, %v470_v19  ;;  %2659 = vmatpush.bf16.msra.mxu3 %v3977_v25  ;;  %2685 = vmatpush.bf16.msrb.mxu1 %v4489_v49  ;;  %v5104_v18 = vld [vmem:[#allocation16 + $0x79c] sm:$0xf0] }
 0x193   :  { %v4392_v11 = vld [vmem:[#allocation16 + $0x500] sm:$0xf]  ;;  %v4916_v25 = vld [vmem:[#allocation16 + $0x1c4] sm:$0xf] }
 0x194   :  { %v476_v21 = vsel %vm472_vm11, %v470_v19, %v474_v20  ;;  %v4713_v19 = vor.u32 %v5104_v18, %v4712_v14  ;;  %v3752_v20 = vld [vmem:[#allocation16] sm:$0xf] }
 0x195   :  { %v478_v22 = vpack.c.bf16 %v476_v21, %v476_v21  ;;  %v4864_v21 = vld [vmem:[#allocation16 + $0x1c] sm:$0xf0] }
 0x196   :  { %2660 = vmatpush.bf16.msra.mxu3 %v3945_v27  ;;  %2686 = vmatpush.bf16.msrb.mxu1 %v4457_v59  ;;  %v5024_v23 = vld [vmem:[#allocation16 + $0x51c] sm:$0xf0]  ;;  %v3978_v27 = vld [vmem:[#allocation16 + $0x1e0] sm:$0xf0] }
 0x197   :  { %884 = vmatmul.bf16.vlgmr.msrb.gmra.mxu0 %v478_v22  ;;  %910 = vmatmul.bf16.vlgmr.msrb.gmra.mxu2 %v478_v22  ;;  %v4393_v5 = vor.u32 %v5024_v23, %v4392_v11  ;;  %v4040_v28 = vld [vmem:[#allocation16 + $0x240] sm:$0xf]  ;;  %v3981_v31 = vor.u32 %v4916_v25, %v3978_v27  ;;  %v4234_v59 = vld [vmem:[#allocation16 + $0x3e0] sm:$0xf0] }
 0x198   :  { %2672 = vmatpush.bf16.msrb.mxu0 %v4233_v30  ;;  %2698 = vmatpush.bf16.msrb.mxu2 %v4745_v1  ;;  %v4936_v29 = vld [vmem:[#allocation16 + $0x25c] sm:$0xf0]  ;;  %v4237_v60 = vor.u32 %v4980_v55, %v4234_v59 }
 0x199   :  { %v4041_v32 = vor.u32 %v4936_v29, %v4040_v28  ;;  %v5096_v34 = vld [vmem:[#allocation16 + $0x75c] sm:$0xf0] }
 0x19a   :  { %2661 = vmatpush.bf16.msra.mxu3 %v3913_v33  ;;  %2687 = vmatpush.bf16.msrb.mxu1 %v4425_v0  ;;  %v4680_v33 = vld [vmem:[#allocation16 + $0x740] sm:$0xf]  ;;  %v4972_v0 = vld [vmem:[#allocation16 + $0x384] sm:$0xf] }
 0x19b   :  { %v4681_v37 = vor.u32 %v5096_v34, %v4680_v33  ;;  %v4360_v15 = vld [vmem:[#allocation16 + $0x4c0] sm:$0xf] }
 0x19c   :  { %2673 = vmatpush.bf16.msrb.mxu0 %v4201_v36  ;;  %2699 = vmatpush.bf16.msrb.mxu2 %v4713_v19  ;;  %v4008_v49 = vld [vmem:[#allocation16 + $0x200] sm:$0xf] }
 0x19d   :  { %v4928_v50 = vld [vmem:[#allocation16 + $0x21c] sm:$0xf0] }
 0x19e   :  { %2662 = vmatpush.bf16.msra.mxu3 %v3881_v38  ;;  %2688 = vmatpush.bf16.msrb.mxu1 %v4393_v5  ;;  %v5016_v38 = vld [vmem:[#allocation16 + $0x4dc] sm:$0xf0] }
 0x19f   :  { %v5088_v54 = vld [vmem:[#allocation16 + $0x71c] sm:$0xf0] }
 0x1a0   :  { %2674 = vmatpush.bf16.msrb.mxu0 %v4169_v41  ;;  %v4361_v41 = vor.u32 %v5016_v38, %v4360_v15  ;;  %2700 = vmatpush.bf16.msrb.mxu2 %v4681_v37  ;;  %v4328_v46 = vld [vmem:[#allocation16 + $0x480] sm:$0xf]  ;;  %v4884_v38 = vld [vmem:[#allocation16 + $0xc4] sm:$0xf] }
 0x1a1   :  { %923 = vmatmul.bf16.vlgmr.msrb.gmra.mxu3 %v477_v47  ;;  %949 = vmatmul.bf16.vlgmr.msra.gmra.mxu1 %v477_v47  ;;  %v5008_v61 = vld [vmem:[#allocation16 + $0x49c] sm:$0xf0] }
 0x1a2   :  { %2663 = vmatpush.bf16.msra.mxu3 %v3849_v45  ;;  %2689 = vmatpush.bf16.msrb.mxu1 %v4361_v41  ;;  %v4329_v3 = vor.u32 %v5008_v61, %v4328_v46  ;;  %v5000_v18 = vld [vmem:[#allocation16 + $0x45c] sm:$0xf0] }
 0x1a3   :  { %v4584_v5 = vld [vmem:[#allocation16 + $0x680] sm:$0xf] }
 0x1a4   :  { %2675 = vmatpush.bf16.msrb.mxu0 %v4137_v53  ;;  %v4648_v53 = vld [vmem:[#allocation16 + $0x700] sm:$0xf] }
 0x1a5   :  { %v4649_v58 = vor.u32 %v5088_v54, %v4648_v53  ;;  %v5072_v27 = vld [vmem:[#allocation16 + $0x69c] sm:$0xf0]  ;;  %v4956_v53 = vld [vmem:[#allocation16 + $0x304] sm:$0xf] }
 0x1a6   :  { %2664 = vmatpush.bf16.msra.mxu3 %v3817_v57  ;;  %2690 = vmatpush.bf16.msrb.mxu1 %v4329_v3  ;;  %v4585_v29 = vor.u32 %v5072_v27, %v4584_v5  ;;  %v4992_v37 = vld [vmem:[#allocation16 + $0x41c] sm:$0xf0]  ;;  %v4138_v54 = vld [vmem:[#allocation16 + $0x320] sm:$0xf0] }
 0x1a7   :  { %936 = vmatmul.bf16.vlgmr.msra.gmra.mxu0 %v478_v22  ;;  %962 = vmatmul.bf16.vlgmr.msra.gmra.mxu2 %v478_v22  ;;  %v3753_v22 = vor.u32 %v4864_v21, %v3752_v20  ;;  %v4892_v21 = vld [vmem:[#allocation16 + $0x104] sm:$0xf]  ;;  %v4141_v61 = vor.u32 %v4956_v53, %v4138_v54 }
 0x1a8   :  { %2676 = vmatpush.bf16.msrb.mxu0 %v4105_v62  ;;  %v4900_v62 = vld [vmem:[#allocation16 + $0x144] sm:$0xf]  ;;  %2701 = vmatpush.bf16.msrb.mxu2 %v4649_v58 }
 0x1a9   :  { %v3917_v4 = vor.u32 %v4900_v62, %v3914_v63  ;;  %v4876_v62 = vld [vmem:[#allocation16 + $0x84] sm:$0xf] }
 0x1aa   :  { %2665 = vmatpush.bf16.msra.mxu3 %v3785_v8  ;;  %v3818_v63 = vld [vmem:[#allocation16 + $0xa0] sm:$0xf0] }
 0x1ab   :  { %v5028_v27 = vld [vmem:[#allocation16 + $0x544] sm:$0xf] }
 0x1ac   :  { %2677 = vmatpush.bf16.msrb.mxu0 %v4073_v17  ;;  %v4296_v17 = vld [vmem:[#allocation16 + $0x440] sm:$0xf]  ;;  %v4394_v53 = vld [vmem:[#allocation16 + $0x520] sm:$0xf0] }
 0x1ad   :  { %v4297_v20 = vor.u32 %v5000_v18, %v4296_v17  ;;  %v4106_v17 = vld [vmem:[#allocation16 + $0x2e0] sm:$0xf0] }
 0x1ae   :  { %2666 = vmatpush.bf16.msra.mxu3 %v3753_v22  ;;  %v3882_v22 = vld [vmem:[#allocation16 + $0x120] sm:$0xf0] }
 0x1af   :  { %2691 = vmatpush.bf16.msrb.mxu1 %v4297_v20  ;;  %v5108_v18 = vld [vmem:[#allocation16 + $0x7c4] sm:$0xf] }
 0x1b0   :  { %2678 = vmatpush.bf16.msrb.mxu0 %v4041_v32  ;;  %v4746_v20 = vld [vmem:[#allocation16 + $0x7e0] sm:$0xf0] }
 0x1b2   :  { %2711 = vmatpush.bf16.msrb.mxu3 %v3981_v31  ;;  %v4170_v31 = vld [vmem:[#allocation16 + $0x360] sm:$0xf0] }
 0x1b6   :  { %2712 = vmatpush.bf16.msrb.mxu3 %v3949_v48  ;;  %v4552_v48 = vld [vmem:[#allocation16 + $0x640] sm:$0xf] }
 0x1ba   :  { %2713 = vmatpush.bf16.msrb.mxu3 %v3917_v4  ;;  %v4458_v4 = vld [vmem:[#allocation16 + $0x5a0] sm:$0xf0] }
 0x20e   :  { %v898_v52 = vpop.f32.mrf.mxu1 }
 0x214   :  { %v872_v6 = vpop.f32.mrf.mxu3  ;;  %v885_v7 = vpop.f32.mrf.mxu0 }
 0x215   :  { %v5608_v10 = vadd.f32 %v885_v7, %v872_v6  ;;  %v4616_v6 = vld [vmem:[#allocation16 + $0x6c0] sm:$0xf] }
 0x216   :  { %v900_v16 = vpop.f32.mrf.mxu1  ;;  %v5080_v7 = vld [vmem:[#allocation16 + $0x6dc] sm:$0xf0] }
 0x217   :  { %v969_v47 = vrot.slane %v5608_v10, 4  ;;  %v4617_v9 = vor.u32 %v5080_v7, %v4616_v6  ;;  %v4205_v16 = vor.u32 %v4972_v0, %v4202_v12  ;;  %v4520_v6 = vld [vmem:[#allocation16 + $0x600] sm:$0xf]  ;;  %v4948_v0 = vld [vmem:[#allocation16 + $0x2c4] sm:$0xf] }
 0x219   :  { %v970_v26 = vadd.f32 %v969_v47, %v5608_v10  ;;  %2702 = vmatpush.bf16.msrb.mxu2 %v4617_v9  ;;  %v5056_v9 = vld [vmem:[#allocation16 + $0x61c] sm:$0xf0] }
 0x21a   :  { %v911_v30 = vpop.f32.mrf.mxu2 }
 0x21b   :  { %v971_v35 = vrot.slane %v970_v26, 2  ;;  %v5612_v36 = vadd.f32 %v911_v30, %v898_v52  ;;  %v4009_v52 = vor.u32 %v4928_v50, %v4008_v49  ;;  %v4964_v30 = vld [vmem:[#allocation16 + $0x344] sm:$0xf] }
 0x21c   :  { %v874_v39 = vpop.f32.mrf.mxu3  ;;  %v887_v40 = vpop.f32.mrf.mxu0 }
 0x21d   :  { %v972_v44 = vadd.f32 %v971_v35, %v970_v26  ;;  %v975_v45 = vrot.slane %v5612_v36, 4  ;;  %2679 = vmatpush.bf16.msrb.mxu0 %v4009_v52  ;;  %v3885_v26 = vor.u32 %v4892_v21, %v3882_v22  ;;  %v4264_v35 = vld [vmem:[#allocation16 + $0x400] sm:$0xf]  ;;  %v3850_v39 = vld [vmem:[#allocation16 + $0xe0] sm:$0xf0]  ;;  %2703 = vmatpush.bf16.msrb.mxu2 %v4585_v29 }
 0x21e   :  { %v5615_v51 = vpop.f32.mrf.mxu1  ;;  %v4265_v15 = vor.u32 %v4992_v37, %v4264_v35  ;;  %v5044_v40 = vld [vmem:[#allocation16 + $0x5c4] sm:$0xf]  ;;  %v5064_v52 = vld [vmem:[#allocation16 + $0x65c] sm:$0xf0] }
 0x21f   :  { %v973_v56 = vrot.slane %v972_v44, 1  ;;  %v976_v57 = vadd.f32 %v975_v45, %v5612_v36  ;;  %2714 = vmatpush.bf16.msrb.mxu3 %v3885_v26  ;;  %v4490_v45 = vld [vmem:[#allocation16 + $0x5e0] sm:$0xf0] }
 0x220   :  { %v4493_v50 = vor.u32 %v5044_v40, %v4490_v45  ;;  %2692 = vmatpush.bf16.msrb.mxu1 %v4265_v15  ;;  %v4868_v21 = vld [vmem:[#allocation16 + $0x44] sm:$0xf] }
 0x221   :  { %v974_v1 = vadd.f32 %v973_v56, %v972_v44  ;;  %v977_v2 = vrot.slane %v976_v57, 2  ;;  %2724 = vmatpush.bf16.msra.mxu0 %v4237_v60  ;;  %v3853_v44 = vor.u32 %v4884_v38, %v3850_v39  ;;  %v4553_v60 = vor.u32 %v5064_v52, %v4552_v48  ;;  %v3786_v22 = vld [vmem:[#allocation16 + $0x60] sm:$0xf0] }
 0x222   :  { %v913_v8 = vpop.f32.mrf.mxu2  ;;  %v5100_v38 = vld [vmem:[#allocation16 + $0x784] sm:$0xf] }
 0x223   :  { %v993_v13 = vmul.f32 %v974_v1, %v5580_v24  ;;  %v978_v14 = vadd.f32 %v977_v2, %v976_v57  ;;  %2715 = vmatpush.bf16.msrb.mxu3 %v3853_v44  ;;  %v5036_v1 = vld [vmem:[#allocation16 + $0x584] sm:$0xf]  ;;  %2704 = vmatpush.bf16.msrb.mxu2 %v4553_v60 }
 0x224   :  { %v924_v47 = vpop.f32.mrf.mxu3  ;;  %v937_v19 = vpop.f32.mrf.mxu0  ;;  %2737 = vmatpush.bf16.msra.mxu1 %v4493_v50  ;;  %v4461_v8 = vor.u32 %v5036_v1, %v4458_v4  ;;  %v4714_v39 = vld [vmem:[#allocation16 + $0x7a0] sm:$0xf0] }
 0x225   :  { %v5620_v11 = vsub.f32 %v5608_v10, %v993_v13  ;;  %v979_v23 = vrot.slane %v978_v14, 1  ;;  %v5622_v25 = vadd.f32 %v937_v19, %v924_v47  ;;  %2725 = vmatpush.bf16.msra.mxu0 %v4205_v16  ;;  %v4173_v10 = vor.u32 %v4964_v30, %v4170_v31  ;;  %v3754_v44 = vld [vmem:[#allocation16 + $0x20] sm:$0xf0] }
 0x226   :  { %v952_v28 = vpop.f32.mrf.mxu1  ;;  %v4521_v16 = vor.u32 %v5056_v9, %v4520_v6  ;;  %v4109_v19 = vor.u32 %v4948_v0, %v4106_v17  ;;  %v4749_v31 = vor.u32 %v5108_v18, %v4746_v20  ;;  %v5020_v45 = vld [vmem:[#allocation16 + $0x504] sm:$0xf] }
 0x227   :  { %v1001_v32 = vmul.f32 %v5620_v11, %v5620_v11  ;;  %v980_v33 = vadd.f32 %v979_v23, %v978_v14  ;;  %v981_v34 = vrot.slane %v5622_v25, 4  ;;  %v4426_v28 = vld [vmem:[#allocation16 + $0x560] sm:$0xf0] }
 0x228   :  { %2738 = vmatpush.bf16.msra.mxu1 %v4461_v8  ;;  %2705 = vmatpush.bf16.msrb.mxu2 %v4521_v16  ;;  %v4924_v8 = vld [vmem:[#allocation16 + $0x204] sm:$0xf] }
 0x229   :  { %v1005_v41 = vrot.slane %v1001_v32, 4  ;;  %v994_v42 = vmul.f32 %v980_v33, %v5580_v24  ;;  %v982_v43 = vadd.f32 %v981_v34, %v5622_v25  ;;  %2726 = vmatpush.bf16.msra.mxu0 %v4173_v10  ;;  %v4429_v33 = vor.u32 %v5028_v27, %v4426_v28  ;;  %v4940_v34 = vld [vmem:[#allocation16 + $0x284] sm:$0xf] }
 0x22a   :  { %v963_v49 = vpop.f32.mrf.mxu2  ;;  %v4074_v10 = vld [vmem:[#allocation16 + $0x2a0] sm:$0xf0] }
 0x22b   :  { %v1006_v55 = vadd.f32 %v1005_v41, %v1001_v32  ;;  %v5630_v56 = vsub.f32 %v5612_v36, %v994_v42  ;;  %v983_v57 = vrot.slane %v982_v43, 2  ;;  %v5633_v58 = vadd.f32 %v963_v49, %v5615_v51  ;;  %v4010_v9 = vld [vmem:[#allocation16 + $0x220] sm:$0xf0] }
 0x22c   :  { %v926_v59 = vpop.f32.mrf.mxu3  ;;  %v939_v46 = vpop.f32.mrf.mxu0  ;;  %v3821_v51 = vor.u32 %v4876_v62, %v3818_v63  ;;  %v3789_v32 = vor.u32 %v4868_v21, %v3786_v22  ;;  %2750 = vmatpush.bf16.msra.mxu2 %v4749_v31  ;;  %v4077_v41 = vor.u32 %v4940_v34, %v4074_v10  ;;  %v4717_v42 = vor.u32 %v5100_v38, %v4714_v39  ;;  %v5092_v63 = vld [vmem:[#allocation16 + $0x744] sm:$0xf] }
 0x22d   :  { %v1007_v2 = vrot.slane %v1006_v55, 2  ;;  %v1002_v3 = vmul.f32 %v5630_v56, %v5630_v56  ;;  %v984_v36 = vadd.f32 %v983_v57, %v982_v43  ;;  %v987_v7 = vrot.slane %v5633_v58, 4  ;;  %2727 = vmatpush.bf16.msra.mxu0 %v4141_v61  ;;  %v4860_v43 = vld [vmem:[#allocation16 + $0x4] sm:$0xf]  ;;  %2739 = vmatpush.bf16.msra.mxu1 %v4429_v33 }
 0x22e   :  { %2716 = vmatpush.bf16.msrb.mxu3 %v3821_v51  ;;  %v3757_v52 = vor.u32 %v4860_v43, %v3754_v44  ;;  %v4932_v57 = vld [vmem:[#allocation16 + $0x244] sm:$0xf] }
 0x22f   :  { %v1008_v12 = vadd.f32 %v1007_v2, %v1006_v55  ;;  %v1011_v13 = vrot.slane %v1002_v3, 4  ;;  %v985_v14 = vrot.slane %v984_v36, 1  ;;  %v988_v47 = vadd.f32 %v987_v7, %v5633_v58  ;;  %v4042_v59 = vld [vmem:[#allocation16 + $0x260] sm:$0xf0] }
 0x230   :  { %v4397_v55 = vor.u32 %v5020_v45, %v4394_v53  ;;  %v4045_v62 = vor.u32 %v4932_v57, %v4042_v59  ;;  %2751 = vmatpush.bf16.msra.mxu2 %v4717_v42  ;;  %v5012_v2 = vld [vmem:[#allocation16 + $0x4c4] sm:$0xf] }
 0x231   :  { %v1009_v23 = vrot.slane %v1008_v12, 1  ;;  %v1012_v26 = vadd.f32 %v1011_v13, %v1002_v3  ;;  %v986_v5 = vadd.f32 %v985_v14, %v984_v36  ;;  %v989_v29 = vrot.slane %v988_v47, 2  ;;  %2728 = vmatpush.bf16.msra.mxu0 %v4109_v19  ;;  %v4362_v3 = vld [vmem:[#allocation16 + $0x4e0] sm:$0xf0] }
 0x232   :  { %v965_v30 = vpop.f32.mrf.mxu2  ;;  %2717 = vmatpush.bf16.msrb.mxu3 %v3789_v32  ;;  %2740 = vmatpush.bf16.msra.mxu1 %v4397_v55  ;;  %v4365_v51 = vor.u32 %v5012_v2, %v4362_v3  ;;  %v5084_v0 = vld [vmem:[#allocation16 + $0x704] sm:$0xf]  ;;  %v4013_v14 = vor.u32 %v4924_v8, %v4010_v9 }
 0x233   :  { %v1010_v35 = vadd.f32 %v1009_v23, %v1008_v12  ;;  %v1013_v37 = vrot.slane %v1012_v26, 2  ;;  %v995_v15 = vmul.f32 %v986_v5, %v5580_v24  ;;  %v990_v40 = vadd.f32 %v989_v29, %v988_v47  ;;  %v4650_v16 = vld [vmem:[#allocation16 + $0x720] sm:$0xf0] }
 0x234   :  { %v4653_v18 = vor.u32 %v5084_v0, %v4650_v16  ;;  %v5004_v47 = vld [vmem:[#allocation16 + $0x484] sm:$0xf] }
 0x235   :  { %v1029_v48 = vmul.f32 %v1010_v35, %v5580_v24  ;;  %v1014_v49 = vadd.f32 %v1013_v37, %v1012_v26  ;;  %v5642_v50 = vsub.f32 %v5622_v25, %v995_v15  ;;  %v991_v54 = vrot.slane %v990_v40, 1  ;;  %2729 = vmatpush.bf16.msra.mxu0 %v4077_v41  ;;  %v4682_v25 = vld [vmem:[#allocation16 + $0x760] sm:$0xf0] }
 0x236   :  { %2718 = vmatpush.bf16.msrb.mxu3 %v3757_v52  ;;  %v4685_v7 = vor.u32 %v5092_v63, %v4682_v25  ;;  %v4330_v19 = vld [vmem:[#allocation16 + $0x4a0] sm:$0xf0]  ;;  %2741 = vmatpush.bf16.msra.mxu1 %v4365_v51 }
 0x237   :  { %v5644_v46 = vadd.f32 0.8, %v1029_v48  ;;  %v1015_v60 = vrot.slane %v1014_v49, 1  ;;  %v1003_v61 = vmul.f32 %v5642_v50, %v5642_v50  ;;  %v992_v1 = vadd.f32 %v991_v54, %v990_v40  ;;  %v5076_v26 = vld [vmem:[#allocation16 + $0x6c4] sm:$0xf] }
 0x238   :  { %2752 = vmatpush.bf16.msra.mxu2 %v4685_v7  ;;  %v4333_v23 = vor.u32 %v5004_v47, %v4330_v19  ;;  %v4618_v5 = vld [vmem:[#allocation16 + $0x6e0] sm:$0xf0]  ;;  %v5661_v48 = vld [vmem:[#allocation13] sm:$0xf]  ;;  %v3984_v19 = vld [vmem:[#allocation16 + $0x1c8] sm:$0xf] }
 0x239   :  { %5143 = vrsqrt.f32 %v5644_v46  ;;  %v1016_v36 = vadd.f32 %v1015_v60, %v1014_v49  ;;  %v1017_v4 = vrot.slane %v1003_v61, 4  ;;  %v996_v6 = vmul.f32 %v992_v1, %v5580_v24  ;;  %2730 = vmatpush.bf16.msra.mxu0 %v4045_v62  ;;  %v4996_v31 = vld [vmem:[#allocation16 + $0x444] sm:$0xf]  ;;  %v5667_v60 = vld [vmem:[#allocation14] sm:$0xf] }
 0x23a   :  { %v4621_v30 = vor.u32 %v5076_v26, %v4618_v5  ;;  %v4298_v32 = vld [vmem:[#allocation16 + $0x460] sm:$0xf0]  ;;  %2742 = vmatpush.bf16.msra.mxu1 %v4333_v23  ;;  %vm1043_vm13 = vweird.f32 %v5644_v46  ;;  %v1082_v25 = vperm.slane %v5661_v48, 0 }
 0x23b   :  { %v1030_v12 = vmul.f32 %v1016_v36, %v5580_v24  ;;  %v1018_v13 = vadd.f32 %v1017_v4, %v1003_v61  ;;  %v5652_v17 = vsub.f32 %v5633_v58, %v996_v6  ;;  %v4301_v34 = vor.u32 %v4996_v31, %v4298_v32  ;;  %v5068_v37 = vld [vmem:[#allocation16 + $0x684] sm:$0xf]  ;;  %v4913_v31 = vld [vmem:[#allocation16 + $0x1a4] sm:$0xf0] }
 0x23c   :  { %2753 = vmatpush.bf16.msra.mxu2 %v4653_v18  ;;  %v4586_v15 = vld [vmem:[#allocation16 + $0x6a0] sm:$0xf0]  ;;  %v1095_v6 = vperm.slane %v5667_v60, 0 }
 0x23d   :  { %v5654_v20 = vadd.f32 0.8, %v1030_v12  ;;  %v1019_v21 = vrot.slane %v1018_v13, 2  ;;  %v1004_v22 = vmul.f32 %v5652_v17, %v5652_v17  ;;  %2731 = vmatpush.bf16.msra.mxu0 %v4013_v14  ;;  %v4589_v41 = vor.u32 %v5068_v37, %v4586_v15  ;;  %v4988_v42 = vld [vmem:[#allocation16 + $0x404] sm:$0xf] }
 0x23e   :  { %2743 = vmatpush.bf16.msra.mxu1 %v4301_v34  ;;  %v4266_v45 = vld [vmem:[#allocation16 + $0x420] sm:$0xf0] }
 0x23f   :  { %v5144_v27 = vpop.eup %5143  ;;  %5145 = vrsqrt.f32 %v5654_v20  ;;  %v1020_v58 = vadd.f32 %v1019_v21, %v1018_v13  ;;  %v1023_v29 = vrot.slane %v1004_v22, 4  ;;  %v4269_v55 = vor.u32 %v4988_v42, %v4266_v45  ;;  %v5060_v57 = vld [vmem:[#allocation16 + $0x644] sm:$0xf]  ;;  %v4921_v21 = vld [vmem:[#allocation16 + $0x1e4] sm:$0xf0] }
 0x240   :  { %v1038_v28 = vmul.f32 %v5144_v27, %v5644_v46  ;;  %2754 = vmatpush.bf16.msra.mxu2 %v4621_v30  ;;  %vm1044_vm12 = vweird.f32 %v5144_v27  ;;  %v4554_v59 = vld [vmem:[#allocation16 + $0x660] sm:$0xf0]  ;;  %vm1053_vm0 = vweird.f32 %v5654_v20  ;;  %v3952_v30 = vld [vmem:[#allocation16 + $0x188] sm:$0xf]  ;;  %v1084_v42 = vperm.slane %v5661_v48, 2 }
 0x241   :  { %v1021_v33 = vrot.slane %v1020_v58, 1  ;;  %v1024_v35 = vadd.f32 %v1023_v29, %v1004_v22  ;;  %v4557_v1 = vor.u32 %v5060_v57, %v4554_v59  ;;  %vm1045_vm14 = vmor %vm1043_vm13, %vm1044_vm12  ;;  %v5052_v36 = vld [vmem:[#allocation16 + $0x604] sm:$0xf]  ;;  %v3953_v15 = vor.u32 %v4913_v31, %v3952_v30 }
 0x242   :  { %v1039_v10 = vmul.f32 %v5144_v27, %v1038_v28  ;;  %2744 = vmatpush.bf16.msra.mxu1 %v4269_v55  ;;  %v4522_v7 = vld [vmem:[#allocation16 + $0x620] sm:$0xf0]  ;;  %v1097_v57 = vperm.slane %v5667_v60, 2 }
 0x243   :  { %v1022_v38 = vadd.f32 %v1021_v33, %v1020_v58  ;;  %v1025_v40 = vrot.slane %v1024_v35, 2  ;;  %v4525_v9 = vor.u32 %v5052_v36, %v4522_v7  ;;  %v3985_v58 = vor.u32 %v4921_v21, %v3984_v19  ;;  %v3824_v21 = vld [vmem:[#allocation16 + $0x88] sm:$0xf] }
 0x244   :  { %v1040_v39 = vmul.f32 0.5, %v1039_v10  ;;  %2755 = vmatpush.bf16.msra.mxu2 %v4589_v41  ;;  %v4240_v10 = vld [vmem:[#allocation16 + $0x3c8] sm:$0xf]  ;;  %v1085_v7 = vperm.slane %v5661_v48, 3 }
 0x245   :  { %v5146_v43 = vpop.eup %5145  ;;  %v1031_v44 = vmul.f32 %v1022_v38, %v5580_v24  ;;  %v1026_v53 = vadd.f32 %v1025_v40, %v1024_v35  ;;  %v4985_v35 = vld [vmem:[#allocation16 + $0x3e4] sm:$0xf0] }
 0x246   :  { %v1041_v49 = vsub.f32 1.5, %v1040_v39  ;;  %v1048_v52 = vmul.f32 %v5146_v43, %v5654_v20  ;;  %vm1054_vm15 = vweird.f32 %v5146_v43  ;;  %v1096_v20 = vperm.slane %v5667_v60, 1  ;;  %v3920_v39 = vld [vmem:[#allocation16 + $0x148] sm:$0xf] }
 0x247   :  { %v5665_v54 = vadd.f32 0.8, %v1031_v44  ;;  %v1027_v63 = vrot.slane %v1026_v53, 1  ;;  %vm1055_vm1 = vmor %vm1053_vm0, %vm1054_vm15  ;;  %v4905_v40 = vld [vmem:[#allocation16 + $0x164] sm:$0xf0]  ;;  %v4241_v44 = vor.u32 %v4985_v35, %v4240_v10 }
 0x248   :  { %v1042_v61 = vmul.f32 %v5144_v27, %v1041_v49  ;;  %v1049_v62 = vmul.f32 %v5146_v43, %v1048_v52  ;;  %2756 = vmatpush.bf16.msra.mxu2 %v4557_v1  ;;  %v4208_v52 = vld [vmem:[#allocation16 + $0x388] sm:$0xf] }
 0x249   :  { %5147 = vrsqrt.f32 %v5665_v54  ;;  %v1028_v3 = vadd.f32 %v1027_v63, %v1026_v53  ;;  %vm1063_vm5 = vweird.f32 %v5665_v54  ;;  %v4977_v53 = vld [vmem:[#allocation16 + $0x3a4] sm:$0xf0] }
 0x24a   :  { %v1046_v2 = vsel %vm1045_vm14, %v5144_v27, %v1042_v61  ;;  %v1050_v46 = vmul.f32 0.5, %v1049_v62  ;;  %v3888_v61 = vld [vmem:[#allocation16 + $0x108] sm:$0xf] }
 0x24b   :  { %v1077_v4 = vmul.f32 %v1046_v2, %v5620_v11  ;;  %v1032_v8 = vmul.f32 %v1028_v3, %v5580_v24  ;;  %v1083_v11 = vperm.slane %v5661_v48, 1  ;;  %v4897_v62 = vld [vmem:[#allocation16 + $0x124] sm:$0xf0] }
 0x24c   :  { %v1051_v51 = vsub.f32 1.5, %v1050_v46  ;;  %2757 = vmatpush.bf16.msra.mxu2 %v4525_v9  ;;  %v4176_v2 = vld [vmem:[#allocation16 + $0x348] sm:$0xf] }
 0x24d   :  { %v1090_v0 = vmul.f32 %v1082_v25, %v1077_v4  ;;  %v5675_v13 = vadd.f32 0.8, %v1032_v8  ;;  %v4209_v25 = vor.u32 %v4977_v53, %v4208_v52  ;;  %v4969_v46 = vld [vmem:[#allocation16 + $0x364] sm:$0xf0] }
 0x24e   :  { %v1052_v12 = vmul.f32 %v5146_v43, %v1051_v51  ;;  %v3856_v4 = vld [vmem:[#allocation16 + $0xc8] sm:$0xf] }
 0x24f   :  { %v5148_v14 = vpop.eup %5147  ;;  %v1103_v16 = vadd.f32 %v1095_v6, %v1090_v0  ;;  %5149 = vrsqrt.f32 %v5675_v13  ;;  %vm1073_vm8 = vweird.f32 %v5675_v13  ;;  %v4889_v6 = vld [vmem:[#allocation16 + $0xe4] sm:$0xf0] }
 0x250   :  { %v1056_v18 = vsel %vm1055_vm1, %v5146_v43, %v1052_v12  ;;  %v1058_v47 = vmul.f32 %v5148_v14, %v5665_v54  ;;  %vm1064_vm3 = vweird.f32 %v5148_v14  ;;  %v3921_v54 = vor.u32 %v4905_v40, %v3920_v39  ;;  %v4496_v51 = vld [vmem:[#allocation16 + $0x5c8] sm:$0xf] }
 0x251   :  { %vm1107_vm2 = vcmp.ge.f32.partialorder %v1103_v16, 0.0  ;;  %v1111_v22 = vmul.f32 0.2, %v1103_v16  ;;  %v1078_v23 = vmul.f32 %v1056_v18, %v5630_v56  ;;  %vm1065_vm6 = vmor %vm1063_vm5, %vm1064_vm3  ;;  %v5049_v8 = vld [vmem:[#allocation16 + $0x5e4] sm:$0xf0]  ;;  %v4177_v12 = vor.u32 %v4969_v46, %v4176_v2 }
 0x252   :  { %v1059_v26 = vmul.f32 %v5148_v14, %v1058_v47  ;;  %v3857_v47 = vor.u32 %v4889_v6, %v3856_v4  ;;  %v4497_v19 = vor.u32 %v5049_v8, %v4496_v51  ;;  %v5033_v35 = vld [vmem:[#allocation16 + $0x564] sm:$0xf0]  ;;  %v4909_v6 = vld [vmem:[#allocation16 + $0x18c] sm:$0xf] }
 0x253   :  { %v1115_v5 = vsel %vm1107_vm2, %v1103_v16, %v1111_v22  ;;  %v1091_v27 = vmul.f32 %v1083_v11, %v1078_v23  ;;  %v1098_v16 = vperm.slane %v5667_v60, 3  ;;  %v4144_v11 = vld [vmem:[#allocation16 + $0x308] sm:$0xf] }
 0x254   :  { %v5682_v28 = vpack.c.bf16 %v1115_v5, %v1115_v5  ;;  %v1060_v29 = vmul.f32 0.5, %v1059_v26  ;;  %v4881_v23 = vld [vmem:[#allocation16 + $0xa4] sm:$0xf0] }
 0x255   :  { %v1104_v32 = vadd.f32 %v1096_v20, %v1091_v27  ;;  %v5150_v33 = vpop.eup %5149  ;;  %v4464_v20 = vld [vmem:[#allocation16 + $0x588] sm:$0xf]  ;;  %v3825_v30 = vor.u32 %v4881_v23, %v3824_v21  ;;  %v4901_v21 = vld [vmem:[#allocation16 + $0x14c] sm:$0xf] }
 0x256   :  { %v1061_v34 = vsub.f32 1.5, %v1060_v29  ;;  %2667 = vmatmul.bf16.vlgmr.msra.gmra.mxu3 %v5682_v28  ;;  %v1068_v37 = vmul.f32 %v5150_v33, %v5675_v13  ;;  %vm1074_vm7 = vweird.f32 %v5150_v33  ;;  %v4961_v13 = vld [vmem:[#allocation16 + $0x324] sm:$0xf0] }
 0x257   :  { %vm1108_vm4 = vcmp.ge.f32.partialorder %v1104_v32, 0.0  ;;  %v1112_v56 = vmul.f32 0.2, %v1104_v32  ;;  %2763 = vmatpush.bf16.msra.mxu3 %v3985_v58  ;;  %vm1075_vm9 = vmor %vm1073_vm8, %vm1074_vm7  ;;  %v5041_v26 = vld [vmem:[#allocation16 + $0x5a4] sm:$0xf0]  ;;  %v4145_v5 = vor.u32 %v4961_v13, %v4144_v11 }
 0x258   :  { %v1062_v38 = vmul.f32 %v5148_v14, %v1061_v34  ;;  %v1069_v43 = vmul.f32 %v5150_v33, %v1068_v37  ;;  %v4112_v27 = vld [vmem:[#allocation16 + $0x2c8] sm:$0xf]  ;;  %v4465_v31 = vor.u32 %v5041_v26, %v4464_v20  ;;  %v4242_v11 = vld [vmem:[#allocation16 + $0x3e8] sm:$0xf0] }
 0x259   :  { %v1116_v41 = vsel %vm1108_vm4, %v1104_v32, %v1112_v56  ;;  %v4752_v60 = vld [vmem:[#allocation16 + $0x7c8] sm:$0xf] }
 0x25a   :  { %v5688_v45 = vpack.c.bf16 %v1116_v41, %v1116_v41  ;;  %v1066_v49 = vsel %vm1065_vm6, %v5148_v14, %v1062_v38  ;;  %v1070_v59 = vmul.f32 0.5, %v1069_v43  ;;  %v5113_v29 = vld [vmem:[#allocation16 + $0x7e4] sm:$0xf0] }
 0x25b   :  { %v1079_v55 = vmul.f32 %v1066_v49, %v5642_v50  ;;  %2764 = vmatpush.bf16.msra.mxu3 %v3953_v15  ;;  %v3889_v50 = vor.u32 %v4897_v62, %v3888_v61  ;;  %v3792_v32 = vld [vmem:[#allocation16 + $0x48] sm:$0xf]  ;;  %v4753_v15 = vor.u32 %v5113_v29, %v4752_v60 }
 0x25c   :  { %2680 = vmatmul.bf16.vlgmr.msrb.gmra.mxu0 %v5688_v45  ;;  %v1071_v1 = vsub.f32 1.5, %v1070_v59  ;;  %v4432_v34 = vld [vmem:[#allocation16 + $0x548] sm:$0xf]  ;;  %v4917_v59 = vld [vmem:[#allocation16 + $0x1cc] sm:$0xf] }
 0x25d   :  { %v1092_v63 = vmul.f32 %v1084_v42, %v1079_v55  ;;  %2776 = vmatpush.bf16.msrb.mxu0 %v4241_v44  ;;  %v4080_v38 = vld [vmem:[#allocation16 + $0x288] sm:$0xf]  ;;  %v4433_v42 = vor.u32 %v5033_v35, %v4432_v34 }
 0x25e   :  { %v1072_v36 = vmul.f32 %v5150_v33, %v1071_v1  ;;  %v4945_v39 = vld [vmem:[#allocation16 + $0x2a4] sm:$0xf0] }
 0x25f   :  { %v1105_v3 = vadd.f32 %v1097_v57, %v1092_v63  ;;  %2765 = vmatpush.bf16.msra.mxu3 %v3921_v54  ;;  %v4720_v43 = vld [vmem:[#allocation16 + $0x788] sm:$0xf]  ;;  %v4081_v57 = vor.u32 %v4945_v39, %v4080_v38  ;;  %v3986_v54 = vld [vmem:[#allocation16 + $0x1e8] sm:$0xf0] }
 0x260   :  { %v1076_v0 = vsel %vm1075_vm9, %v5150_v33, %v1072_v36  ;;  %v4873_v33 = vld [vmem:[#allocation16 + $0x64] sm:$0xf0] }
 0x261   :  { %vm1109_vm10 = vcmp.ge.f32.partialorder %v1105_v3, 0.0  ;;  %v1113_v9 = vmul.f32 0.2, %v1105_v3  ;;  %2777 = vmatpush.bf16.msrb.mxu0 %v4209_v25  ;;  %v1080_v14 = vmul.f32 %v1076_v0, %v5652_v17  ;;  %v4953_v17 = vld [vmem:[#allocation16 + $0x2e4] sm:$0xf0]  ;;  %v3793_v41 = vor.u32 %v4873_v33, %v3792_v32 }
 0x262   :  { %v4113_v56 = vor.u32 %v4953_v17, %v4112_v27  ;;  %v5105_v44 = vld [vmem:[#allocation16 + $0x7a4] sm:$0xf0]  ;;  %v4210_v17 = vld [vmem:[#allocation16 + $0x3a8] sm:$0xf0] }
 0x263   :  { %v1117_v18 = vsel %vm1109_vm10, %v1105_v3, %v1113_v9  ;;  %2766 = vmatpush.bf16.msra.mxu3 %v3889_v50  ;;  %v1093_v48 = vmul.f32 %v1085_v7, %v1080_v14  ;;  %v3760_v49 = vld [vmem:[#allocation16 + $0x8] sm:$0xf]  ;;  %v4721_v61 = vor.u32 %v5105_v44, %v4720_v43  ;;  %v3989_v3 = vor.u32 %v4917_v59, %v3986_v54  ;;  %v3954_v7 = vld [vmem:[#allocation16 + $0x1a8] sm:$0xf0] }
 0x264   :  { %v5697_v22 = vpack.c.bf16 %v1117_v18, %v1117_v18  ;;  %v4865_v52 = vld [vmem:[#allocation16 + $0x24] sm:$0xf0]  ;;  %v3957_v13 = vor.u32 %v4909_v6, %v3954_v7  ;;  %v3890_v32 = vld [vmem:[#allocation16 + $0x128] sm:$0xf0] }
 0x265   :  { %2778 = vmatpush.bf16.msrb.mxu0 %v4177_v12  ;;  %v1106_v58 = vadd.f32 %v1098_v16, %v1093_v48  ;;  %v4400_v53 = vld [vmem:[#allocation16 + $0x508] sm:$0xf]  ;;  %v3761_v1 = vor.u32 %v4865_v52, %v3760_v49  ;;  %v4981_v16 = vld [vmem:[#allocation16 + $0x3cc] sm:$0xf] }
 0x266   :  { %2693 = vmatmul.bf16.vlgmr.msrb.gmra.mxu1 %v5697_v22  ;;  %2719 = vmatmul.bf16.vlgmr.msrb.gmra.mxu3 %v5682_v28  ;;  %v5025_v55 = vld [vmem:[#allocation16 + $0x524] sm:$0xf0]  ;;  %v3922_v48 = vld [vmem:[#allocation16 + $0x168] sm:$0xf0]  ;;  %v4245_v20 = vor.u32 %v4981_v16, %v4242_v11 }
 0x267   :  { %2767 = vmatpush.bf16.msra.mxu3 %v3857_v47  ;;  %2789 = vmatpush.bf16.msrb.mxu1 %v4497_v19  ;;  %vm1110_vm11 = vcmp.ge.f32.partialorder %v1106_v58, 0.0  ;;  %v1114_v10 = vmul.f32 0.2, %v1106_v58  ;;  %v4048_v62 = vld [vmem:[#allocation16 + $0x248] sm:$0xf]  ;;  %v4401_v25 = vor.u32 %v5025_v55, %v4400_v53  ;;  %v3925_v60 = vor.u32 %v4901_v21, %v3922_v48 }
 0x268   :  { %v4937_v63 = vld [vmem:[#allocation16 + $0x264] sm:$0xf0]  ;;  %v3858_v43 = vld [vmem:[#allocation16 + $0xe8] sm:$0xf0] }
 0x269   :  { %2779 = vmatpush.bf16.msrb.mxu0 %v4145_v5  ;;  %v1118_v37 = vsel %vm1110_vm11, %v1106_v58, %v1114_v10  ;;  %v4688_v2 = vld [vmem:[#allocation16 + $0x748] sm:$0xf]  ;;  %v4049_v4 = vor.u32 %v4937_v63, %v4048_v62  ;;  %v4973_v58 = vld [vmem:[#allocation16 + $0x38c] sm:$0xf] }
 0x26a   :  { %v5701_v40 = vpack.c.bf16 %v1118_v37, %v1118_v37  ;;  %v5097_v46 = vld [vmem:[#allocation16 + $0x764] sm:$0xf0]  ;;  %v4213_v34 = vor.u32 %v4973_v58, %v4210_v17  ;;  %v4965_v37 = vld [vmem:[#allocation16 + $0x34c] sm:$0xf] }
 0x26b   :  { %2768 = vmatpush.bf16.msra.mxu3 %v3825_v30  ;;  %2790 = vmatpush.bf16.msrb.mxu1 %v4465_v31  ;;  %v4368_v36 = vld [vmem:[#allocation16 + $0x4c8] sm:$0xf]  ;;  %v4689_v51 = vor.u32 %v5097_v46, %v4688_v2  ;;  %v4893_v31 = vld [vmem:[#allocation16 + $0x10c] sm:$0xf] }
 0x26c   :  { %2732 = vmatmul.bf16.vlgmr.msra.gmra.mxu0 %v5688_v45  ;;  %2706 = vmatmul.bf16.vlgmr.msrb.gmra.mxu2 %v5701_v40  ;;  %v5017_v50 = vld [vmem:[#allocation16 + $0x4e4] sm:$0xf0]  ;;  %v3893_v38 = vor.u32 %v4893_v31, %v3890_v32  ;;  %v5045_v44 = vld [vmem:[#allocation16 + $0x5cc] sm:$0xf] }
 0x26d   :  { %2780 = vmatpush.bf16.msrb.mxu0 %v4113_v56  ;;  %2802 = vmatpush.bf16.msrb.mxu2 %v4753_v15  ;;  %v4016_v8 = vld [vmem:[#allocation16 + $0x208] sm:$0xf]  ;;  %v4369_v12 = vor.u32 %v5017_v50, %v4368_v36  ;;  %v4178_v15 = vld [vmem:[#allocation16 + $0x368] sm:$0xf0] }
 0x26e   :  { %v4929_v9 = vld [vmem:[#allocation16 + $0x224] sm:$0xf0]  ;;  %v4498_v49 = vld [vmem:[#allocation16 + $0x5e8] sm:$0xf0]  ;;  %v4181_v53 = vor.u32 %v4965_v37, %v4178_v15 }
 0x26f   :  { %2769 = vmatpush.bf16.msra.mxu3 %v3793_v41  ;;  %2791 = vmatpush.bf16.msrb.mxu1 %v4433_v42  ;;  %v4656_v0 = vld [vmem:[#allocation16 + $0x708] sm:$0xf]  ;;  %v4017_v19 = vor.u32 %v4929_v9, %v4016_v8  ;;  %v4885_v42 = vld [vmem:[#allocation16 + $0xcc] sm:$0xf]  ;;  %v4501_v63 = vor.u32 %v5045_v44, %v4498_v49 }
 0x270   :  { %v5089_v14 = vld [vmem:[#allocation16 + $0x724] sm:$0xf0]  ;;  %v4957_v54 = vld [vmem:[#allocation16 + $0x30c] sm:$0xf]  ;;  %v3861_v62 = vor.u32 %v4885_v42, %v3858_v43  ;;  %v4914_v42 = vld [vmem:[#allocation16 + $0x1ac] sm:$0xf0] }
 0x271   :  { %2781 = vmatpush.bf16.msrb.mxu0 %v4081_v57  ;;  %2803 = vmatpush.bf16.msrb.mxu2 %v4721_v61  ;;  %v4336_v18 = vld [vmem:[#allocation16 + $0x488] sm:$0xf]  ;;  %v4657_v23 = vor.u32 %v5089_v14, %v4656_v0  ;;  %v4146_v61 = vld [vmem:[#allocation16 + $0x328] sm:$0xf0] }
 0x272   :  { %v5009_v47 = vld [vmem:[#allocation16 + $0x4a4] sm:$0xf0]  ;;  %v5037_v2 = vld [vmem:[#allocation16 + $0x58c] sm:$0xf]  ;;  %v4149_v36 = vor.u32 %v4957_v54, %v4146_v61 }
 0x273   :  { %2770 = vmatpush.bf16.msra.mxu3 %v3761_v1  ;;  %2792 = vmatpush.bf16.msrb.mxu1 %v4401_v25  ;;  %v4624_v26 = vld [vmem:[#allocation16 + $0x6c8] sm:$0xf]  ;;  %v4337_v5 = vor.u32 %v5009_v47, %v4336_v18  ;;  %v4877_v1 = vld [vmem:[#allocation16 + $0x8c] sm:$0xf] }
 0x274   :  { %v5081_v27 = vld [vmem:[#allocation16 + $0x6e4] sm:$0xf0]  ;;  %v3826_v25 = vld [vmem:[#allocation16 + $0xa8] sm:$0xf0] }
 0x275   :  { %2782 = vmatpush.bf16.msrb.mxu0 %v4049_v4  ;;  %2804 = vmatpush.bf16.msrb.mxu2 %v4689_v51  ;;  %v4304_v29 = vld [vmem:[#allocation16 + $0x448] sm:$0xf]  ;;  %v4625_v33 = vor.u32 %v5081_v27, %v4624_v26  ;;  %v4466_v46 = vld [vmem:[#allocation16 + $0x5a8] sm:$0xf0]  ;;  %v3829_v51 = vor.u32 %v4877_v1, %v3826_v25  ;;  %v3928_v1 = vld [vmem:[#allocation16 + $0x150] sm:$0xf] }
 0x276   :  { %2745 = vmatmul.bf16.vlgmr.msra.gmra.mxu1 %v5697_v22  ;;  %2771 = vmatmul.bf16.vlgmr.msra.gmra.mxu3 %v5682_v28  ;;  %v5001_v30 = vld [vmem:[#allocation16 + $0x464] sm:$0xf0]  ;;  %v4949_v6 = vld [vmem:[#allocation16 + $0x2cc] sm:$0xf]  ;;  %v4469_v8 = vor.u32 %v5037_v2, %v4466_v46  ;;  %v4906_v25 = vld [vmem:[#allocation16 + $0x16c] sm:$0xf0] }
 0x277   :  { %2815 = vmatpush.bf16.msrb.mxu3 %v3989_v3  ;;  %2793 = vmatpush.bf16.msrb.mxu1 %v4369_v12  ;;  %v4592_v10 = vld [vmem:[#allocation16 + $0x688] sm:$0xf]  ;;  %v4305_v35 = vor.u32 %v5001_v30, %v4304_v29  ;;  %v4114_v7 = vld [vmem:[#allocation16 + $0x2e8] sm:$0xf0]  ;;  %v3992_v29 = vld [vmem:[#allocation16 + $0x1d0] sm:$0xf] }
 0x278   :  { %v5073_v56 = vld [vmem:[#allocation16 + $0x6a4] sm:$0xf0]  ;;  %v5109_v9 = vld [vmem:[#allocation16 + $0x7cc] sm:$0xf]  ;;  %v4117_v18 = vor.u32 %v4949_v6, %v4114_v7  ;;  %v4922_v30 = vld [vmem:[#allocation16 + $0x1ec] sm:$0xf0]  ;;  %v3929_v7 = vor.u32 %v4906_v25, %v3928_v1 }
 0x279   :  { %2783 = vmatpush.bf16.msrb.mxu0 %v4017_v19  ;;  %2805 = vmatpush.bf16.msrb.mxu2 %v4657_v23  ;;  %v4272_v39 = vld [vmem:[#allocation16 + $0x408] sm:$0xf]  ;;  %v4593_v52 = vor.u32 %v5073_v56, %v4592_v10  ;;  %v4754_v0 = vld [vmem:[#allocation16 + $0x7e8] sm:$0xf0]  ;;  %v3993_v37 = vor.u32 %v4922_v30, %v3992_v29  ;;  %v4978_v6 = vld [vmem:[#allocation16 + $0x3ac] sm:$0xf0] }
 0x27a   :  { %v4993_v41 = vld [vmem:[#allocation16 + $0x424] sm:$0xf0]  ;;  %v4869_v12 = vld [vmem:[#allocation16 + $0x4c] sm:$0xf]  ;;  %v4757_v47 = vor.u32 %v5109_v9, %v4754_v0  ;;  %v3896_v9 = vld [vmem:[#allocation16 + $0x110] sm:$0xf] }
 0x27b   :  { %2816 = vmatpush.bf16.msrb.mxu3 %v3957_v13  ;;  %2794 = vmatpush.bf16.msrb.mxu1 %v4337_v5  ;;  %v4560_v55 = vld [vmem:[#allocation16 + $0x648] sm:$0xf]  ;;  %v4273_v57 = vor.u32 %v4993_v41, %v4272_v39  ;;  %v3794_v14 = vld [vmem:[#allocation16 + $0x68] sm:$0xf0]  ;;  %v3960_v41 = vld [vmem:[#allocation16 + $0x190] sm:$0xf] }
 0x27c   :  { %2784 = vmatmul.bf16.vlgmr.msrb.gmra.mxu0 %v5688_v45  ;;  %2758 = vmatmul.bf16.vlgmr.msra.gmra.mxu2 %v5701_v40  ;;  %v5065_v59 = vld [vmem:[#allocation16 + $0x664] sm:$0xf0]  ;;  %v5029_v16 = vld [vmem:[#allocation16 + $0x54c] sm:$0xf]  ;;  %v3797_v48 = vor.u32 %v4869_v12, %v3794_v14  ;;  %v3961_v54 = vor.u32 %v4914_v42, %v3960_v41  ;;  %v4898_v0 = vld [vmem:[#allocation16 + $0x12c] sm:$0xf0] }
 0x27d   :  { %2828 = vmatpush.bf16.msra.mxu0 %v4245_v20  ;;  %2806 = vmatpush.bf16.msrb.mxu2 %v4625_v33  ;;  %v4561_v3 = vor.u32 %v5065_v59, %v4560_v55  ;;  %v4528_v50 = vld [vmem:[#allocation16 + $0x608] sm:$0xf]  ;;  %v4434_v11 = vld [vmem:[#allocation16 + $0x568] sm:$0xf0]  ;;  %v4986_v59 = vld [vmem:[#allocation16 + $0x3ec] sm:$0xf0] }
 0x27e   :  { %v5057_v4 = vld [vmem:[#allocation16 + $0x624] sm:$0xf0]  ;;  %v4941_v19 = vld [vmem:[#allocation16 + $0x28c] sm:$0xf]  ;;  %v4437_v23 = vor.u32 %v5029_v16, %v4434_v11  ;;  %v4120_v41 = vld [vmem:[#allocation16 + $0x2d0] sm:$0xf] }
 0x27f   :  { %2817 = vmatpush.bf16.msrb.mxu3 %v3925_v60  ;;  %2795 = vmatpush.bf16.msrb.mxu1 %v4305_v35  ;;  %v4529_v13 = vor.u32 %v5057_v4, %v4528_v50  ;;  %v4082_v21 = vld [vmem:[#allocation16 + $0x2a8] sm:$0xf0]  ;;  %v4216_v4 = vld [vmem:[#allocation16 + $0x390] sm:$0xf] }
 0x280   :  { %v5101_v20 = vld [vmem:[#allocation16 + $0x78c] sm:$0xf]  ;;  %v4085_v60 = vor.u32 %v4941_v19, %v4082_v21  ;;  %v4217_v14 = vor.u32 %v4978_v6, %v4216_v4  ;;  %v3897_v19 = vor.u32 %v4898_v0, %v3896_v9  ;;  %v4954_v42 = vld [vmem:[#allocation16 + $0x2ec] sm:$0xf0] }
 0x281   :  { %2829 = vmatpush.bf16.msra.mxu0 %v4213_v34  ;;  %2807 = vmatpush.bf16.msrb.mxu2 %v4593_v52  ;;  %v4722_v26 = vld [vmem:[#allocation16 + $0x7a8] sm:$0xf0]  ;;  %v4946_v1 = vld [vmem:[#allocation16 + $0x2ac] sm:$0xf0] }
 0x282   :  { %v4861_v5 = vld [vmem:[#allocation16 + $0xc] sm:$0xf]  ;;  %v4725_v31 = vor.u32 %v5101_v20, %v4722_v26  ;;  %v4890_v20 = vld [vmem:[#allocation16 + $0xec] sm:$0xf0] }
 0x283   :  { %2818 = vmatpush.bf16.msrb.mxu3 %v3893_v38  ;;  %2796 = vmatpush.bf16.msrb.mxu1 %v4273_v57  ;;  %v3762_v27 = vld [vmem:[#allocation16 + $0x28] sm:$0xf0]  ;;  %v4248_v57 = vld [vmem:[#allocation16 + $0x3d0] sm:$0xf] }
 0x284   :  { %v5021_v58 = vld [vmem:[#allocation16 + $0x50c] sm:$0xf]  ;;  %v3765_v34 = vor.u32 %v4861_v5, %v3762_v27  ;;  %v4249_v46 = vor.u32 %v4986_v59, %v4248_v57  ;;  %v4504_v26 = vld [vmem:[#allocation16 + $0x5d0] sm:$0xf] }
 0x285   :  { %2830 = vmatpush.bf16.msra.mxu0 %v4181_v53  ;;  %2808 = vmatpush.bf16.msrb.mxu2 %v4561_v3  ;;  %v4402_v17 = vld [vmem:[#allocation16 + $0x528] sm:$0xf0]  ;;  %v5050_v5 = vld [vmem:[#allocation16 + $0x5ec] sm:$0xf0] }
 0x286   :  { %2797 = vmatmul.bf16.vlgmr.msrb.gmra.mxu1 %v5697_v22  ;;  %v4933_v32 = vld [vmem:[#allocation16 + $0x24c] sm:$0xf]  ;;  %v4405_v10 = vor.u32 %v5021_v58, %v4402_v17  ;;  %v4440_v57 = vld [vmem:[#allocation16 + $0x550] sm:$0xf] }
 0x287   :  { %2819 = vmatpush.bf16.msrb.mxu3 %v3861_v62  ;;  %2841 = vmatpush.bf16.msra.mxu1 %v4501_v63  ;;  %v4050_v33 = vld [vmem:[#allocation16 + $0x268] sm:$0xf0]  ;;  %v5034_v59 = vld [vmem:[#allocation16 + $0x56c] sm:$0xf0] }
 0x288   :  { %v5093_v35 = vld [vmem:[#allocation16 + $0x74c] sm:$0xf]  ;;  %v4053_v39 = vor.u32 %v4933_v32, %v4050_v33  ;;  %v4152_v32 = vld [vmem:[#allocation16 + $0x310] sm:$0xf] }
 0x289   :  { %2831 = vmatpush.bf16.msra.mxu0 %v4149_v36  ;;  %2809 = vmatpush.bf16.msrb.mxu2 %v4529_v13  ;;  %v4690_v56 = vld [vmem:[#allocation16 + $0x768] sm:$0xf0]  ;;  %v4962_v33 = vld [vmem:[#allocation16 + $0x32c] sm:$0xf0] }
 0x28a   :  { %v5013_v15 = vld [vmem:[#allocation16 + $0x4cc] sm:$0xf]  ;;  %v4693_v43 = vor.u32 %v5093_v35, %v4690_v56  ;;  %v4472_v35 = vld [vmem:[#allocation16 + $0x590] sm:$0xf] }
 0x28b   :  { %2820 = vmatpush.bf16.msrb.mxu3 %v3829_v51  ;;  %2842 = vmatpush.bf16.msra.mxu1 %v4469_v8  ;;  %v4370_v38 = vld [vmem:[#allocation16 + $0x4e8] sm:$0xf0]  ;;  %v5042_v56 = vld [vmem:[#allocation16 + $0x5ac] sm:$0xf0] }
 0x28c   :  { %2810 = vmatmul.bf16.vlgmr.msrb.gmra.mxu2 %v5701_v40  ;;  %v4925_v44 = vld [vmem:[#allocation16 + $0x20c] sm:$0xf]  ;;  %v4373_v53 = vor.u32 %v5013_v15, %v4370_v38  ;;  %v4153_v38 = vor.u32 %v4962_v33, %v4152_v32  ;;  %v4408_v4 = vld [vmem:[#allocation16 + $0x510] sm:$0xf]  ;;  %v4902_v33 = vld [vmem:[#allocation16 + $0x154] sm:$0xf] }
 0x28d   :  { %2832 = vmatpush.bf16.msra.mxu0 %v4117_v18  ;;  %2854 = vmatpush.bf16.msra.mxu2 %v4757_v47  ;;  %v4018_v49 = vld [vmem:[#allocation16 + $0x228] sm:$0xf0]  ;;  %v4184_v18 = vld [vmem:[#allocation16 + $0x350] sm:$0xf] }
 0x28e   :  { %v5085_v52 = vld [vmem:[#allocation16 + $0x70c] sm:$0xf]  ;;  %v4021_v63 = vor.u32 %v4925_v44, %v4018_v49  ;;  %v4970_v47 = vld [vmem:[#allocation16 + $0x36c] sm:$0xf0]  ;;  %v4473_v44 = vor.u32 %v5042_v56, %v4472_v35 }
 0x28f   :  { %2821 = vmatpush.bf16.msrb.mxu3 %v3797_v48  ;;  %2843 = vmatpush.bf16.msra.mxu1 %v4437_v23  ;;  %v4658_v55 = vld [vmem:[#allocation16 + $0x728] sm:$0xf0]  ;;  %v3864_v23 = vld [vmem:[#allocation16 + $0xd0] sm:$0xf]  ;;  %v4185_v58 = vor.u32 %v4970_v47, %v4184_v18 }
 0x290   :  { %v5005_v61 = vld [vmem:[#allocation16 + $0x48c] sm:$0xf]  ;;  %v4661_v2 = vor.u32 %v5085_v52, %v4658_v55  ;;  %v3865_v30 = vor.u32 %v4890_v20, %v3864_v23  ;;  %v4760_v49 = vld [vmem:[#allocation16 + $0x7d0] sm:$0xf] }
 0x291   :  { %2833 = vmatpush.bf16.msra.mxu0 %v4085_v60  ;;  %2855 = vmatpush.bf16.msra.mxu2 %v4725_v31  ;;  %v4338_v62 = vld [vmem:[#allocation16 + $0x4a8] sm:$0xf0]  ;;  %v4505_v31 = vor.u32 %v5050_v5, %v4504_v26  ;;  %v5114_v52 = vld [vmem:[#allocation16 + $0x7ec] sm:$0xf0] }
 0x292   :  { %v5077_v3 = vld [vmem:[#allocation16 + $0x6cc] sm:$0xf]  ;;  %v4341_v36 = vor.u32 %v5005_v61, %v4338_v62  ;;  %v4874_v55 = vld [vmem:[#allocation16 + $0x6c] sm:$0xf0]  ;;  %v4121_v61 = vor.u32 %v4954_v42, %v4120_v41  ;;  %v4761_v62 = vor.u32 %v5114_v52, %v4760_v49  ;;  %v4218_v42 = vld [vmem:[#allocation16 + $0x3b0] sm:$0xf0] }
 0x293   :  { %2822 = vmatpush.bf16.msrb.mxu3 %v3765_v34  ;;  %2844 = vmatpush.bf16.msra.mxu1 %v4405_v10  ;;  %v4626_v50 = vld [vmem:[#allocation16 + $0x6e8] sm:$0xf0]  ;;  %v3832_v34 = vld [vmem:[#allocation16 + $0x90] sm:$0xf]  ;;  %v4894_v49 = vld [vmem:[#allocation16 + $0x114] sm:$0xf] }
 0x294   :  { %v4997_v51 = vld [vmem:[#allocation16 + $0x44c] sm:$0xf]  ;;  %v4629_v12 = vor.u32 %v5077_v3, %v4626_v50  ;;  %v4882_v10 = vld [vmem:[#allocation16 + $0xac] sm:$0xf0]  ;;  %v3898_v52 = vld [vmem:[#allocation16 + $0x130] sm:$0xf0] }
 0x295   :  { %2834 = vmatpush.bf16.msra.mxu0 %v4053_v39  ;;  %2856 = vmatpush.bf16.msra.mxu2 %v4693_v43  ;;  %v4306_v8 = vld [vmem:[#allocation16 + $0x468] sm:$0xf0]  ;;  %v3833_v43 = vor.u32 %v4882_v10, %v3832_v34  ;;  %v5106_v3 = vld [vmem:[#allocation16 + $0x7ac] sm:$0xf0]  ;;  %v3930_v34 = vld [vmem:[#allocation16 + $0x170] sm:$0xf0] }
 0x296   :  { %2823 = vmatmul.bf16.vlgmr.msrb.gmra.mxu3 %v5682_v28  ;;  %v5069_v16 = vld [vmem:[#allocation16 + $0x68c] sm:$0xf]  ;;  %v4309_v11 = vor.u32 %v4997_v51, %v4306_v8  ;;  %v4866_v50 = vld [vmem:[#allocation16 + $0x2c] sm:$0xf0]  ;;  %v3994_v51 = vld [vmem:[#allocation16 + $0x1f0] sm:$0xf0]  ;;  %v3933_v41 = vor.u32 %v4902_v33, %v3930_v34 }
 0x297   :  { %2867 = vmatpush.bf16.msra.mxu3 %v3993_v37  ;;  %2845 = vmatpush.bf16.msra.mxu1 %v4373_v53  ;;  %v4594_v13 = vld [vmem:[#allocation16 + $0x6a8] sm:$0xf0]  ;;  %v3800_v53 = vld [vmem:[#allocation16 + $0x50] sm:$0xf]  ;;  %v4942_v33 = vld [vmem:[#allocation16 + $0x294] sm:$0xf] }
 0x298   :  { %v4989_v21 = vld [vmem:[#allocation16 + $0x40c] sm:$0xf]  ;;  %v4597_v27 = vor.u32 %v5069_v16, %v4594_v13  ;;  %v3801_v25 = vor.u32 %v4874_v55, %v3800_v53  ;;  %v5026_v6 = vld [vmem:[#allocation16 + $0x52c] sm:$0xf0]  ;;  %v4090_v34 = vld [vmem:[#allocation16 + $0x2b0] sm:$0xf0] }
 0x299   :  { %2835 = vmatpush.bf16.msra.mxu0 %v4021_v63  ;;  %2857 = vmatpush.bf16.msra.mxu2 %v4661_v2  ;;  %v4274_v48 = vld [vmem:[#allocation16 + $0x428] sm:$0xf0]  ;;  %v4088_v63 = vld [vmem:[#allocation16 + $0x290] sm:$0xf]  ;;  %v4441_v2 = vor.u32 %v5034_v59, %v4440_v57 }
 0x29a   :  { %v4277_v17 = vor.u32 %v4989_v21, %v4274_v48  ;;  %v5061_v60 = vld [vmem:[#allocation16 + $0x64c] sm:$0xf]  ;;  %v4089_v8 = vor.u32 %v4946_v1, %v4088_v63  ;;  %v4056_v0 = vld [vmem:[#allocation16 + $0x250] sm:$0xf]  ;;  %v4910_v21 = vld [vmem:[#allocation16 + $0x194] sm:$0xf]  ;;  %v3901_v63 = vor.u32 %v4894_v49, %v3898_v52 }
 0x29b   :  { %2868 = vmatpush.bf16.msra.mxu3 %v3961_v54  ;;  %2846 = vmatpush.bf16.msra.mxu1 %v4341_v36  ;;  %v4562_v29 = vld [vmem:[#allocation16 + $0x668] sm:$0xf0]  ;;  %v3768_v36 = vld [vmem:[#allocation16 + $0x10] sm:$0xf]  ;;  %v3962_v48 = vld [vmem:[#allocation16 + $0x1b0] sm:$0xf0] }
 0x29c   :  { %2836 = vmatmul.bf16.vlgmr.msra.gmra.mxu0 %v5688_v45  ;;  %v4565_v37 = vor.u32 %v5061_v60, %v4562_v29  ;;  %v5053_v15 = vld [vmem:[#allocation16 + $0x60c] sm:$0xf]  ;;  %v4938_v16 = vld [vmem:[#allocation16 + $0x26c] sm:$0xf0]  ;;  %v4982_v60 = vld [vmem:[#allocation16 + $0x3d4] sm:$0xf]  ;;  %v3965_v29 = vor.u32 %v4910_v21, %v3962_v48 }
 0x29d   :  { %2880 = vmatpush.bf16.msrb.mxu0 %v4249_v46  ;;  %2858 = vmatpush.bf16.msra.mxu2 %v4629_v12  ;;  %v4530_v39 = vld [vmem:[#allocation16 + $0x628] sm:$0xf0]  ;;  %v4728_v46 = vld [vmem:[#allocation16 + $0x790] sm:$0xf]  ;;  %v3769_v12 = vor.u32 %v4866_v50, %v3768_v36  ;;  %v4057_v23 = vor.u32 %v4938_v16, %v4056_v0  ;;  %v4506_v36 = vld [vmem:[#allocation16 + $0x5f0] sm:$0xf0] }
 0x29e   :  { %v4533_v54 = vor.u32 %v5053_v15, %v4530_v39  ;;  %v4729_v9 = vor.u32 %v5106_v3, %v4728_v46  ;;  %v5098_v13 = vld [vmem:[#allocation16 + $0x76c] sm:$0xf0]  ;;  %v4974_v39 = vld [vmem:[#allocation16 + $0x394] sm:$0xf] }
 0x29f   :  { %2869 = vmatpush.bf16.msra.mxu3 %v3929_v7  ;;  %2847 = vmatpush.bf16.msra.mxu1 %v4309_v11  ;;  %v4918_v7 = vld [vmem:[#allocation16 + $0x1d4] sm:$0xf]  ;;  %v4696_v11 = vld [vmem:[#allocation16 + $0x750] sm:$0xf]  ;;  %v4221_v57 = vor.u32 %v4974_v39, %v4218_v42  ;;  %v4000_v42 = vld [vmem:[#allocation16 + $0x1d8] sm:$0xf] }
 0x2a0   :  { %v3997_v18 = vor.u32 %v4918_v7, %v3994_v51  ;;  %v4376_v47 = vld [vmem:[#allocation16 + $0x4d0] sm:$0xf]  ;;  %v4697_v20 = vor.u32 %v5098_v13, %v4696_v11  ;;  %v3866_v46 = vld [vmem:[#allocation16 + $0xf0] sm:$0xf0] }
 0x2a1   :  { %2881 = vmatpush.bf16.msrb.mxu0 %v4217_v14  ;;  %2859 = vmatpush.bf16.msra.mxu2 %v4597_v27  ;;  %v4409_v14 = vor.u32 %v5026_v6, %v4408_v4  ;;  %v4024_v26 = vld [vmem:[#allocation16 + $0x210] sm:$0xf]  ;;  %v5046_v3 = vld [vmem:[#allocation16 + $0x5d4] sm:$0xf] }
 0x2a2   :  { %v4930_v5 = vld [vmem:[#allocation16 + $0x22c] sm:$0xf0]  ;;  %v4958_v0 = vld [vmem:[#allocation16 + $0x314] sm:$0xf] }
 0x2a3   :  { %2870 = vmatpush.bf16.msra.mxu3 %v3897_v19  ;;  %2848 = vmatpush.bf16.msra.mxu1 %v4277_v17  ;;  %v5018_v19 = vld [vmem:[#allocation16 + $0x4ec] sm:$0xf0]  ;;  %v4025_v10 = vor.u32 %v4930_v5, %v4024_v26  ;;  %v3834_v16 = vld [vmem:[#allocation16 + $0xb0] sm:$0xf0] }
 0x2a4   :  { %v4377_v27 = vor.u32 %v5018_v19, %v4376_v47  ;;  %v5090_v17 = vld [vmem:[#allocation16 + $0x72c] sm:$0xf0]  ;;  %v5038_v11 = vld [vmem:[#allocation16 + $0x594] sm:$0xf] }
 0x2a5   :  { %2882 = vmatpush.bf16.msrb.mxu0 %v4185_v58  ;;  %2860 = vmatpush.bf16.msra.mxu2 %v4565_v37  ;;  %v4664_v58 = vld [vmem:[#allocation16 + $0x710] sm:$0xf]  ;;  %v4474_v13 = vld [vmem:[#allocation16 + $0x5b0] sm:$0xf0] }
 0x2a6   :  { %2849 = vmatmul.bf16.vlgmr.msra.gmra.mxu1 %v5697_v22  ;;  %v5010_v32 = vld [vmem:[#allocation16 + $0x4ac] sm:$0xf0]  ;;  %v4665_v35 = vor.u32 %v5090_v17, %v4664_v58  ;;  %v4950_v48 = vld [vmem:[#allocation16 + $0x2d4] sm:$0xf]  ;;  %v4477_v26 = vor.u32 %v5038_v11, %v4474_v13 }
 0x2a7   :  { %2871 = vmatpush.bf16.msra.mxu3 %v3865_v30  ;;  %2893 = vmatpush.bf16.msrb.mxu1 %v4505_v31  ;;  %v4250_v30 = vld [vmem:[#allocation16 + $0x3f0] sm:$0xf0]  ;;  %v4344_v31 = vld [vmem:[#allocation16 + $0x490] sm:$0xf] }
 0x2a8   :  { %v4253_v56 = vor.u32 %v4982_v60, %v4250_v30  ;;  %v4345_v37 = vor.u32 %v5010_v32, %v4344_v31  ;;  %v4632_v15 = vld [vmem:[#allocation16 + $0x6d0] sm:$0xf]  ;;  %v5110_v5 = vld [vmem:[#allocation16 + $0x7d4] sm:$0xf] }
 0x2a9   :  { %2883 = vmatpush.bf16.msrb.mxu0 %v4153_v38  ;;  %2861 = vmatpush.bf16.msra.mxu2 %v4533_v54  ;;  %v5082_v38 = vld [vmem:[#allocation16 + $0x6ec] sm:$0xf0]  ;;  %v4870_v58 = vld [vmem:[#allocation16 + $0x54] sm:$0xf] }
 0x2aa   :  { %v4633_v53 = vor.u32 %v5082_v38, %v4632_v15  ;;  %v4600_v55 = vld [vmem:[#allocation16 + $0x690] sm:$0xf]  ;;  %v3802_v17 = vld [vmem:[#allocation16 + $0x70] sm:$0xf0] }
 0x2ab   :  { %2872 = vmatpush.bf16.msra.mxu3 %v3833_v43  ;;  %2894 = vmatpush.bf16.msrb.mxu1 %v4473_v44  ;;  %v4312_v43 = vld [vmem:[#allocation16 + $0x450] sm:$0xf]  ;;  %v5030_v60 = vld [vmem:[#allocation16 + $0x554] sm:$0xf] }
 0x2ac   :  { %2862 = vmatmul.bf16.vlgmr.msra.gmra.mxu2 %v5701_v40  ;;  %v5002_v44 = vld [vmem:[#allocation16 + $0x46c] sm:$0xf0]  ;;  %v4862_v15 = vld [vmem:[#allocation16 + $0x14] sm:$0xf] }
 0x2ad   :  { %2884 = vmatpush.bf16.msrb.mxu0 %v4121_v61  ;;  %2906 = vmatpush.bf16.msrb.mxu2 %v4761_v62  ;;  %v4313_v59 = vor.u32 %v5002_v44, %v4312_v43  ;;  %v5074_v54 = vld [vmem:[#allocation16 + $0x6ac] sm:$0xf0]  ;;  %v4966_v61 = vld [vmem:[#allocation16 + $0x354] sm:$0xf]  ;;  %v4923_v43 = vld [vmem:[#allocation16 + $0x1f4] sm:$0xf0]  ;;  %v4093_v44 = vor.u32 %v4942_v33, %v4090_v34 }
 0x2ae   :  { %v4186_v62 = vld [vmem:[#allocation16 + $0x370] sm:$0xf0]  ;;  %v4280_v1 = vld [vmem:[#allocation16 + $0x410] sm:$0xf]  ;;  %v4601_v50 = vor.u32 %v5074_v54, %v4600_v55 }
 0x2af   :  { %2873 = vmatpush.bf16.msra.mxu3 %v3801_v25  ;;  %2895 = vmatpush.bf16.msrb.mxu1 %v4441_v2  ;;  %v4994_v25 = vld [vmem:[#allocation16 + $0x42c] sm:$0xf0]  ;;  %v4886_v2 = vld [vmem:[#allocation16 + $0xd4] sm:$0xf]  ;;  %v4189_v4 = vor.u32 %v4966_v61, %v4186_v62  ;;  %v4001_v61 = vor.u32 %v4923_v43, %v4000_v42 }
 0x2b0   :  { %v4281_v6 = vor.u32 %v4994_v25, %v4280_v1  ;;  %v4568_v7 = vld [vmem:[#allocation16 + $0x650] sm:$0xf]  ;;  %v3770_v38 = vld [vmem:[#allocation16 + $0x30] sm:$0xf0]  ;;  %v3968_v1 = vld [vmem:[#allocation16 + $0x198] sm:$0xf] }
 0x2b1   :  { %2885 = vmatpush.bf16.msrb.mxu0 %v4089_v8  ;;  %2907 = vmatpush.bf16.msrb.mxu2 %v4729_v9  ;;  %v5066_v51 = vld [vmem:[#allocation16 + $0x66c] sm:$0xf0]  ;;  %v3869_v8 = vor.u32 %v4886_v2, %v3866_v46  ;;  %v4509_v9 = vor.u32 %v5046_v3, %v4506_v36  ;;  %v5022_v39 = vld [vmem:[#allocation16 + $0x514] sm:$0xf]  ;;  %v4915_v25 = vld [vmem:[#allocation16 + $0x1b4] sm:$0xf0] }
 0x2b2   :  { %v4536_v47 = vld [vmem:[#allocation16 + $0x610] sm:$0xf]  ;;  %v4934_v52 = vld [vmem:[#allocation16 + $0x254] sm:$0xf] }
 0x2b3   :  { %2874 = vmatpush.bf16.msra.mxu3 %v3769_v12  ;;  %2896 = vmatpush.bf16.msrb.mxu1 %v4409_v14  ;;  %v4154_v12 = vld [vmem:[#allocation16 + $0x330] sm:$0xf0]  ;;  %v5058_v21 = vld [vmem:[#allocation16 + $0x62c] sm:$0xf0] }
 0x2b4   :  { %v4878_v14 = vld [vmem:[#allocation16 + $0x94] sm:$0xf]  ;;  %v4157_v19 = vor.u32 %v4958_v0, %v4154_v12  ;;  %v4537_v30 = vor.u32 %v5058_v21, %v4536_v47  ;;  %v3936_v12 = vld [vmem:[#allocation16 + $0x158] sm:$0xf] }
 0x2b5   :  { %2886 = vmatpush.bf16.msrb.mxu0 %v4057_v23  ;;  %2908 = vmatpush.bf16.msrb.mxu2 %v4697_v20  ;;  %v4122_v23 = vld [vmem:[#allocation16 + $0x2f0] sm:$0xf0]  ;;  %v3837_v20 = vor.u32 %v4878_v14, %v3834_v16  ;;  %v4907_v14 = vld [vmem:[#allocation16 + $0x174] sm:$0xf0] }
 0x2b6   :  { %2875 = vmatmul.bf16.vlgmr.msra.gmra.mxu3 %v5682_v28  ;;  %v4125_v31 = vor.u32 %v4950_v48, %v4122_v23  ;;  %v4698_v54 = vld [vmem:[#allocation16 + $0x770] sm:$0xf0]  ;;  %v4224_v21 = vld [vmem:[#allocation16 + $0x398] sm:$0xf]  ;;  %v3937_v48 = vor.u32 %v4907_v14, %v3936_v12 }
 0x2b7   :  { %2919 = vmatpush.bf16.msrb.mxu3 %v3997_v18  ;;  %2897 = vmatpush.bf16.msrb.mxu1 %v4377_v27  ;;  %v4569_v18 = vor.u32 %v5066_v51, %v4568_v7  ;;  %v4762_v27 = vld [vmem:[#allocation16 + $0x7f0] sm:$0xf0]  ;;  %v4256_v7 = vld [vmem:[#allocation16 + $0x3d8] sm:$0xf]  ;;  %v3969_v51 = vor.u32 %v4915_v25, %v3968_v1 }
 0x2b8   :  { %v4765_v32 = vor.u32 %v5110_v5, %v4762_v27  ;;  %v5014_v62 = vld [vmem:[#allocation16 + $0x4d4] sm:$0xf]  ;;  %v4979_v23 = vld [vmem:[#allocation16 + $0x3b4] sm:$0xf0] }
 0x2b9   :  { %2887 = vmatpush.bf16.msrb.mxu0 %v4025_v10  ;;  %2909 = vmatpush.bf16.msrb.mxu2 %v4665_v35  ;;  %v3805_v10 = vor.u32 %v4870_v58, %v3802_v17  ;;  %v4926_v3 = vld [vmem:[#allocation16 + $0x214] sm:$0xf]  ;;  %v3904_v5 = vld [vmem:[#allocation16 + $0x118] sm:$0xf] }
 0x2ba   :  { %v4026_v36 = vld [vmem:[#allocation16 + $0x230] sm:$0xf0]  ;;  %v4899_v27 = vld [vmem:[#allocation16 + $0x134] sm:$0xf0] }
 0x2bb   :  { %2920 = vmatpush.bf16.msrb.mxu3 %v3965_v29  ;;  %2898 = vmatpush.bf16.msrb.mxu1 %v4345_v37  ;;  %v4442_v29 = vld [vmem:[#allocation16 + $0x570] sm:$0xf0]  ;;  %v4029_v16 = vor.u32 %v4926_v3, %v4026_v36  ;;  %v3905_v33 = vor.u32 %v4899_v27, %v3904_v5  ;;  %v4955_v3 = vld [vmem:[#allocation16 + $0x2f4] sm:$0xf0]  ;;  %v4919_v27 = vld [vmem:[#allocation16 + $0x1dc] sm:$0xf] }
 0x2bc   :  { %2888 = vmatmul.bf16.vlgmr.msrb.gmra.mxu0 %v5688_v45  ;;  %v4445_v35 = vor.u32 %v5030_v60, %v4442_v29  ;;  %v4730_v37 = vld [vmem:[#allocation16 + $0x7b0] sm:$0xf0]  ;;  %v4225_v60 = vor.u32 %v4979_v23, %v4224_v21  ;;  %v3776_v21 = vld [vmem:[#allocation16 + $0x18] sm:$0xf] }
 0x2bd   :  { %2932 = vmatpush.bf16.msra.mxu0 %v4253_v56  ;;  %2910 = vmatpush.bf16.msrb.mxu2 %v4633_v53  ;;  %v5102_v56 = vld [vmem:[#allocation16 + $0x794] sm:$0xf]  ;;  %v3773_v53 = vor.u32 %v4862_v15, %v3770_v38  ;;  %v5051_v15 = vld [vmem:[#allocation16 + $0x5f4] sm:$0xf0] }
 0x2be   :  { %v4733_v49 = vor.u32 %v5102_v56, %v4730_v37  ;;  %v4346_v0 = vld [vmem:[#allocation16 + $0x4b0] sm:$0xf0]  ;;  %v4891_v56 = vld [vmem:[#allocation16 + $0xf4] sm:$0xf0] }
 0x2bf   :  { %2921 = vmatpush.bf16.msrb.mxu3 %v3933_v41  ;;  %2899 = vmatpush.bf16.msrb.mxu1 %v4313_v59  ;;  %v4410_v41 = vld [vmem:[#allocation16 + $0x530] sm:$0xf0]  ;;  %v4512_v37 = vld [vmem:[#allocation16 + $0x5d8] sm:$0xf] }
 0x2c0   :  { %v4413_v55 = vor.u32 %v5022_v39, %v4410_v41  ;;  %v5094_v59 = vld [vmem:[#allocation16 + $0x754] sm:$0xf]  ;;  %v4416_v23 = vld [vmem:[#allocation16 + $0x518] sm:$0xf] }
 0x2c1   :  { %2933 = vmatpush.bf16.msra.mxu0 %v4221_v57  ;;  %2911 = vmatpush.bf16.msrb.mxu2 %v4601_v50  ;;  %v4058_v57 = vld [vmem:[#allocation16 + $0x270] sm:$0xf0]  ;;  %v4701_v46 = vor.u32 %v5094_v59, %v4698_v54  ;;  %v4480_v59 = vld [vmem:[#allocation16 + $0x598] sm:$0xf] }
 0x2c2   :  { %v4061_v2 = vor.u32 %v4934_v52, %v4058_v57  ;;  %v5078_v47 = vld [vmem:[#allocation16 + $0x6d4] sm:$0xf]  ;;  %v4160_v52 = vld [vmem:[#allocation16 + $0x318] sm:$0xf] }
 0x2c3   :  { %2922 = vmatpush.bf16.msrb.mxu3 %v3901_v63  ;;  %2900 = vmatpush.bf16.msrb.mxu1 %v4281_v6  ;;  %v4378_v63 = vld [vmem:[#allocation16 + $0x4f0] sm:$0xf0]  ;;  %v4883_v57 = vld [vmem:[#allocation16 + $0xb4] sm:$0xf0] }
 0x2c4   :  { %v4381_v50 = vor.u32 %v5014_v62, %v4378_v63  ;;  %v4666_v6 = vld [vmem:[#allocation16 + $0x730] sm:$0xf0]  ;;  %v5043_v54 = vld [vmem:[#allocation16 + $0x5b4] sm:$0xf0] }
 0x2c5   :  { %2934 = vmatpush.bf16.msra.mxu0 %v4189_v4  ;;  %2912 = vmatpush.bf16.msrb.mxu2 %v4569_v18  ;;  %v5086_v4 = vld [vmem:[#allocation16 + $0x714] sm:$0xf] }
 0x2c6   :  { %2901 = vmatmul.bf16.vlgmr.msrb.gmra.mxu1 %v5697_v22  ;;  %v4669_v11 = vor.u32 %v5086_v4, %v4666_v6  ;;  %v5070_v17 = vld [vmem:[#allocation16 + $0x694] sm:$0xf]  ;;  %v4768_v4 = vld [vmem:[#allocation16 + $0x7d8] sm:$0xf] }
 0x2c7   :  { %2923 = vmatpush.bf16.msrb.mxu3 %v3869_v8  ;;  %2945 = vmatpush.bf16.msra.mxu1 %v4509_v9  ;;  %v4987_v8 = vld [vmem:[#allocation16 + $0x3f4] sm:$0xf0]  ;;  %v5006_v9 = vld [vmem:[#allocation16 + $0x494] sm:$0xf] }
 0x2c8   :  { %v4257_v13 = vor.u32 %v4987_v8, %v4256_v7  ;;  %v4349_v18 = vor.u32 %v5006_v9, %v4346_v0  ;;  %v4990_v34 = vld [vmem:[#allocation16 + $0x414] sm:$0xf]  ;;  %v5115_v6 = vld [vmem:[#allocation16 + $0x7f4] sm:$0xf0] }
 0x2c9   :  { %2935 = vmatpush.bf16.msra.mxu0 %v4157_v19  ;;  %2913 = vmatpush.bf16.msrb.mxu2 %v4537_v30  ;;  %v4634_v19 = vld [vmem:[#allocation16 + $0x6f0] sm:$0xf0]  ;;  %v3808_v7 = vld [vmem:[#allocation16 + $0x58] sm:$0xf]  ;;  %v4769_v14 = vor.u32 %v5115_v6, %v4768_v4 }
 0x2ca   :  { %v4637_v58 = vor.u32 %v5078_v47, %v4634_v19  ;;  %v4602_v30 = vld [vmem:[#allocation16 + $0x6b0] sm:$0xf0]  ;;  %v4448_v8 = vld [vmem:[#allocation16 + $0x558] sm:$0xf] }
 0x2cb   :  { %2924 = vmatpush.bf16.msrb.mxu3 %v3837_v20  ;;  %2946 = vmatpush.bf16.msra.mxu1 %v4477_v26  ;;  %v4998_v20 = vld [vmem:[#allocation16 + $0x454] sm:$0xf]  ;;  %v4605_v38 = vor.u32 %v5070_v17, %v4602_v30  ;;  %v5035_v9 = vld [vmem:[#allocation16 + $0x574] sm:$0xf0] }
 0x2cc   :  { %2914 = vmatmul.bf16.vlgmr.msrb.gmra.mxu2 %v5701_v40  ;;  %v4314_v26 = vld [vmem:[#allocation16 + $0x470] sm:$0xf0]  ;;  %v4736_v47 = vld [vmem:[#allocation16 + $0x798] sm:$0xf] }
 0x2cd   :  { %2936 = vmatpush.bf16.msra.mxu0 %v4125_v31  ;;  %2958 = vmatpush.bf16.msra.mxu2 %v4765_v32  ;;  %v4317_v29 = vor.u32 %v4998_v20, %v4314_v26  ;;  %v4192_v31 = vld [vmem:[#allocation16 + $0x358] sm:$0xf]  ;;  %v5062_v42 = vld [vmem:[#allocation16 + $0x654] sm:$0xf] }
 0x2ce   :  { %v4971_v32 = vld [vmem:[#allocation16 + $0x374] sm:$0xf0]  ;;  %v4570_v43 = vld [vmem:[#allocation16 + $0x670] sm:$0xf0] }
 0x2cf   :  { %2925 = vmatpush.bf16.msrb.mxu3 %v3805_v10  ;;  %2947 = vmatpush.bf16.msra.mxu1 %v4445_v35  ;;  %v4282_v10 = vld [vmem:[#allocation16 + $0x430] sm:$0xf0]  ;;  %v3872_v35 = vld [vmem:[#allocation16 + $0xd8] sm:$0xf]  ;;  %v4193_v39 = vor.u32 %v4971_v32, %v4192_v31  ;;  %v4573_v63 = vor.u32 %v5062_v42, %v4570_v43 }
 0x2d0   :  { %v4285_v41 = vor.u32 %v4990_v34, %v4282_v10  ;;  %v5054_v1 = vld [vmem:[#allocation16 + $0x614] sm:$0xf]  ;;  %v5107_v19 = vld [vmem:[#allocation16 + $0x7b4] sm:$0xf0] }
 0x2d1   :  { %2937 = vmatpush.bf16.msra.mxu0 %v4093_v44  ;;  %2959 = vmatpush.bf16.msra.mxu2 %v4733_v49  ;;  %v3873_v44 = vor.u32 %v4891_v56, %v3872_v35  ;;  %v4513_v49 = vor.u32 %v5051_v15, %v4512_v37  ;;  %v5027_v20 = vld [vmem:[#allocation16 + $0x534] sm:$0xf0]  ;;  %v4911_v15 = vld [vmem:[#allocation16 + $0x19c] sm:$0xf] }
 0x2d2   :  { %v4417_v32 = vor.u32 %v5027_v20, %v4416_v23  ;;  %v4704_v34 = vld [vmem:[#allocation16 + $0x758] sm:$0xf]  ;;  %v4967_v23 = vld [vmem:[#allocation16 + $0x35c] sm:$0xf] }
 0x2d3   :  { %2926 = vmatpush.bf16.msrb.mxu3 %v3773_v53  ;;  %2948 = vmatpush.bf16.msra.mxu1 %v4413_v55  ;;  %v4963_v53 = vld [vmem:[#allocation16 + $0x334] sm:$0xf0]  ;;  %v4194_v20 = vld [vmem:[#allocation16 + $0x378] sm:$0xf0] }
 0x2d4   :  { %v3840_v55 = vld [vmem:[#allocation16 + $0x98] sm:$0xf]  ;;  %v4161_v25 = vor.u32 %v4963_v53, %v4160_v52  ;;  %v4983_v53 = vld [vmem:[#allocation16 + $0x3dc] sm:$0xf] }
 0x2d5   :  { %2938 = vmatpush.bf16.msra.mxu0 %v4061_v2  ;;  %2960 = vmatpush.bf16.msra.mxu2 %v4701_v46  ;;  %v4538_v2 = vld [vmem:[#allocation16 + $0x630] sm:$0xf0]  ;;  %v4128_v46 = vld [vmem:[#allocation16 + $0x2d8] sm:$0xf]  ;;  %v3841_v36 = vor.u32 %v4883_v57, %v3840_v55  ;;  %v4258_v57 = vld [vmem:[#allocation16 + $0x3f8] sm:$0xf0] }
 0x2d6   :  { %2927 = vmatmul.bf16.vlgmr.msrb.gmra.mxu3 %v5682_v28  ;;  %v4541_v0 = vor.u32 %v5054_v1, %v4538_v2  ;;  %v4129_v12 = vor.u32 %v4955_v3, %v4128_v46  ;;  %v5099_v10 = vld [vmem:[#allocation16 + $0x774] sm:$0xf0]  ;;  %v3938_v2 = vld [vmem:[#allocation16 + $0x178] sm:$0xf0] }
 0x2d7   :  { %2971 = vmatpush.bf16.msra.mxu3 %v4001_v61  ;;  %2949 = vmatpush.bf16.msra.mxu1 %v4381_v50  ;;  %v4481_v50 = vor.u32 %v5043_v54, %v4480_v59  ;;  %v4384_v56 = vld [vmem:[#allocation16 + $0x4d8] sm:$0xf] }
 0x2d8   :  { %v5019_v37 = vld [vmem:[#allocation16 + $0x4f4] sm:$0xf0] }
 0x2d9   :  { %2939 = vmatpush.bf16.msra.mxu0 %v4029_v16  ;;  %2961 = vmatpush.bf16.msra.mxu2 %v4669_v11  ;;  %v5721_v61 = vpop.f32.mrf.mxu3  ;;  %v5723_v62 = vpop.f32.mrf.mxu0  ;;  %v4096_v16 = vld [vmem:[#allocation16 + $0x298] sm:$0xf] }
 0x2da   :  { %v4947_v11 = vld [vmem:[#allocation16 + $0x2b4] sm:$0xf0] }
 0x2db   :  { %2972 = vmatpush.bf16.msra.mxu3 %v3969_v51  ;;  %2950 = vmatpush.bf16.msra.mxu1 %v4349_v18  ;;  %v4875_v51 = vld [vmem:[#allocation16 + $0x74] sm:$0xf0]  ;;  %v4449_v18 = vor.u32 %v5035_v9, %v4448_v8  ;;  %v4097_v17 = vor.u32 %v4947_v11, %v4096_v16  ;;  %v4226_v9 = vld [vmem:[#allocation16 + $0x3b8] sm:$0xf0] }
 0x2dc   :  { %2940 = vmatmul.bf16.vlgmr.msra.gmra.mxu0 %v5688_v45  ;;  %v4032_v42 = vld [vmem:[#allocation16 + $0x218] sm:$0xf]  ;;  %v4895_v16 = vld [vmem:[#allocation16 + $0x11c] sm:$0xf] }
 0x2dd   :  { %2984 = vmatpush.bf16.msrb.mxu0 %v4257_v13  ;;  %2962 = vmatpush.bf16.msra.mxu2 %v4637_v58  ;;  %v3809_v13 = vor.u32 %v4875_v51, %v3808_v7  ;;  %v4002_v58 = vld [vmem:[#allocation16 + $0x1f8] sm:$0xf0]  ;;  %v4931_v43 = vld [vmem:[#allocation16 + $0x234] sm:$0xf0] }
 0x2de   :  { %v4005_v35 = vor.u32 %v4919_v27, %v4002_v58  ;;  %v5091_v52 = vld [vmem:[#allocation16 + $0x734] sm:$0xf0]  ;;  %v4033_v46 = vor.u32 %v4931_v43, %v4032_v42  ;;  %v4975_v51 = vld [vmem:[#allocation16 + $0x39c] sm:$0xf] }
 0x2df   :  { %2973 = vmatpush.bf16.msra.mxu3 %v3937_v48  ;;  %2951 = vmatpush.bf16.msra.mxu1 %v4317_v29  ;;  %v4867_v48 = vld [vmem:[#allocation16 + $0x34] sm:$0xf0]  ;;  %v3906_v11 = vld [vmem:[#allocation16 + $0x138] sm:$0xf0] }
 0x2e0   :  { %v4064_v29 = vld [vmem:[#allocation16 + $0x258] sm:$0xf]  ;;  %v3777_v31 = vor.u32 %v4867_v48, %v3776_v21  ;;  %v4879_v42 = vld [vmem:[#allocation16 + $0x9c] sm:$0xf] }
 0x2e1   :  { %2985 = vmatpush.bf16.msrb.mxu0 %v4225_v60  ;;  %2963 = vmatpush.bf16.msra.mxu2 %v4605_v38  ;;  %v2670_v26 = vpop.f32.mrf.mxu3  ;;  %v2683_v5 = vpop.f32.mrf.mxu0  ;;  %v4737_v60 = vor.u32 %v5107_v19, %v4736_v47  ;;  %v3970_v38 = vld [vmem:[#allocation16 + $0x1b8] sm:$0xf0]  ;;  %v4352_v59 = vld [vmem:[#allocation16 + $0x498] sm:$0xf]  ;;  %v4229_v19 = vor.u32 %v4975_v51, %v4226_v9 }
 0x2e2   :  { %v3973_v55 = vor.u32 %v4911_v15, %v3970_v38  ;;  %v5011_v54 = vld [vmem:[#allocation16 + $0x4b4] sm:$0xf0]  ;;  %v3909_v5 = vor.u32 %v4895_v16, %v3906_v11  ;;  %v5031_v9 = vld [vmem:[#allocation16 + $0x55c] sm:$0xf] }
 0x2e3   :  { %2974 = vmatpush.bf16.msra.mxu3 %v3905_v33  ;;  %2952 = vmatpush.bf16.msra.mxu1 %v4285_v41  ;;  %v2694_v30 = vpop.f32.mrf.mxu1  ;;  %v4939_v33 = vld [vmem:[#allocation16 + $0x274] sm:$0xf0]  ;;  %v4705_v41 = vor.u32 %v5099_v10, %v4704_v34  ;;  %v4353_v4 = vor.u32 %v5011_v54, %v4352_v59  ;;  %v4197_v10 = vor.u32 %v4967_v23, %v4194_v20  ;;  %v5103_v23 = vld [vmem:[#allocation16 + $0x79c] sm:$0xf] }
 0x2e4   :  { %v4640_v6 = vld [vmem:[#allocation16 + $0x6d8] sm:$0xf]  ;;  %v4738_v20 = vld [vmem:[#allocation16 + $0x7b8] sm:$0xf0] }
 0x2e5   :  { %2986 = vmatpush.bf16.msrb.mxu0 %v4193_v39  ;;  %2964 = vmatpush.bf16.msra.mxu2 %v4573_v63  ;;  %v4065_v39 = vor.u32 %v4939_v33, %v4064_v29  ;;  %v5083_v7 = vld [vmem:[#allocation16 + $0x6f4] sm:$0xf0]  ;;  %v3874_v29 = vld [vmem:[#allocation16 + $0xf8] sm:$0xf0] }
 0x2e6   :  { %2953 = vmatmul.bf16.vlgmr.msra.gmra.mxu1 %v5697_v22  ;;  %v5075_v48 = vld [vmem:[#allocation16 + $0x6b4] sm:$0xf0] }
 0x2e7   :  { %2975 = vmatpush.bf16.msra.mxu3 %v3873_v44  ;;  %2997 = vmatpush.bf16.msrb.mxu1 %v4513_v49  ;;  %v4385_v44 = vor.u32 %v5019_v37, %v4384_v56  ;;  %v4672_v49 = vld [vmem:[#allocation16 + $0x718] sm:$0xf] }
 0x2e8   :  { %v4673_v3 = vor.u32 %v5091_v52, %v4672_v49  ;;  %v4288_v27 = vld [vmem:[#allocation16 + $0x418] sm:$0xf]  ;;  %v5039_v49 = vld [vmem:[#allocation16 + $0x59c] sm:$0xf] }
 0x2e9   :  { %2987 = vmatpush.bf16.msrb.mxu0 %v4161_v25  ;;  %2965 = vmatpush.bf16.msra.mxu2 %v4541_v0  ;;  %v5727_v63 = vpop.f32.mrf.mxu3  ;;  %v5729_v1 = vpop.f32.mrf.mxu0  ;;  %v4903_v25 = vld [vmem:[#allocation16 + $0x15c] sm:$0xf]  ;;  %v4320_v0 = vld [vmem:[#allocation16 + $0x458] sm:$0xf] }
 0x2ea   :  { %v3941_v8 = vor.u32 %v4903_v25, %v3938_v2  ;;  %v4995_v58 = vld [vmem:[#allocation16 + $0x434] sm:$0xf0]  ;;  %v4482_v52 = vld [vmem:[#allocation16 + $0x5b8] sm:$0xf0] }
 0x2eb   :  { %2976 = vmatpush.bf16.msra.mxu3 %v3841_v36  ;;  %2998 = vmatpush.bf16.msrb.mxu1 %v4481_v50  ;;  %v2696_v36 = vpop.f32.mrf.mxu1  ;;  %v4261_v50 = vor.u32 %v4983_v53, %v4258_v57  ;;  %v4576_v56 = vld [vmem:[#allocation16 + $0x658] sm:$0xf]  ;;  %v4951_v25 = vld [vmem:[#allocation16 + $0x2dc] sm:$0xf] }
 0x2ec   :  { %2966 = vmatmul.bf16.vlgmr.msra.gmra.mxu2 %v5701_v40  ;;  %v5067_v37 = vld [vmem:[#allocation16 + $0x674] sm:$0xf0]  ;;  %v4130_v2 = vld [vmem:[#allocation16 + $0x2f8] sm:$0xf0]  ;;  %v4485_v36 = vor.u32 %v5039_v49, %v4482_v52 }
 0x2ed   :  { %2988 = vmatpush.bf16.msrb.mxu0 %v4129_v12  ;;  %3010 = vmatpush.bf16.msrb.mxu2 %v4769_v14  ;;  %v5003_v12 = vld [vmem:[#allocation16 + $0x474] sm:$0xf0]  ;;  %v2682_v14 = vadd.f32 %v5723_v62, %v5721_v61  ;;  %v4887_v61 = vld [vmem:[#allocation16 + $0xdc] sm:$0xf]  ;;  %v4577_v53 = vor.u32 %v5067_v37, %v4576_v56 }
 0x2ee   :  { %v4321_v21 = vor.u32 %v5003_v12, %v4320_v0  ;;  %v3877_v15 = vor.u32 %v4887_v61, %v3874_v29  ;;  %v5059_v57 = vld [vmem:[#allocation16 + $0x634] sm:$0xf0]  ;;  %v4450_v0 = vld [vmem:[#allocation16 + $0x578] sm:$0xf0] }
 0x2ef   :  { %2977 = vmatpush.bf16.msra.mxu3 %v3809_v13  ;;  %2999 = vmatpush.bf16.msrb.mxu1 %v4449_v18  ;;  %v4641_v13 = vor.u32 %v5083_v7, %v4640_v6  ;;  %v4608_v18 = vld [vmem:[#allocation16 + $0x698] sm:$0xf]  ;;  %v2695_v47 = vadd.f32 %v2694_v30, %v2682_v14  ;;  %v2707_v26 = vpop.f32.mrf.mxu2  ;;  %v5047_v30 = vld [vmem:[#allocation16 + $0x5dc] sm:$0xf] }
 0x2f0   :  { %v4871_v6 = vld [vmem:[#allocation16 + $0x5c] sm:$0xf] }
 0x2f1   :  { %2989 = vmatpush.bf16.msrb.mxu0 %v4097_v17  ;;  %3011 = vmatpush.bf16.msrb.mxu2 %v4737_v60  ;;  %v5734_v62 = vadd.f32 %v2707_v26, %v2695_v47  ;;  %v2722_v17 = vpop.f32.mrf.mxu3  ;;  %v2735_v60 = vpop.f32.mrf.mxu0  ;;  %v4943_v47 = vld [vmem:[#allocation16 + $0x29c] sm:$0xf] }
 0x2f2   :  { %v4863_v26 = vld [vmem:[#allocation16 + $0x1c] sm:$0xf] }
 0x2f3   :  { %2978 = vmatpush.bf16.msra.mxu3 %v3777_v31  ;;  %3000 = vmatpush.bf16.msrb.mxu1 %v4417_v32  ;;  %v4514_v31 = vld [vmem:[#allocation16 + $0x5f8] sm:$0xf0]  ;;  %v4609_v32 = vor.u32 %v5075_v48, %v4608_v18  ;;  %v3077_v33 = vrot.slane %v5734_v62, 4  ;;  %v5738_v34 = vpop.f32.mrf.mxu1  ;;  %v4453_v48 = vor.u32 %v5031_v9, %v4450_v0 }
 0x2f4   :  { %v4517_v38 = vor.u32 %v5047_v30, %v4514_v31  ;;  %v5023_v61 = vld [vmem:[#allocation16 + $0x51c] sm:$0xf]  ;;  %v4741_v31 = vor.u32 %v5103_v23, %v4738_v20 }
 0x2f5   :  { %2990 = vmatpush.bf16.msrb.mxu0 %v4065_v39  ;;  %3012 = vmatpush.bf16.msrb.mxu2 %v4705_v41  ;;  %v4959_v39 = vld [vmem:[#allocation16 + $0x31c] sm:$0xf]  ;;  %v3078_v43 = vadd.f32 %v3077_v33, %v5734_v62 }
 0x2f6   :  { %2979 = vmatmul.bf16.vlgmr.msra.gmra.mxu3 %v5682_v28  ;;  %v4162_v41 = vld [vmem:[#allocation16 + $0x338] sm:$0xf0] }
 0x2f7   :  { %3023 = vmatpush.bf16.msrb.mxu3 %v4005_v35  ;;  %3001 = vmatpush.bf16.msrb.mxu1 %v4385_v44  ;;  %v4289_v35 = vor.u32 %v4995_v58, %v4288_v27  ;;  %v3842_v44 = vld [vmem:[#allocation16 + $0xb8] sm:$0xf0]  ;;  %v3079_v59 = vrot.slane %v3078_v43, 2  ;;  %v4165_v54 = vor.u32 %v4959_v39, %v4162_v41 }
 0x2f8   :  { %v3778_v58 = vld [vmem:[#allocation16 + $0x38] sm:$0xf0] }
 0x2f9   :  { %2991 = vmatpush.bf16.msrb.mxu0 %v4033_v46  ;;  %3013 = vmatpush.bf16.msrb.mxu2 %v4673_v3  ;;  %v2709_v46 = vpop.f32.mrf.mxu2  ;;  %v3845_v3 = vor.u32 %v4879_v42, %v3842_v44  ;;  %v3080_v7 = vadd.f32 %v3079_v59, %v3078_v43  ;;  %v5741_v51 = vpop.f32.mrf.mxu0  ;;  %v4418_v17 = vld [vmem:[#allocation16 + $0x538] sm:$0xf0] }
 0x2fa   :  { %v5743_v12 = vpop.f32.mrf.mxu3  ;;  %v4706_v56 = vld [vmem:[#allocation16 + $0x778] sm:$0xf0] }
 0x2fb   :  { %3024 = vmatpush.bf16.msrb.mxu3 %v3973_v55  ;;  %3002 = vmatpush.bf16.msrb.mxu1 %v4353_v4  ;;  %v4544_v55 = vld [vmem:[#allocation16 + $0x618] sm:$0xf]  ;;  %v4770_v4 = vld [vmem:[#allocation16 + $0x7f8] sm:$0xf0]  ;;  %v3081_v16 = vrot.slane %v3080_v7, 1  ;;  %v2748_v11 = vpop.f32.mrf.mxu1  ;;  %v2786_v20 = vadd.f32 %v5741_v51, %v5743_v12 }
 0x2fc   :  { %2992 = vmatmul.bf16.vlgmr.msrb.gmra.mxu0 %v5688_v45  ;;  %v4545_v14 = vor.u32 %v5059_v57, %v4544_v55  ;;  %v4386_v39 = vld [vmem:[#allocation16 + $0x4f8] sm:$0xf0] }
 0x2fd   :  { %3036 = vmatpush.bf16.msra.mxu0 %v4261_v50  ;;  %3014 = vmatpush.bf16.msrb.mxu2 %v4641_v13  ;;  %v5111_v50 = vld [vmem:[#allocation16 + $0x7dc] sm:$0xf]  ;;  %v4133_v13 = vor.u32 %v4951_v25, %v4130_v2  ;;  %v3082_v27 = vadd.f32 %v3081_v16, %v3080_v7 }
 0x2fe   :  { %v4773_v18 = vor.u32 %v5111_v50, %v4770_v4  ;;  %v4927_v52 = vld [vmem:[#allocation16 + $0x21c] sm:$0xf] }
 0x2ff   :  { %3025 = vmatpush.bf16.msrb.mxu3 %v3941_v8  ;;  %3003 = vmatpush.bf16.msrb.mxu1 %v4321_v21  ;;  %v3810_v8 = vld [vmem:[#allocation16 + $0x78] sm:$0xf0]  ;;  %v3125_v29 = vmul.f32 %v3082_v27, %v5580_v24 }
 0x300   :  { %v3813_v21 = vor.u32 %v4871_v6, %v3810_v8  ;;  %v4034_v55 = vld [vmem:[#allocation16 + $0x238] sm:$0xf0] }
 0x301   :  { %3037 = vmatpush.bf16.msra.mxu0 %v4229_v19  ;;  %3015 = vmatpush.bf16.msrb.mxu2 %v4609_v32  ;;  %v4098_v19 = vld [vmem:[#allocation16 + $0x2b8] sm:$0xf0]  ;;  %v2759_v33 = vpop.f32.mrf.mxu2  ;;  %v5751_v37 = vsub.f32 %v5734_v62, %v3125_v29  ;;  %v4037_v50 = vor.u32 %v4927_v52, %v4034_v55 }
 0x302   :  { %v4101_v60 = vor.u32 %v4943_v47, %v4098_v19  ;;  %v4935_v32 = vld [vmem:[#allocation16 + $0x25c] sm:$0xf]  ;;  %v2774_v41 = vpop.f32.mrf.mxu3 }
 0x303   :  { %3026 = vmatpush.bf16.msrb.mxu3 %v3909_v5  ;;  %3004 = vmatpush.bf16.msrb.mxu1 %v4289_v35  ;;  %v2734_v5 = vadd.f32 %v5729_v1, %v5727_v63  ;;  %v4421_v35 = vor.u32 %v5023_v61, %v4418_v17  ;;  %v4066_v63 = vld [vmem:[#allocation16 + $0x278] sm:$0xf0]  ;;  %v3141_v42 = vmul.f32 %v5751_v37, %v5751_v37  ;;  %v2798_v62 = vpop.f32.mrf.mxu1 }
 0x304   :  { %v5095_v1 = vld [vmem:[#allocation16 + $0x75c] sm:$0xf]  ;;  %v4069_v44 = vor.u32 %v4935_v32, %v4066_v63  ;;  %v2799_v17 = vadd.f32 %v2798_v62, %v2786_v20 }
 0x305   :  { %3038 = vmatpush.bf16.msra.mxu0 %v4197_v10  ;;  %3016 = vmatpush.bf16.msrb.mxu2 %v4577_v53  ;;  %v2747_v30 = vadd.f32 %v5738_v34, %v2734_v5  ;;  %v3781_v10 = vor.u32 %v4863_v26, %v3778_v58  ;;  %v2787_v34 = vpop.f32.mrf.mxu0  ;;  %v4709_v49 = vor.u32 %v5095_v1, %v4706_v56  ;;  %v5087_v57 = vld [vmem:[#allocation16 + $0x71c] sm:$0xf] }
 0x306   :  { %3005 = vmatmul.bf16.vlgmr.msrb.gmra.mxu1 %v5697_v22  ;;  %v4674_v59 = vld [vmem:[#allocation16 + $0x738] sm:$0xf0] }
 0x307   :  { %3027 = vmatpush.bf16.msrb.mxu3 %v3877_v15  ;;  %3049 = vmatpush.bf16.msra.mxu1 %v4517_v38  ;;  %v5753_v15 = vadd.f32 %v2759_v33, %v2747_v30  ;;  %v5015_v38 = vld [vmem:[#allocation16 + $0x4dc] sm:$0xf]  ;;  %v4677_v4 = vor.u32 %v5087_v57, %v4674_v59 }
 0x308   :  { %v4389_v53 = vor.u32 %v5015_v38, %v4386_v39  ;;  %v5007_v2 = vld [vmem:[#allocation16 + $0x49c] sm:$0xf] }
 0x309   :  { %3039 = vmatpush.bf16.msra.mxu0 %v4165_v54  ;;  %3017 = vmatpush.bf16.msrb.mxu2 %v4545_v14  ;;  %v3083_v43 = vrot.slane %v5753_v15, 4  ;;  %v3149_v54 = vrot.slane %v3141_v42, 4  ;;  %v4354_v46 = vld [vmem:[#allocation16 + $0x4b8] sm:$0xf0]  ;;  %v2761_v6 = vpop.f32.mrf.mxu2 }
 0x30a   :  { %v4357_v7 = vor.u32 %v5007_v2, %v4354_v46  ;;  %v5079_v8 = vld [vmem:[#allocation16 + $0x6dc] sm:$0xf] }
 0x30b   :  { %3028 = vmatpush.bf16.msrb.mxu3 %v3845_v3  ;;  %3050 = vmatpush.bf16.msra.mxu1 %v4485_v36  ;;  %v3084_v25 = vadd.f32 %v3083_v43, %v5753_v15  ;;  %v3150_v3 = vadd.f32 %v3149_v54, %v3141_v42  ;;  %v4642_v9 = vld [vmem:[#allocation16 + $0x6f8] sm:$0xf0]  ;;  %v2800_v19 = vpop.f32.mrf.mxu1 }
 0x30c   :  { %3018 = vmatmul.bf16.vlgmr.msrb.gmra.mxu2 %v5701_v40  ;;  %v4999_v16 = vld [vmem:[#allocation16 + $0x45c] sm:$0xf]  ;;  %v4645_v47 = vor.u32 %v5079_v8, %v4642_v9 }
 0x30d   :  { %3040 = vmatpush.bf16.msra.mxu0 %v4133_v13  ;;  %3062 = vmatpush.bf16.msra.mxu2 %v4773_v18  ;;  %v3085_v36 = vrot.slane %v3084_v25, 2  ;;  %v3151_v0 = vrot.slane %v3150_v3, 2  ;;  %v4322_v11 = vld [vmem:[#allocation16 + $0x478] sm:$0xf0] }
 0x30e   :  { %v4610_v23 = vld [vmem:[#allocation16 + $0x6b8] sm:$0xf0] }
 0x30f   :  { %3029 = vmatpush.bf16.msrb.mxu3 %v3813_v21  ;;  %3051 = vmatpush.bf16.msra.mxu1 %v4453_v48  ;;  %v3086_v14 = vadd.f32 %v3085_v36, %v3084_v25  ;;  %v3152_v13 = vadd.f32 %v3151_v0, %v3150_v3  ;;  %v4325_v21 = vor.u32 %v4999_v16, %v4322_v11  ;;  %v5071_v48 = vld [vmem:[#allocation16 + $0x69c] sm:$0xf] }
 0x310   :  { %v4991_v5 = vld [vmem:[#allocation16 + $0x41c] sm:$0xf] }
 0x311   :  { %3041 = vmatpush.bf16.msra.mxu0 %v4101_v60  ;;  %3063 = vmatpush.bf16.msra.mxu2 %v4741_v31  ;;  %v3087_v18 = vrot.slane %v3086_v14, 1  ;;  %v4290_v27 = vld [vmem:[#allocation16 + $0x438] sm:$0xf0]  ;;  %v4613_v60 = vor.u32 %v5071_v48, %v4610_v23  ;;  %v2811_v29 = vpop.f32.mrf.mxu2 }
 0x312   :  { %v4293_v30 = vor.u32 %v4991_v5, %v4290_v27  ;;  %v5063_v31 = vld [vmem:[#allocation16 + $0x65c] sm:$0xf]  ;;  %v2812_v12 = vadd.f32 %v2811_v29, %v2799_v17 }
 0x313   :  { %3030 = vmatpush.bf16.msrb.mxu3 %v3781_v10  ;;  %3052 = vmatpush.bf16.msra.mxu1 %v4421_v35  ;;  %v3088_v26 = vadd.f32 %v3087_v18, %v3086_v14  ;;  %v4578_v32 = vld [vmem:[#allocation16 + $0x678] sm:$0xf0] }
 0x314   :  { %v3089_v35 = vrot.slane %v2812_v12, 4  ;;  %v4581_v63 = vor.u32 %v5063_v31, %v4578_v32  ;;  %v5055_v1 = vld [vmem:[#allocation16 + $0x61c] sm:$0xf] }
 0x315   :  { %3042 = vmatpush.bf16.msra.mxu0 %v4069_v44  ;;  %3064 = vmatpush.bf16.msra.mxu2 %v4709_v49  ;;  %v3126_v61 = vmul.f32 %v3088_v26, %v5580_v24  ;;  %v4546_v56 = vld [vmem:[#allocation16 + $0x638] sm:$0xf0] }
 0x316   :  { %3031 = vmatmul.bf16.vlgmr.msrb.gmra.mxu3 %v5682_v28  ;;  %v3153_v28 = vrot.slane %v3152_v13, 1  ;;  %v3090_v38 = vadd.f32 %v3089_v35, %v2812_v12  ;;  %v5782_v19 = vld [vmem:[%s5844_s10] sm:$0xff]  ;;  %s5464_s10 = smov [#allocation19]  }
 0x317   :  { %3053 = vmatpush.bf16.msra.mxu1 %v4389_v53  ;;  %v5767_v51 = vsub.f32 %v5753_v15, %v3126_v61  ;;  %v4549_v15 = vor.u32 %v5055_v1, %v4546_v56  ;;  %v5786_v61 = vld [vmem:[#allocation17] sm:$0xff]  ;;  %s3388_s14 = sshll.u32 %s5464_s10, 4  ;;  %s3389_s14 = int_to_ptr.vmem [resolvable:$true] %s3388_s14 }
 0x318   :  { %v3154_v58 = vadd.f32 %v3153_v28, %v3152_v13  ;;  %v3091_v43 = vrot.slane %v3090_v38, 2 }
 0x319   :  { %3043 = vmatpush.bf16.msra.mxu0 %v4037_v50  ;;  %3065 = vmatpush.bf16.msra.mxu2 %v4677_v4  ;;  %v2824_v39 = vpop.f32.mrf.mxu3  ;;  %v2837_v41 = vpop.f32.mrf.mxu0 }
 0x31a   :  { %v3197_v33 = vmul.f32 %v3154_v58, %v5580_v24  ;;  %v2813_v44 = vpop.f32.mrf.mxu2  ;;  %v3092_v52 = vadd.f32 %v3091_v43, %v3090_v38  ;;  %v2838_v13 = vadd.f32 %v2837_v41, %v2824_v39  ;;  %v3302_v58 = vperm.slane %v5782_v19, 0 }
 0x31b   :  { %3054 = vmatpush.bf16.msra.mxu1 %v4357_v7  ;;  %v3328_v41 = vperm.slane %v5786_v61, 1 }
 0x31c   :  { %3044 = vmatmul.bf16.vlgmr.msra.gmra.mxu0 %v5688_v45  ;;  %v3205_v10 = vadd.f32 0.8, %v3197_v33  ;;  %v3142_v45 = vmul.f32 %v5767_v51, %v5767_v51  ;;  %v3093_v55 = vrot.slane %v3092_v52, 1  ;;  %v3327_v33 = vperm.slane %v5786_v61, 0 }
 0x31d   :  { %3066 = vmatpush.bf16.msra.mxu2 %v4645_v47 }
 0x31e   :  { %5151 = vrsqrt.f32 %v3205_v10  ;;  %v3155_v34 = vrot.slane %v3142_v45, 4  ;;  %v3094_v54 = vadd.f32 %v3093_v55, %v3092_v52  ;;  %vm3219_vm13 = vweird.f32 %v3205_v10 }
 0x31f   :  { %3055 = vmatpush.bf16.msra.mxu1 %v4325_v21 }
 0x320   :  { %v3156_v42 = vadd.f32 %v3155_v34, %v3142_v45  ;;  %v3127_v36 = vmul.f32 %v3094_v54, %v5580_v24 }
 0x321   :  { %3067 = vmatpush.bf16.msra.mxu2 %v4613_v60  ;;  %v2826_v2 = vpop.f32.mrf.mxu3  ;;  %v2839_v46 = vpop.f32.mrf.mxu0 }
 0x322   :  { %v3157_v49 = vrot.slane %v3156_v42, 2  ;;  %v5775_v6 = vsub.f32 %v2812_v12, %v3127_v36 }
 0x323   :  { %3056 = vmatpush.bf16.msra.mxu1 %v4293_v30  ;;  %v2850_v50 = vpop.f32.mrf.mxu1 }
 0x324   :  { %v5152_v62 = vpop.eup %5151  ;;  %v3158_v53 = vadd.f32 %v3157_v49, %v3156_v42  ;;  %v3143_v8 = vmul.f32 %v5775_v6, %v5775_v6  ;;  %v2851_v23 = vadd.f32 %v2850_v50, %v2838_v13 }
 0x325   :  { %3068 = vmatpush.bf16.msra.mxu2 %v4581_v63  ;;  %v3214_v57 = vmul.f32 %v5152_v62, %v3205_v10  ;;  %vm3220_vm12 = vweird.f32 %v5152_v62  ;;  %v3303_v63 = vperm.slane %v5782_v19, 1 }
 0x326   :  { %3057 = vmatmul.bf16.vlgmr.msra.gmra.mxu1 %v5697_v22  ;;  %v3159_v59 = vrot.slane %v3158_v53, 1  ;;  %v3161_v0 = vrot.slane %v3143_v8, 4  ;;  %vm3221_vm14 = vmor %vm3219_vm13, %vm3220_vm12 }
 0x327   :  { %v3215_v25 = vmul.f32 %v5152_v62, %v3214_v57 }
 0x328   :  { %v3160_v3 = vadd.f32 %v3159_v59, %v3158_v53  ;;  %v3162_v14 = vadd.f32 %v3161_v0, %v3143_v8 }
 0x329   :  { %3069 = vmatpush.bf16.msra.mxu2 %v4549_v15  ;;  %v3216_v22 = vmul.f32 0.5, %v3215_v25 }
 0x32a   :  { %v3198_v4 = vmul.f32 %v3160_v3, %v5580_v24  ;;  %v3163_v11 = vrot.slane %v3162_v14, 2 }
 0x32b   :  { %v3217_v9 = vsub.f32 1.5, %v3216_v22  ;;  %v2852_v16 = vpop.f32.mrf.mxu1 }
 0x32c   :  { %3070 = vmatmul.bf16.vlgmr.msra.gmra.mxu2 %v5701_v40  ;;  %v3206_v7 = vadd.f32 0.8, %v3198_v4  ;;  %v3164_v47 = vadd.f32 %v3163_v11, %v3162_v14 }
 0x32d   :  { %v3218_v40 = vmul.f32 %v5152_v62, %v3217_v9 }
 0x32e   :  { %5153 = vrsqrt.f32 %v3206_v7  ;;  %v3165_v28 = vrot.slane %v3164_v47, 1  ;;  %vm3229_vm0 = vweird.f32 %v3206_v7 }
 0x32f   :  { %v3222_v21 = vsel %vm3221_vm14, %v5152_v62, %v3218_v40  ;;  %v2863_v20 = vpop.f32.mrf.mxu2 }
 0x330   :  { %v2864_v5 = vadd.f32 %v2863_v20, %v2851_v23  ;;  %v3293_v27 = vmul.f32 %v3222_v21, %v5751_v37  ;;  %v3166_v60 = vadd.f32 %v3165_v28, %v3164_v47 }
 0x332   :  { %v3095_v29 = vrot.slane %v2864_v5, 4  ;;  %v3318_v32 = vmul.f32 %v3302_v58, %v3293_v27  ;;  %v3199_v10 = vmul.f32 %v3166_v60, %v5580_v24 }
 0x334   :  { %v5154_v18 = vpop.eup %5153  ;;  %v3096_v31 = vadd.f32 %v3095_v29, %v2864_v5  ;;  %v3343_v38 = vadd.f32 %v3327_v33, %v3318_v32  ;;  %v3207_v42 = vadd.f32 0.8, %v3199_v10 }
 0x335   :  { %v3224_v48 = vmul.f32 %v5154_v18, %v3206_v7  ;;  %vm3230_vm15 = vweird.f32 %v5154_v18 }
 0x336   :  { %v3097_v45 = vrot.slane %v3096_v31, 2  ;;  %vm3231_vm1 = vmor %vm3229_vm0, %vm3230_vm15  ;;  %v3359_v49 = vmul.f32 0.2, %v3343_v38  ;;  %vm3351_vm2 = vcmp.ge.f32.partialorder %v3343_v38, 0.0  ;;  %5155 = vrsqrt.f32 %v3207_v42 }
 0x337   :  { %v3225_v26 = vmul.f32 %v5154_v18, %v3224_v48  ;;  %v2865_v1 = vpop.f32.mrf.mxu2  ;;  %vm3239_vm5 = vweird.f32 %v3207_v42 }
 0x338   :  { %v3098_v34 = vadd.f32 %v3097_v45, %v3096_v31  ;;  %v3304_v1 = vperm.slane %v5782_v19, 2 }
 0x339   :  { %v3226_v17 = vmul.f32 0.5, %v3225_v26  ;;  %v2876_v35 = vpop.f32.mrf.mxu3  ;;  %v2889_v37 = vpop.f32.mrf.mxu0 }
 0x33a   :  { %v3099_v43 = vrot.slane %v3098_v34, 1  ;;  %v2890_v8 = vadd.f32 %v2889_v37, %v2876_v35 }
 0x33b   :  { %v3227_v30 = vsub.f32 1.5, %v3226_v17 }
 0x33c   :  { %v3100_v44 = vadd.f32 %v3099_v43, %v3098_v34  ;;  %v5156_v3 = vpop.eup %5155 }
 0x33d   :  { %v3228_v12 = vmul.f32 %v5154_v18, %v3227_v30  ;;  %v3234_v50 = vmul.f32 %v5156_v3, %v3207_v42  ;;  %vm3240_vm4 = vweird.f32 %v5156_v3  ;;  %v3329_v42 = vperm.slane %v5786_v61, 2 }
 0x33e   :  { %v3128_v62 = vmul.f32 %v3100_v44, %v5580_v24  ;;  %vm3241_vm6 = vmor %vm3239_vm5, %vm3240_vm4  ;;  %v3305_v44 = vperm.slane %v5782_v19, 3 }
 0x33f   :  { %v3232_v56 = vsel %vm3231_vm1, %v5154_v18, %v3228_v12  ;;  %v3235_v0 = vmul.f32 %v5156_v3, %v3234_v50 }
 0x340   :  { %v3294_v39 = vmul.f32 %v3232_v56, %v5767_v51  ;;  %v5794_v54 = vsub.f32 %v2864_v5, %v3128_v62  ;;  %v3367_v51 = vsel %vm3351_vm2, %v3343_v38, %v3359_v49 }
 0x341   :  { %v2878_v53 = vpop.f32.mrf.mxu3  ;;  %v2891_v55 = vpop.f32.mrf.mxu0  ;;  %v3236_v18 = vmul.f32 0.5, %v3235_v0 }
 0x342   :  { %v3319_v15 = vmul.f32 %v3303_v63, %v3294_v39  ;;  %v3144_v2 = vmul.f32 %v5794_v54, %v5794_v54  ;;  %v3330_v55 = vperm.slane %v5786_v61, 3 }
 0x343   :  { %v2902_v59 = vpop.f32.mrf.mxu1  ;;  %v3237_v28 = vsub.f32 1.5, %v3236_v18 }
 0x344   :  { %v3344_v52 = vadd.f32 %v3328_v41, %v3319_v15  ;;  %v3167_v36 = vrot.slane %v3144_v2, 4  ;;  %v2903_v14 = vadd.f32 %v2902_v59, %v2890_v8 }
 0x345   :  { %v3238_v17 = vmul.f32 %v5156_v3, %v3237_v28 }
 0x346   :  { %vm3352_vm3 = vcmp.ge.f32.partialorder %v3344_v52, 0.0  ;;  %v3360_v57 = vmul.f32 0.2, %v3344_v52  ;;  %v3168_v22 = vadd.f32 %v3167_v36, %v3144_v2 }
 0x347   :  { %v3242_v31 = vsel %vm3241_vm6, %v5156_v3, %v3238_v17 }
 0x348   :  { %v3368_v25 = vsel %vm3352_vm3, %v3344_v52, %v3360_v57  ;;  %v3169_v7 = vrot.slane %v3168_v22, 2  ;;  %v3295_v63 = vmul.f32 %v3242_v31, %v5775_v6 }
 0x349   :  { %v3375_v46 = vpack.c.bf16 %v3368_v25, %v3367_v51 }
 0x34a   :  { %v3170_v9 = vadd.f32 %v3169_v7, %v3168_v22  ;;  %v3320_v41 = vmul.f32 %v3304_v1, %v3295_v63 }
 0x34b   :  { %3379 = vst [vmem:[#allocation19] sm:$0xff] %v3375_v46  ;;  %v2904_v4 = vpop.f32.mrf.mxu1 }
 0x34c   :  { %v3171_v40 = vrot.slane %v3170_v9, 1  ;;  %v3345_v62 = vadd.f32 %v3329_v42, %v3320_v41 }
 0x34e   :  { %v3172_v13 = vadd.f32 %v3171_v40, %v3170_v9  ;;  %v3361_v3 = vmul.f32 0.2, %v3345_v62  ;;  %vm3353_vm10 = vcmp.ge.f32.partialorder %v3345_v62, 0.0 }
 0x34f   :  { %v2915_v16 = vpop.f32.mrf.mxu2 }
 0x350   :  { %v2916_v11 = vadd.f32 %v2915_v16, %v2903_v14  ;;  %v3200_v21 = vmul.f32 %v3172_v13, %v5580_v24  ;;  %v3369_v9 = vsel %vm3353_vm10, %v3345_v62, %v3361_v3 }
 0x352   :  { %v3101_v47 = vrot.slane %v2916_v11, 4  ;;  %v3208_v23 = vadd.f32 0.8, %v3200_v21 }
 0x354   :  { %v3102_v48 = vadd.f32 %v3101_v47, %v2916_v11  ;;  %5157 = vrsqrt.f32 %v3208_v23  ;;  %vm3249_vm8 = vweird.f32 %v3208_v23 }
 0x356   :  { %v3103_v20 = vrot.slane %v3102_v48, 2 }
 0x357   :  { %v2917_v27 = vpop.f32.mrf.mxu2 }
 0x358   :  { %v3104_v58 = vadd.f32 %v3103_v20, %v3102_v48 }
 0x359   :  { %v2928_v26 = vpop.f32.mrf.mxu3  ;;  %v2941_v5 = vpop.f32.mrf.mxu0 }
 0x35a   :  { %v3105_v60 = vrot.slane %v3104_v58, 1  ;;  %v5158_v30 = vpop.eup %5157  ;;  %v2942_v57 = vadd.f32 %v2941_v5, %v2928_v26 }
 0x35b   :  { %v3244_v32 = vmul.f32 %v5158_v30, %v3208_v23  ;;  %vm3250_vm7 = vweird.f32 %v5158_v30 }
 0x35c   :  { %v3106_v29 = vadd.f32 %v3105_v60, %v3104_v58  ;;  %vm3251_vm9 = vmor %vm3249_vm8, %vm3250_vm7 }
 0x35d   :  { %v3245_v35 = vmul.f32 %v5158_v30, %v3244_v32 }
 0x35e   :  { %v3129_v33 = vmul.f32 %v3106_v29, %v5580_v24 }
 0x35f   :  { %v3246_v56 = vmul.f32 0.5, %v3245_v35 }
 0x360   :  { %v5800_v37 = vsub.f32 %v2916_v11, %v3129_v33 }
 0x361   :  { %v2930_v12 = vpop.f32.mrf.mxu3  ;;  %v2943_v10 = vpop.f32.mrf.mxu0  ;;  %v3247_v38 = vsub.f32 1.5, %v3246_v56 }
 0x362   :  { %v3145_v34 = vmul.f32 %v5800_v37, %v5800_v37 }
 0x363   :  { %v2954_v45 = vpop.f32.mrf.mxu1  ;;  %v3248_v43 = vmul.f32 %v5158_v30, %v3247_v38 }
 0x364   :  { %v3173_v39 = vrot.slane %v3145_v34, 4  ;;  %v2955_v25 = vadd.f32 %v2954_v45, %v2942_v57 }
 0x365   :  { %v3252_v6 = vsel %vm3251_vm9, %v5158_v30, %v3248_v43 }
 0x366   :  { %v3174_v15 = vadd.f32 %v3173_v39, %v3145_v34  ;;  %v3296_v53 = vmul.f32 %v3252_v6, %v5794_v54 }
 0x368   :  { %v3175_v52 = vrot.slane %v3174_v15, 2  ;;  %v3321_v51 = vmul.f32 %v3305_v44, %v3296_v53 }
 0x36a   :  { %v3176_v59 = vadd.f32 %v3175_v52, %v3174_v15  ;;  %v3346_v36 = vadd.f32 %v3330_v55, %v3321_v51 }
 0x36b   :  { %v2956_v49 = vpop.f32.mrf.mxu1 }
 0x36c   :  { %v3177_v2 = vrot.slane %v3176_v59, 1  ;;  %vm3354_vm11 = vcmp.ge.f32.partialorder %v3346_v36, 0.0  ;;  %v3362_v50 = vmul.f32 0.2, %v3346_v36 }
 0x36e   :  { %v3178_v4 = vadd.f32 %v3177_v2, %v3176_v59  ;;  %v3370_v0 = vsel %vm3354_vm11, %v3346_v36, %v3362_v50  ;;  %v3306_v50 = vperm.slane %v5782_v19, 4 }
 0x36f   :  { %v2967_v46 = vpop.f32.mrf.mxu2  ;;  %v3376_v54 = vpack.c.bf16 %v3370_v0, %v3369_v9 }
 0x370   :  { %v2968_v22 = vadd.f32 %v2967_v46, %v2955_v25  ;;  %v3201_v14 = vmul.f32 %v3178_v4, %v5580_v24 }
 0x371   :  { %3380 = vst [vmem:[#allocation19 + $0x8] sm:$0xff] %v3376_v54  ;;  %v3331_v54 = vperm.slane %v5786_v61, 4 }
 0x372   :  { %v3107_v7 = vrot.slane %v2968_v22, 4  ;;  %v3209_v47 = vadd.f32 0.8, %v3201_v14 }
 0x374   :  { %v3108_v8 = vadd.f32 %v3107_v7, %v2968_v22  ;;  %5159 = vrsqrt.f32 %v3209_v47  ;;  %vm3259_vm13 = vweird.f32 %v3209_v47 }
 0x376   :  { %v3109_v40 = vrot.slane %v3108_v8, 2 }
 0x377   :  { %v2969_v13 = vpop.f32.mrf.mxu2 }
 0x378   :  { %v3110_v18 = vadd.f32 %v3109_v40, %v3108_v8 }
 0x379   :  { %v2980_v16 = vpop.f32.mrf.mxu3  ;;  %v2993_v11 = vpop.f32.mrf.mxu0 }
 0x37a   :  { %v3111_v21 = vrot.slane %v3110_v18, 1  ;;  %v5160_v58 = vpop.eup %5159  ;;  %v2994_v32 = vadd.f32 %v2993_v11, %v2980_v16  ;;  %v3307_v16 = vperm.slane %v5782_v19, 5 }
 0x37b   :  { %v3254_v29 = vmul.f32 %v5160_v58, %v3209_v47  ;;  %vm3260_vm12 = vweird.f32 %v5160_v58 }
 0x37c   :  { %v3112_v48 = vadd.f32 %v3111_v21, %v3110_v18  ;;  %vm3261_vm14 = vmor %vm3259_vm13, %vm3260_vm12  ;;  %v3332_v21 = vperm.slane %v5786_v61, 5 }
 0x37d   :  { %v3255_v12 = vmul.f32 %v5160_v58, %v3254_v29 }
 0x37e   :  { %v3130_v23 = vmul.f32 %v3112_v48, %v5580_v24 }
 0x37f   :  { %v3256_v56 = vmul.f32 0.5, %v3255_v12 }
 0x380   :  { %v3138_v5 = vsub.f32 %v2968_v22, %v3130_v23 }
 0x381   :  { %v2982_v28 = vpop.f32.mrf.mxu3  ;;  %v2995_v20 = vpop.f32.mrf.mxu0  ;;  %v3257_v42 = vsub.f32 1.5, %v3256_v56 }
 0x382   :  { %v3146_v27 = vmul.f32 %v3138_v5, %v3138_v5 }
 0x383   :  { %v3006_v26 = vpop.f32.mrf.mxu1  ;;  %v3258_v52 = vmul.f32 %v5160_v58, %v3257_v42 }
 0x384   :  { %v3179_v17 = vrot.slane %v3146_v27, 4  ;;  %v3007_v10 = vadd.f32 %v3006_v26, %v2994_v32 }
 0x385   :  { %v3262_v57 = vsel %vm3261_vm14, %v5160_v58, %v3258_v52 }
 0x386   :  { %v3180_v60 = vadd.f32 %v3179_v17, %v3146_v27  ;;  %v3297_v22 = vmul.f32 %v3262_v57, %v5800_v37 }
 0x388   :  { %v3181_v31 = vrot.slane %v3180_v60, 2  ;;  %v3322_v0 = vmul.f32 %v3306_v50, %v3297_v22 }
 0x38a   :  { %v3182_v33 = vadd.f32 %v3181_v31, %v3180_v60  ;;  %v3347_v18 = vadd.f32 %v3331_v54, %v3322_v0  ;;  %v3309_v54 = vperm.slane %v5782_v19, 7 }
 0x38b   :  { %v3008_v30 = vpop.f32.mrf.mxu1 }
 0x38c   :  { %v3183_v45 = vrot.slane %v3182_v33, 1  ;;  %v3363_v58 = vmul.f32 0.2, %v3347_v18  ;;  %vm3355_vm2 = vcmp.ge.f32.partialorder %v3347_v18, 0.0 }
 0x38e   :  { %v3184_v1 = vadd.f32 %v3183_v45, %v3182_v33  ;;  %v3371_v33 = vsel %vm3355_vm2, %v3347_v18, %v3363_v58 }
 0x38f   :  { %v3019_v35 = vpop.f32.mrf.mxu2 }
 0x390   :  { %v3020_v63 = vadd.f32 %v3019_v35, %v3007_v10  ;;  %v3202_v38 = vmul.f32 %v3184_v1, %v5580_v24 }
 0x392   :  { %v3113_v34 = vrot.slane %v3020_v63, 4  ;;  %v3210_v41 = vadd.f32 0.8, %v3202_v38 }
 0x394   :  { %v3114_v39 = vadd.f32 %v3113_v34, %v3020_v63  ;;  %5161 = vrsqrt.f32 %v3210_v41  ;;  %vm3269_vm0 = vweird.f32 %v3210_v41 }
 0x396   :  { %v3115_v43 = vrot.slane %v3114_v39, 2 }
 0x397   :  { %v3021_v49 = vpop.f32.mrf.mxu2 }
 0x398   :  { %v3116_v6 = vadd.f32 %v3115_v43, %v3114_v39 }
 0x399   :  { %v3032_v15 = vpop.f32.mrf.mxu3  ;;  %v3045_v44 = vpop.f32.mrf.mxu0 }
 0x39a   :  { %v3117_v62 = vrot.slane %v3116_v6, 1  ;;  %v5162_v55 = vpop.eup %5161  ;;  %v3046_v48 = vadd.f32 %v3045_v44, %v3032_v15 }
 0x39b   :  { %v3264_v59 = vmul.f32 %v5162_v55, %v3210_v41  ;;  %vm3270_vm15 = vweird.f32 %v5162_v55 }
 0x39c   :  { %v3118_v53 = vadd.f32 %v3117_v62, %v3116_v6  ;;  %vm3271_vm1 = vmor %vm3269_vm0, %vm3270_vm15 }
 0x39d   :  { %v3265_v3 = vmul.f32 %v5162_v55, %v3264_v59 }
 0x39e   :  { %v3131_v51 = vmul.f32 %v3118_v53, %v5580_v24 }
 0x39f   :  { %v3266_v4 = vmul.f32 0.5, %v3265_v3 }
 0x3a0   :  { %v5814_v36 = vsub.f32 %v3020_v63, %v3131_v51 }
 0x3a1   :  { %v3034_v25 = vpop.f32.mrf.mxu3  ;;  %v3047_v2 = vpop.f32.mrf.mxu0  ;;  %v3267_v8 = vsub.f32 1.5, %v3266_v4  ;;  %v3308_v4 = vperm.slane %v5782_v19, 6 }
 0x3a2   :  { %v3147_v7 = vmul.f32 %v5814_v36, %v5814_v36 }
 0x3a3   :  { %v3058_v46 = vpop.f32.mrf.mxu1  ;;  %v3268_v14 = vmul.f32 %v5162_v55, %v3267_v8 }
 0x3a4   :  { %v3185_v9 = vrot.slane %v3147_v7, 4  ;;  %v3059_v20 = vadd.f32 %v3058_v46, %v3046_v48 }
 0x3a5   :  { %v3272_v37 = vsel %vm3271_vm1, %v5162_v55, %v3268_v14 }
 0x3a6   :  { %v3186_v40 = vadd.f32 %v3185_v9, %v3147_v7  ;;  %v3298_v47 = vmul.f32 %v3272_v37, %v3138_v5 }
 0x3a8   :  { %v3187_v13 = vrot.slane %v3186_v40, 2  ;;  %v3323_v28 = vmul.f32 %v3307_v16, %v3298_v47 }
 0x3aa   :  { %v3188_v23 = vadd.f32 %v3187_v13, %v3186_v40  ;;  %v3348_v17 = vadd.f32 %v3332_v21, %v3323_v28 }
 0x3ab   :  { %v3060_v11 = vpop.f32.mrf.mxu1 }
 0x3ac   :  { %v3189_v26 = vrot.slane %v3188_v23, 1  ;;  %vm3356_vm3 = vcmp.ge.f32.partialorder %v3348_v17, 0.0  ;;  %v3364_v29 = vmul.f32 0.2, %v3348_v17  ;;  %v3334_v11 = vperm.slane %v5786_v61, 7 }
 0x3ae   :  { %v3190_v30 = vadd.f32 %v3189_v26, %v3188_v23  ;;  %v3372_v12 = vsel %vm3356_vm3, %v3348_v17, %v3364_v29 }
 0x3af   :  { %v3071_v27 = vpop.f32.mrf.mxu2  ;;  %v3377_v5 = vpack.c.bf16 %v3372_v12, %v3371_v33 }
 0x3b0   :  { %v3072_v60 = vadd.f32 %v3071_v27, %v3059_v20  ;;  %v3203_v10 = vmul.f32 %v3190_v30, %v5580_v24 }
 0x3b1   :  { %3381 = vst [vmem:[#allocation19 + $0x10] sm:$0xff] %v3377_v5 }
 0x3b2   :  { %v3119_v31 = vrot.slane %v3072_v60, 4  ;;  %v3211_v1 = vadd.f32 0.8, %v3203_v10 }
 0x3b4   :  { %v3120_v32 = vadd.f32 %v3119_v31, %v3072_v60  ;;  %5163 = vrsqrt.f32 %v3211_v1  ;;  %vm3279_vm5 = vweird.f32 %v3211_v1 }
 0x3b6   :  { %v3121_v45 = vrot.slane %v3120_v32, 2 }
 0x3b7   :  { %v3073_v35 = vpop.f32.mrf.mxu2 }
 0x3b8   :  { %v3122_v63 = vadd.f32 %v3121_v45, %v3120_v32 }
 0x3ba   :  { %v3123_v56 = vrot.slane %v3122_v63, 1  ;;  %v5164_v42 = vpop.eup %5163 }
 0x3bb   :  { %v3274_v44 = vmul.f32 %v5164_v42, %v3211_v1  ;;  %vm3280_vm4 = vweird.f32 %v5164_v42 }
 0x3bc   :  { %v3124_v34 = vadd.f32 %v3123_v56, %v3122_v63  ;;  %vm3281_vm6 = vmor %vm3279_vm5, %vm3280_vm4 }
 0x3bd   :  { %v3275_v52 = vmul.f32 %v5164_v42, %v3274_v44 }
 0x3be   :  { %v3132_v38 = vmul.f32 %v3124_v34, %v5580_v24 }
 0x3bf   :  { %v3276_v55 = vmul.f32 0.5, %v3275_v52 }
 0x3c0   :  { %v3140_v39 = vsub.f32 %v3072_v60, %v3132_v38 }
 0x3c1   :  { %v3277_v51 = vsub.f32 1.5, %v3276_v55 }
 0x3c2   :  { %v3148_v41 = vmul.f32 %v3140_v39, %v3140_v39 }
 0x3c3   :  { %v3278_v25 = vmul.f32 %v5164_v42, %v3277_v51 }
 0x3c4   :  { %v3191_v43 = vrot.slane %v3148_v41, 4 }
 0x3c5   :  { %v3282_v46 = vsel %vm3281_vm6, %v5164_v42, %v3278_v25 }
 0x3c6   :  { %v3192_v15 = vadd.f32 %v3191_v43, %v3148_v41  ;;  %v3299_v50 = vmul.f32 %v3282_v46, %v5814_v36 }
 0x3c8   :  { %v3193_v49 = vrot.slane %v3192_v15, 2  ;;  %v3324_v9 = vmul.f32 %v3308_v4, %v3299_v50 }
 0x3ca   :  { %v3194_v6 = vadd.f32 %v3193_v49, %v3192_v15 }
 0x3cc   :  { %v3195_v62 = vrot.slane %v3194_v6, 1 }
 0x3ce   :  { %v3196_v53 = vadd.f32 %v3195_v62, %v3194_v6 }
 0x3d0   :  { %v3204_v57 = vmul.f32 %v3196_v53, %v5580_v24  ;;  %v3333_v24 = vperm.slane %v5786_v61, 6 }
 0x3d2   :  { %v3212_v59 = vadd.f32 0.8, %v3204_v57  ;;  %v3349_v40 = vadd.f32 %v3333_v24, %v3324_v9 }
 0x3d4   :  { %5165 = vrsqrt.f32 %v3212_v59  ;;  %vm3289_vm8 = vweird.f32 %v3212_v59  ;;  %v3365_v36 = vmul.f32 0.2, %v3349_v40  ;;  %vm3357_vm10 = vcmp.ge.f32.partialorder %v3349_v40, 0.0 }
 0x3d6   :  { %v3373_v47 = vsel %vm3357_vm10, %v3349_v40, %v3365_v36 }
 0x3da   :  { %v5166_v2 = vpop.eup %5165 }
 0x3db   :  { %v3284_v3 = vmul.f32 %v5166_v2, %v3212_v59  ;;  %vm3290_vm7 = vweird.f32 %v5166_v2 }
 0x3dc   :  { %vm3291_vm9 = vmor %vm3289_vm8, %vm3290_vm7 }
 0x3dd   :  { %v3285_v22 = vmul.f32 %v5166_v2, %v3284_v3 }
 0x3df   :  { %v3286_v7 = vmul.f32 0.5, %v3285_v22 }
 0x3e1   :  { %v3287_v8 = vsub.f32 1.5, %v3286_v7 }
 0x3e3   :  { %v3288_v0 = vmul.f32 %v5166_v2, %v3287_v8 }
 0x3e5   :  { %v3292_v14 = vsel %vm3291_vm9, %v5166_v2, %v3288_v0 }
 0x3e6   :  { %v3300_v16 = vmul.f32 %v3292_v14, %v3140_v39 }
 0x3e8   :  { %v3325_v37 = vmul.f32 %v3309_v54, %v3300_v16 }
 0x3ea   :  { %v3350_v13 = vadd.f32 %v3334_v11, %v3325_v37 }
 0x3ec   :  { %vm3358_vm11 = vcmp.ge.f32.partialorder %v3350_v13, 0.0  ;;  %v3366_v18 = vmul.f32 0.2, %v3350_v13 }
 0x3ee   :  { %v3374_v21 = vsel %vm3358_vm11, %v3350_v13, %v3366_v18 }
 0x3ef   :  { %v3378_v19 = vpack.c.bf16 %v3374_v21, %v3373_v47 }
 0x3f1   :  { %3382 = vst [vmem:[#allocation19 + $0x18] sm:$0xff] %v3378_v19 }
 0x3f2   :  { %3393 = dma.vmem_to_hbm [thread:$0]  %s3389_s14, 512, %s3391_s17, [#allocation4]  }
 0x3f3   :  { %5443 = dma.done.wait [#allocation4], 512  }
 0x3f4   :  { %5444 = vsyncadd [#allocation4], 4294966784 }
 0x3f5   :  { %3398 = vsyncpa [#allocation3], 1 }
 0x3f6   :  { %3399 = vsyncpa [#allocation6], 1 }
 0x3f7   :  { %3400 = vsyncpa [#allocation9], 1 }
 0x3f8   :  { %3401 = vsyncpa [#allocation12], 1 }
 0x3f9   :  { %3402 = vsyncpa [#allocation15], 1 }
 0x3fa   :  { %3403 = vsyncpa [#allocation18], 1 }
 0x3fb   :  { %3404 = vsyncpa [#allocation4], 1 }

</bundles_post_ra>
